<compile_context>
chip_gen: v6e
topology: v6e:2x2x1
jax: 0.10.0
libtpu: 0.0.40
codegen_flags: <defaults>
</compile_context>

<pallas_src>
import functools

import jax
import jax.numpy as jnp
from jax import lax
from jax.experimental import pallas as pl
from jax.experimental.pallas import tpu as pltpu

_LANE = 128


# ----------------------------------------------------------------------------
# Fused kernel: one batch element per grid step, everything stays in VMEM.
# ----------------------------------------------------------------------------
def _basic_block_kernel(x_ref, w1_ref, s1_ref, b1_ref, w2_ref, s2_ref, b2_ref,
                        o_ref, xpad_ref, ypad_ref, *, H, W):
    """Fused BasicBlock forward for one image.

    x_ref:            (1, H, W, Cp)      channel-padded input (f32, lane-dense)
    w1_ref, w2_ref:   (3, 3*Cp, Cp)      conv taps in bf16, [kh, (kw, cin), cout]
    s*_ref, b*_ref:   (1, Cp)            folded BN scale / bias (f32)
    o_ref:            (1, H, W, Cp)
    xpad_ref:         (H+2, W+2, Cp)     VMEM scratch (bf16), padded input
    ypad_ref:         (H+2, W+2, Cp)     VMEM scratch (bf16), padded conv1 act
    """
    Cp = o_ref.shape[-1]
    K3 = 3 * Cp

    def zero_border(ref):
        # Only the 1-pixel halo needs zeroing; the interior [1:H+1, 1:W+1] is
        # fully rewritten every grid step.
        zrow = jnp.zeros((1, W + 2, Cp), ref.dtype)
        zcol = jnp.zeros((H, 1, Cp), ref.dtype)
        ref[pl.ds(0, 1), :, :] = zrow
        ref[pl.ds(H + 1, 1), :, :] = zrow
        ref[pl.ds(1, H), pl.ds(0, 1), :] = zcol
        ref[pl.ds(1, H), pl.ds(W + 1, 1), :] = zcol

    def conv3x3(src_ref, w_ref):
        src = src_ref[...]                                    # (H+2, W+2, Cp) bf16
        # Hoist the 3 kw (sublane) shifts out of the tap loop; lane-dense
        # contraction operand of width 3*Cp (bf16 -> MXU-native).
        xc = jnp.concatenate(
            [src[:, 0:W, :], src[:, 1:W + 1, :], src[:, 2:W + 2, :]], axis=-1)
        # Initialize accumulator from the kh=0 dot (no zeros + add).
        acc = jnp.dot(xc[0:H].reshape(H * W, K3), w_ref[0],
                      preferred_element_type=jnp.float32)
        for kh in range(1, 3):                    # leading-dim slice: free
            acc = acc + jnp.dot(
                xc[kh:kh + H].reshape(H * W, K3), w_ref[kh],
                preferred_element_type=jnp.float32)
        return acc.reshape(H, W, Cp)              # f32

    x = x_ref[0]                                              # (H, W, Cp) f32

    # ---- stage 0: padded input halo in VMEM (bf16 MXU operand) ----
    zero_border(xpad_ref)
    xpad_ref[pl.ds(1, H), pl.ds(1, W), :] = x.astype(xpad_ref.dtype)

    # ---- stage 1: conv1 + bn1 + relu -> padded intermediate kept in VMEM ----
    y = conv3x3(xpad_ref, w1_ref)                             # f32
    y = jnp.maximum(y * s1_ref[0] + b1_ref[0], 0.0)           # f32 VPU math
    zero_border(ypad_ref)
    ypad_ref[pl.ds(1, H), pl.ds(1, W), :] = y.astype(ypad_ref.dtype)

    # ---- stage 2: conv2 + bn2 + residual add + relu ----
    z = conv3x3(ypad_ref, w2_ref)                             # f32
    z = z * s2_ref[0] + b2_ref[0] + x.astype(jnp.float32)
    o_ref[0] = jnp.maximum(z, 0.0).astype(o_ref.dtype)


# ----------------------------------------------------------------------------
# Wrapper: layout plumbing (NCHW<->NHWC, 128-lane channel padding, BN folding)
# ----------------------------------------------------------------------------
def _round_up(x, m):
    return (x + m - 1) // m * m


def _pad_last(a, cp):
    pad = cp - a.shape[-1]
    if pad == 0:
        return a
    return jnp.pad(a, [(0, 0)] * (a.ndim - 1) + [(0, pad)])


def _fold_bn(gamma, beta, mean, var, eps=1e-5):
    scale = gamma / jnp.sqrt(var + eps)
    bias = beta - mean * scale
    return scale, bias


def basic_block_forward(x_nchw, params, eps=1e-5):
    """BasicBlock forward. Input/output are NCHW (PyTorch convention)."""
    N, C, H, W = x_nchw.shape
    Cp = _round_up(C, _LANE)
    dt = x_nchw.dtype
    itemsize = jnp.dtype(dt).itemsize
    bf16_size = 2

    x = jnp.transpose(x_nchw, (0, 2, 3, 1))                   # NCHW -> NHWC
    x = _pad_last(x, Cp)                                       # lane-dense channels

    def prep_w(w):
        # (3,3,C,C) -> pad channels -> (3, 3*Cp, Cp), layout [kh, (kw,cin), cout],
        # cast to bf16 for the MXU (f32 accumulation happens in-kernel).
        w = jnp.pad(w, ((0, 0), (0, 0), (0, Cp - C), (0, Cp - C)))
        return w.reshape(3, 3 * Cp, Cp).astype(jnp.bfloat16)

    def prep_sb(v):
        return _pad_last(v.astype(jnp.float32), Cp).reshape(1, Cp)

    # Fold BN before channel padding (padded lanes get scale=0, bias=0).
    s1, b1 = _fold_bn(params["bn1_gamma"], params["bn1_beta"],
                      params["bn1_mean"], params["bn1_var"], eps)
    s2, b2 = _fold_bn(params["bn2_gamma"], params["bn2_beta"],
                      params["bn2_mean"], params["bn2_var"], eps)

    kernel = functools.partial(_basic_block_kernel, H=H, W=W)

    flops = 4 * N * H * W * 9 * Cp * Cp           # 2 convs x 2 flops/MAC (padded)
    bytes_accessed = (2 * N * H * W * Cp * itemsize        # input + output
                      + 2 * 9 * Cp * Cp * bf16_size        # both weight tensors
                      + 4 * Cp * 4)                         # BN scale/bias

    # Per-step VMEM working set (with margin) -> scoped-VMEM request.
    vmem_need = (
        2 * 2 * H * W * Cp * itemsize             # x & out blocks, double-buffered
        + 2 * 3 * (3 * Cp) * Cp * bf16_size       # w1 + w2 (single-buffered, bf16)
        + 4 * Cp * 4                              # BN scale/bias
        + 2 * (H + 2) * (W + 2) * Cp * bf16_size  # xpad + ypad scratch (bf16)
        + 2 * (H + 2) * W * 3 * Cp * bf16_size    # lane-concat xc temporaries
        + 3 * H * W * Cp * 4)                     # f32 acc / y / z temporaries
    vmem_limit = int(max(32 * 2**20, min(64 * 2**20, 2 * vmem_need)))

    # Grid-invariant operands: single-buffer them (their index_map is constant,
    # so double-buffering only wastes VMEM).
    const_w_spec = lambda: pl.BlockSpec((3, 3 * Cp, Cp), lambda n: (0, 0, 0),
                                        pipeline_mode=pl.Buffered(1))
    const_v_spec = lambda: pl.BlockSpec((1, Cp), lambda n: (0, 0),
                                        pipeline_mode=pl.Buffered(1))

    out = pl.pallas_call(
        kernel,
        out_shape=jax.ShapeDtypeStruct((N, H, W, Cp), dt),
        grid_spec=pltpu.PrefetchScalarGridSpec(
            num_scalar_prefetch=0,
            grid=(N,),
            in_specs=[
                pl.BlockSpec((1, H, W, Cp), lambda n: (n, 0, 0, 0)),
                const_w_spec(),
                const_v_spec(),
                const_v_spec(),
                const_w_spec(),
                const_v_spec(),
                const_v_spec(),
            ],
            out_specs=pl.BlockSpec((1, H, W, Cp), lambda n: (n, 0, 0, 0)),
            scratch_shapes=[
                pltpu.VMEM((H + 2, W + 2, Cp), jnp.bfloat16),  # padded input
                pltpu.VMEM((H + 2, W + 2, Cp), jnp.bfloat16),  # padded conv1 act
            ],
        ),
        compiler_params=pltpu.CompilerParams(
            dimension_semantics=("parallel",),
            vmem_limit_bytes=vmem_limit),
        cost_estimate=pl.CostEstimate(flops=flops, transcendentals=0,
                                      bytes_accessed=bytes_accessed),
    )(x, prep_w(params["w1"]), prep_sb(s1), prep_sb(b1),
      prep_w(params["w2"]), prep_sb(s2), prep_sb(b2))

    out = out[..., :C]                                        # drop padded lanes
    return jnp.transpose(out, (0, 3, 1, 2))                   # NHWC -> NCHW


# ----------------------------------------------------------------------------
# Pure-JAX reference (for correctness check, full f32)
# ----------------------------------------------------------------------------
def basic_block_reference(x_nchw, params, eps=1e-5):
    x = jnp.transpose(x_nchw, (0, 2, 3, 1))
    dn = ("NHWC", "HWIO", "NHWC")

    def conv(inp, w):
        return lax.conv_general_dilated(inp, w, (1, 1), "SAME",
                                        dimension_numbers=dn)

    s1, b1 = _fold_bn(params["bn1_gamma"], params["bn1_beta"],
                      params["bn1_mean"], params["bn1_var"], eps)
    s2, b2 = _fold_bn(params["bn2_gamma"], params["bn2_beta"],
                      params["bn2_mean"], params["bn2_var"], eps)
    out = jnp.maximum(conv(x, params["w1"]) * s1 + b1, 0.0)
    out = conv(out, params["w2"]) * s2 + b2 + x
    out = jnp.maximum(out, 0.0)
    return jnp.transpose(out, (0, 3, 1, 2))


# ----------------------------------------------------------------------------
# Main
# ----------------------------------------------------------------------------
if __name__ == "__main__":
    N, C, H, W = 2, 8, 16, 16          # inplanes == planes, stride=1, no downsample
    key = jax.random.PRNGKey(0)
    ks = jax.random.split(key, 10)

    x = jax.random.normal(ks[0], (N, C, H, W), jnp.float32)

    params = {
        # conv weights stored HWIO (3,3,Cin,Cout)
        "w1": jax.random.normal(ks[1], (3, 3, C, C), jnp.float32) * 0.1,
        "w2": jax.random.normal(ks[2], (3, 3, C, C), jnp.float32) * 0.1,
        "bn1_gamma": 1.0 + 0.1 * jax.random.normal(ks[3], (C,), jnp.float32),
        "bn1_beta": 0.1 * jax.random.normal(ks[4], (C,), jnp.float32),
        "bn1_mean": 0.1 * jax.random.normal(ks[5], (C,), jnp.float32),
        "bn1_var": 0.5 + jax.random.uniform(ks[6], (C,), jnp.float32),
        "bn2_gamma": 1.0 + 0.1 * jax.random.normal(ks[7], (C,), jnp.float32),
        "bn2_beta": 0.1 * jax.random.normal(ks[8], (C,), jnp.float32),
        "bn2_mean": 0.1 * jax.random.normal(ks[9], (C,), jnp.float32),
        "bn2_var": 0.5 + jax.random.uniform(ks[0], (C,), jnp.float32),
    }

    out = jax.block_until_ready(basic_block_forward(x, params))
    ref = jax.block_until_ready(basic_block_reference(x, params))

    assert out.shape == (N, C, H, W), out.shape
    # bf16 MXU operands with f32 accumulation -> looser tolerance vs f32 reference.
    max_err = float(jnp.max(jnp.abs(out - ref)))
    assert jnp.allclose(out, ref, atol=5e-2, rtol=5e-2), max_err
    print("KERNEL_OK")
</pallas_src>

<mosaic_0001>
module attributes {stable_mosaic.version = 11 : i64} {
  func.func @_basic_block_kernel(%arg0: i32, %arg1: memref<1x16x16x128xf32, #tpu.memory_space<vmem>>, %arg2: memref<3x384x128xbf16, #tpu.memory_space<vmem>>, %arg3: memref<1x128xf32, #tpu.memory_space<vmem>>, %arg4: memref<1x128xf32, #tpu.memory_space<vmem>>, %arg5: memref<3x384x128xbf16, #tpu.memory_space<vmem>>, %arg6: memref<1x128xf32, #tpu.memory_space<vmem>>, %arg7: memref<1x128xf32, #tpu.memory_space<vmem>>, %arg8: memref<1x16x16x128xf32, #tpu.memory_space<vmem>>, %arg9: memref<18x18x128xbf16, #tpu.memory_space<vmem>>, %arg10: memref<18x18x128xbf16, #tpu.memory_space<vmem>>) attributes {dimension_semantics = [#tpu.dimension_semantics<parallel>], iteration_bounds = array<i64: 2>, scalar_prefetch = 0 : i64, scratch_operands = 2 : i64, tpu.core_type = #tpu.core_type<tc>, window_params = [{transform_indices = @transform_0, window_bounds = array<i64: 1, 16, 16, 128>}, {pipeline_mode = #tpu.pipeline_mode<synchronous>, transform_indices = @transform_1, window_bounds = array<i64: 3, 384, 128>}, {pipeline_mode = #tpu.pipeline_mode<synchronous>, transform_indices = @transform_2, window_bounds = array<i64: 1, 128>}, {pipeline_mode = #tpu.pipeline_mode<synchronous>, transform_indices = @transform_3, window_bounds = array<i64: 1, 128>}, {pipeline_mode = #tpu.pipeline_mode<synchronous>, transform_indices = @transform_4, window_bounds = array<i64: 3, 384, 128>}, {pipeline_mode = #tpu.pipeline_mode<synchronous>, transform_indices = @transform_5, window_bounds = array<i64: 1, 128>}, {pipeline_mode = #tpu.pipeline_mode<synchronous>, transform_indices = @transform_6, window_bounds = array<i64: 1, 128>}, {transform_indices = @transform_7, window_bounds = array<i64: 1, 16, 16, 128>}]} {
    %c0 = arith.constant 0 : index
    %c0_0 = arith.constant 0 : index
    %c0_1 = arith.constant 0 : index
    %c0_2 = arith.constant 0 : index
    %0 = vector.load %arg1[%c0, %c0_0, %c0_1, %c0_2] : memref<1x16x16x128xf32, #tpu.memory_space<vmem>>, vector<1x16x16x128xf32>
    %1 = vector.shape_cast %0 : vector<1x16x16x128xf32> to vector<16x16x128xf32>
    %cst = arith.constant 0.000000e+00 : bf16
    %2 = vector.broadcast %cst : bf16 to vector<1x18x128xbf16>
    %cst_3 = arith.constant 0.000000e+00 : bf16
    %3 = vector.broadcast %cst_3 : bf16 to vector<16x1x128xbf16>
    %c0_4 = arith.constant 0 : index
    %c0_5 = arith.constant 0 : index
    %c0_6 = arith.constant 0 : index
    %4 = vector.load %arg9[%c0_4, %c0_5, %c0_6] : memref<18x18x128xbf16, #tpu.memory_space<vmem>>, vector<1x18x128xbf16>
    tpu.vector_store %arg9[%c0_4, %c0_5, %c0_6], %2 {strides = array<i32>} : memref<18x18x128xbf16, #tpu.memory_space<vmem>>, vector<1x18x128xbf16>,
    %c17 = arith.constant 17 : index
    %c0_7 = arith.constant 0 : index
    %c0_8 = arith.constant 0 : index
    %5 = vector.load %arg9[%c17, %c0_7, %c0_8] : memref<18x18x128xbf16, #tpu.memory_space<vmem>>, vector<1x18x128xbf16>
    tpu.vector_store %arg9[%c17, %c0_7, %c0_8], %2 {strides = array<i32>} : memref<18x18x128xbf16, #tpu.memory_space<vmem>>, vector<1x18x128xbf16>,
    %c1 = arith.constant 1 : index
    %c0_9 = arith.constant 0 : index
    %c0_10 = arith.constant 0 : index
    %6 = vector.load %arg9[%c1, %c0_9, %c0_10] : memref<18x18x128xbf16, #tpu.memory_space<vmem>>, vector<16x1x128xbf16>
    tpu.vector_store %arg9[%c1, %c0_9, %c0_10], %3 {strides = array<i32>} : memref<18x18x128xbf16, #tpu.memory_space<vmem>>, vector<16x1x128xbf16>,
    %c1_11 = arith.constant 1 : index
    %c17_12 = arith.constant 17 : index
    %c0_13 = arith.constant 0 : index
    %7 = vector.load %arg9[%c1_11, %c17_12, %c0_13] : memref<18x18x128xbf16, #tpu.memory_space<vmem>>, vector<16x1x128xbf16>
    tpu.vector_store %arg9[%c1_11, %c17_12, %c0_13], %3 {strides = array<i32>} : memref<18x18x128xbf16, #tpu.memory_space<vmem>>, vector<16x1x128xbf16>,
    %8 = arith.truncf %1 : vector<16x16x128xf32> to vector<16x16x128xbf16>
    %c1_14 = arith.constant 1 : index
    %c1_15 = arith.constant 1 : index
    %c0_16 = arith.constant 0 : index
    %9 = vector.load %arg9[%c1_14, %c1_15, %c0_16] : memref<18x18x128xbf16, #tpu.memory_space<vmem>>, vector<16x16x128xbf16>
    tpu.vector_store %arg9[%c1_14, %c1_15, %c0_16], %8 {strides = array<i32>} : memref<18x18x128xbf16, #tpu.memory_space<vmem>>, vector<16x16x128xbf16>,
    %c0_17 = arith.constant 0 : index
    %c0_18 = arith.constant 0 : index
    %c0_19 = arith.constant 0 : index
    %10 = vector.load %arg9[%c0_17, %c0_18, %c0_19] : memref<18x18x128xbf16, #tpu.memory_space<vmem>>, vector<18x18x128xbf16>
    %11 = vector.extract_strided_slice %10 {offsets = [0, 0, 0], sizes = [18, 16, 128], strides = [1, 1, 1]} : vector<18x18x128xbf16> to vector<18x16x128xbf16>
    %12 = vector.extract_strided_slice %10 {offsets = [0, 1, 0], sizes = [18, 16, 128], strides = [1, 1, 1]} : vector<18x18x128xbf16> to vector<18x16x128xbf16>
    %13 = vector.extract_strided_slice %10 {offsets = [0, 2, 0], sizes = [18, 16, 128], strides = [1, 1, 1]} : vector<18x18x128xbf16> to vector<18x16x128xbf16>
    %14 = tpu.concatenate %11, %12, %13 in 2 : vector<18x16x128xbf16>, vector<18x16x128xbf16>, vector<18x16x128xbf16> -> vector<18x16x384xbf16>
    %15 = vector.extract_strided_slice %14 {offsets = [0, 0, 0], sizes = [16, 16, 384], strides = [1, 1, 1]} : vector<18x16x384xbf16> to vector<16x16x384xbf16>
    %16 = vector.shape_cast %15 : vector<16x16x384xbf16> to vector<256x384xbf16>
    %c0_20 = arith.constant 0 : index
    %c0_21 = arith.constant 0 : index
    %c0_22 = arith.constant 0 : index
    %17 = vector.load %arg2[%c0_20, %c0_21, %c0_22] : memref<3x384x128xbf16, #tpu.memory_space<vmem>>, vector<1x384x128xbf16>
    %18 = vector.shape_cast %17 : vector<1x384x128xbf16> to vector<384x128xbf16>
    %cst_23 = arith.constant dense<0.000000e+00> : vector<256x128xf32>
    %19 = tpu.matmul %16, %18, %cst_23 {dimension_numbers = #tpu.dot_dimension_numbers<[1], [0], [0], [1], [0, 0, 1, 1], [], []>} : vector<256x384xbf16>, vector<384x128xbf16>, vector<256x128xf32> -> vector<256x128xf32>
    %20 = vector.extract_strided_slice %14 {offsets = [1, 0, 0], sizes = [16, 16, 384], strides = [1, 1, 1]} : vector<18x16x384xbf16> to vector<16x16x384xbf16>
    %21 = vector.shape_cast %20 : vector<16x16x384xbf16> to vector<256x384xbf16>
    %c1_24 = arith.constant 1 : index
    %c0_25 = arith.constant 0 : index
    %c0_26 = arith.constant 0 : index
    %22 = vector.load %arg2[%c1_24, %c0_25, %c0_26] : memref<3x384x128xbf16, #tpu.memory_space<vmem>>, vector<1x384x128xbf16>
    %23 = vector.shape_cast %22 : vector<1x384x128xbf16> to vector<384x128xbf16>
    %cst_27 = arith.constant dense<0.000000e+00> : vector<256x128xf32>
    %24 = tpu.matmul %21, %23, %cst_27 {dimension_numbers = #tpu.dot_dimension_numbers<[1], [0], [0], [1], [0, 0, 1, 1], [], []>} : vector<256x384xbf16>, vector<384x128xbf16>, vector<256x128xf32> -> vector<256x128xf32>
    %25 = arith.addf %19, %24 : vector<256x128xf32>
    %26 = vector.extract_strided_slice %14 {offsets = [2, 0, 0], sizes = [16, 16, 384], strides = [1, 1, 1]} : vector<18x16x384xbf16> to vector<16x16x384xbf16>
    %27 = vector.shape_cast %26 : vector<16x16x384xbf16> to vector<256x384xbf16>
    %c2 = arith.constant 2 : index
    %c0_28 = arith.constant 0 : index
    %c0_29 = arith.constant 0 : index
    %28 = vector.load %arg2[%c2, %c0_28, %c0_29] : memref<3x384x128xbf16, #tpu.memory_space<vmem>>, vector<1x384x128xbf16>
    %29 = vector.shape_cast %28 : vector<1x384x128xbf16> to vector<384x128xbf16>
    %cst_30 = arith.constant dense<0.000000e+00> : vector<256x128xf32>
    %30 = tpu.matmul %27, %29, %cst_30 {dimension_numbers = #tpu.dot_dimension_numbers<[1], [0], [0], [1], [0, 0, 1, 1], [], []>} : vector<256x384xbf16>, vector<384x128xbf16>, vector<256x128xf32> -> vector<256x128xf32>
    %31 = arith.addf %25, %30 : vector<256x128xf32>
    %32 = vector.shape_cast %31 : vector<256x128xf32> to vector<16x16x128xf32>
    %c0_31 = arith.constant 0 : index
    %c0_32 = arith.constant 0 : index
    %33 = vector.load %arg3[%c0_31, %c0_32] : memref<1x128xf32, #tpu.memory_space<vmem>>, vector<1x128xf32>
    %34 = vector.shape_cast %33 : vector<1x128xf32> to vector<128xf32>
    %35 = vector.shape_cast %34 : vector<128xf32> to vector<1x1x128xf32>
    %36 = vector.broadcast %35 : vector<1x1x128xf32> to vector<16x16x128xf32>
    %37 = arith.mulf %32, %36 : vector<16x16x128xf32>
    %c0_33 = arith.constant 0 : index
    %c0_34 = arith.constant 0 : index
    %38 = vector.load %arg4[%c0_33, %c0_34] : memref<1x128xf32, #tpu.memory_space<vmem>>, vector<1x128xf32>
    %39 = vector.shape_cast %38 : vector<1x128xf32> to vector<128xf32>
    %40 = vector.shape_cast %39 : vector<128xf32> to vector<1x1x128xf32>
    %41 = vector.broadcast %40 : vector<1x1x128xf32> to vector<16x16x128xf32>
    %42 = arith.addf %37, %41 : vector<16x16x128xf32>
    %cst_35 = arith.constant 0.000000e+00 : f32
    %43 = vector.broadcast %cst_35 : f32 to vector<16x16x128xf32>
    %44 = arith.maximumf %42, %43 : vector<16x16x128xf32>
    %cst_36 = arith.constant 0.000000e+00 : bf16
    %45 = vector.broadcast %cst_36 : bf16 to vector<1x18x128xbf16>
    %cst_37 = arith.constant 0.000000e+00 : bf16
    %46 = vector.broadcast %cst_37 : bf16 to vector<16x1x128xbf16>
    %c0_38 = arith.constant 0 : index
    %c0_39 = arith.constant 0 : index
    %c0_40 = arith.constant 0 : index
    %47 = vector.load %arg10[%c0_38, %c0_39, %c0_40] : memref<18x18x128xbf16, #tpu.memory_space<vmem>>, vector<1x18x128xbf16>
    tpu.vector_store %arg10[%c0_38, %c0_39, %c0_40], %45 {strides = array<i32>} : memref<18x18x128xbf16, #tpu.memory_space<vmem>>, vector<1x18x128xbf16>,
    %c17_41 = arith.constant 17 : index
    %c0_42 = arith.constant 0 : index
    %c0_43 = arith.constant 0 : index
    %48 = vector.load %arg10[%c17_41, %c0_42, %c0_43] : memref<18x18x128xbf16, #tpu.memory_space<vmem>>, vector<1x18x128xbf16>
    tpu.vector_store %arg10[%c17_41, %c0_42, %c0_43], %45 {strides = array<i32>} : memref<18x18x128xbf16, #tpu.memory_space<vmem>>, vector<1x18x128xbf16>,
    %c1_44 = arith.constant 1 : index
    %c0_45 = arith.constant 0 : index
    %c0_46 = arith.constant 0 : index
    %49 = vector.load %arg10[%c1_44, %c0_45, %c0_46] : memref<18x18x128xbf16, #tpu.memory_space<vmem>>, vector<16x1x128xbf16>
    tpu.vector_store %arg10[%c1_44, %c0_45, %c0_46], %46 {strides = array<i32>} : memref<18x18x128xbf16, #tpu.memory_space<vmem>>, vector<16x1x128xbf16>,
    %c1_47 = arith.constant 1 : index
    %c17_48 = arith.constant 17 : index
    %c0_49 = arith.constant 0 : index
    %50 = vector.load %arg10[%c1_47, %c17_48, %c0_49] : memref<18x18x128xbf16, #tpu.memory_space<vmem>>, vector<16x1x128xbf16>
    tpu.vector_store %arg10[%c1_47, %c17_48, %c0_49], %46 {strides = array<i32>} : memref<18x18x128xbf16, #tpu.memory_space<vmem>>, vector<16x1x128xbf16>,
    %51 = arith.truncf %44 : vector<16x16x128xf32> to vector<16x16x128xbf16>
    %c1_50 = arith.constant 1 : index
    %c1_51 = arith.constant 1 : index
    %c0_52 = arith.constant 0 : index
    %52 = vector.load %arg10[%c1_50, %c1_51, %c0_52] : memref<18x18x128xbf16, #tpu.memory_space<vmem>>, vector<16x16x128xbf16>
    tpu.vector_store %arg10[%c1_50, %c1_51, %c0_52], %51 {strides = array<i32>} : memref<18x18x128xbf16, #tpu.memory_space<vmem>>, vector<16x16x128xbf16>,
    %c0_53 = arith.constant 0 : index
    %c0_54 = arith.constant 0 : index
    %c0_55 = arith.constant 0 : index
    %53 = vector.load %arg10[%c0_53, %c0_54, %c0_55] : memref<18x18x128xbf16, #tpu.memory_space<vmem>>, vector<18x18x128xbf16>
    %54 = vector.extract_strided_slice %53 {offsets = [0, 0, 0], sizes = [18, 16, 128], strides = [1, 1, 1]} : vector<18x18x128xbf16> to vector<18x16x128xbf16>
    %55 = vector.extract_strided_slice %53 {offsets = [0, 1, 0], sizes = [18, 16, 128], strides = [1, 1, 1]} : vector<18x18x128xbf16> to vector<18x16x128xbf16>
    %56 = vector.extract_strided_slice %53 {offsets = [0, 2, 0], sizes = [18, 16, 128], strides = [1, 1, 1]} : vector<18x18x128xbf16> to vector<18x16x128xbf16>
    %57 = tpu.concatenate %54, %55, %56 in 2 : vector<18x16x128xbf16>, vector<18x16x128xbf16>, vector<18x16x128xbf16> -> vector<18x16x384xbf16>
    %58 = vector.extract_strided_slice %57 {offsets = [0, 0, 0], sizes = [16, 16, 384], strides = [1, 1, 1]} : vector<18x16x384xbf16> to vector<16x16x384xbf16>
    %59 = vector.shape_cast %58 : vector<16x16x384xbf16> to vector<256x384xbf16>
    %c0_56 = arith.constant 0 : index
    %c0_57 = arith.constant 0 : index
    %c0_58 = arith.constant 0 : index
    %60 = vector.load %arg5[%c0_56, %c0_57, %c0_58] : memref<3x384x128xbf16, #tpu.memory_space<vmem>>, vector<1x384x128xbf16>
    %61 = vector.shape_cast %60 : vector<1x384x128xbf16> to vector<384x128xbf16>
    %cst_59 = arith.constant dense<0.000000e+00> : vector<256x128xf32>
    %62 = tpu.matmul %59, %61, %cst_59 {dimension_numbers = #tpu.dot_dimension_numbers<[1], [0], [0], [1], [0, 0, 1, 1], [], []>} : vector<256x384xbf16>, vector<384x128xbf16>, vector<256x128xf32> -> vector<256x128xf32>
    %63 = vector.extract_strided_slice %57 {offsets = [1, 0, 0], sizes = [16, 16, 384], strides = [1, 1, 1]} : vector<18x16x384xbf16> to vector<16x16x384xbf16>
    %64 = vector.shape_cast %63 : vector<16x16x384xbf16> to vector<256x384xbf16>
    %c1_60 = arith.constant 1 : index
    %c0_61 = arith.constant 0 : index
    %c0_62 = arith.constant 0 : index
    %65 = vector.load %arg5[%c1_60, %c0_61, %c0_62] : memref<3x384x128xbf16, #tpu.memory_space<vmem>>, vector<1x384x128xbf16>
    %66 = vector.shape_cast %65 : vector<1x384x128xbf16> to vector<384x128xbf16>
    %cst_63 = arith.constant dense<0.000000e+00> : vector<256x128xf32>
    %67 = tpu.matmul %64, %66, %cst_63 {dimension_numbers = #tpu.dot_dimension_numbers<[1], [0], [0], [1], [0, 0, 1, 1], [], []>} : vector<256x384xbf16>, vector<384x128xbf16>, vector<256x128xf32> -> vector<256x128xf32>
    %68 = arith.addf %62, %67 : vector<256x128xf32>
    %69 = vector.extract_strided_slice %57 {offsets = [2, 0, 0], sizes = [16, 16, 384], strides = [1, 1, 1]} : vector<18x16x384xbf16> to vector<16x16x384xbf16>
    %70 = vector.shape_cast %69 : vector<16x16x384xbf16> to vector<256x384xbf16>
    %c2_64 = arith.constant 2 : index
    %c0_65 = arith.constant 0 : index
    %c0_66 = arith.constant 0 : index
    %71 = vector.load %arg5[%c2_64, %c0_65, %c0_66] : memref<3x384x128xbf16, #tpu.memory_space<vmem>>, vector<1x384x128xbf16>
    %72 = vector.shape_cast %71 : vector<1x384x128xbf16> to vector<384x128xbf16>
    %cst_67 = arith.constant dense<0.000000e+00> : vector<256x128xf32>
    %73 = tpu.matmul %70, %72, %cst_67 {dimension_numbers = #tpu.dot_dimension_numbers<[1], [0], [0], [1], [0, 0, 1, 1], [], []>} : vector<256x384xbf16>, vector<384x128xbf16>, vector<256x128xf32> -> vector<256x128xf32>
    %74 = arith.addf %68, %73 : vector<256x128xf32>
    %75 = vector.shape_cast %74 : vector<256x128xf32> to vector<16x16x128xf32>
    %c0_68 = arith.constant 0 : index
    %c0_69 = arith.constant 0 : index
    %76 = vector.load %arg6[%c0_68, %c0_69] : memref<1x128xf32, #tpu.memory_space<vmem>>, vector<1x128xf32>
    %77 = vector.shape_cast %76 : vector<1x128xf32> to vector<128xf32>
    %78 = vector.shape_cast %77 : vector<128xf32> to vector<1x1x128xf32>
    %79 = vector.broadcast %78 : vector<1x1x128xf32> to vector<16x16x128xf32>
    %80 = arith.mulf %75, %79 : vector<16x16x128xf32>
    %c0_70 = arith.constant 0 : index
    %c0_71 = arith.constant 0 : index
    %81 = vector.load %arg7[%c0_70, %c0_71] : memref<1x128xf32, #tpu.memory_space<vmem>>, vector<1x128xf32>
    %82 = vector.shape_cast %81 : vector<1x128xf32> to vector<128xf32>
    %83 = vector.shape_cast %82 : vector<128xf32> to vector<1x1x128xf32>
    %84 = vector.broadcast %83 : vector<1x1x128xf32> to vector<16x16x128xf32>
    %85 = arith.addf %80, %84 : vector<16x16x128xf32>
    %86 = arith.addf %85, %1 : vector<16x16x128xf32>
    %cst_72 = arith.constant 0.000000e+00 : f32
    %87 = vector.broadcast %cst_72 : f32 to vector<16x16x128xf32>
    %88 = arith.maximumf %86, %87 : vector<16x16x128xf32>
    %c0_73 = arith.constant 0 : index
    %c0_74 = arith.constant 0 : index
    %c0_75 = arith.constant 0 : index
    %c0_76 = arith.constant 0 : index
    %89 = vector.load %arg8[%c0_73, %c0_74, %c0_75, %c0_76] : memref<1x16x16x128xf32, #tpu.memory_space<vmem>>, vector<1x16x16x128xf32>
    %90 = vector.shape_cast %89 : vector<1x16x16x128xf32> to vector<16x16x128xf32>
    %91 = vector.shape_cast %88 : vector<16x16x128xf32> to vector<1x16x16x128xf32>
    tpu.vector_store %arg8[%c0_73, %c0_74, %c0_75, %c0_76], %91 {strides = array<i32>} : memref<1x16x16x128xf32, #tpu.memory_space<vmem>>, vector<1x16x16x128xf32>,
    return
  }
  func.func @transform_0(%arg0: i32) -> (i32, i32, i32, i32) {
    %c0_i32 = arith.constant 0 : i32
    %c0_i32_0 = arith.constant 0 : i32
    %c0_i32_1 = arith.constant 0 : i32
    %c0_i32_2 = arith.constant 0 : i32
    return %arg0, %c0_i32, %c0_i32_0, %c0_i32_1 : i32, i32, i32, i32
  }
  func.func @transform_1(%arg0: i32) -> (i32, i32, i32) {
    %c0_i32 = arith.constant 0 : i32
    %c0_i32_0 = arith.constant 0 : i32
    %c0_i32_1 = arith.constant 0 : i32
    %c0_i32_2 = arith.constant 0 : i32
    return %c0_i32, %c0_i32_0, %c0_i32_1 : i32, i32, i32
  }
  func.func @transform_2(%arg0: i32) -> (i32, i32) {
    %c0_i32 = arith.constant 0 : i32
    %c0_i32_0 = arith.constant 0 : i32
    %c0_i32_1 = arith.constant 0 : i32
    return %c0_i32, %c0_i32_0 : i32, i32
  }
  func.func @transform_3(%arg0: i32) -> (i32, i32) {
    %c0_i32 = arith.constant 0 : i32
    %c0_i32_0 = arith.constant 0 : i32
    %c0_i32_1 = arith.constant 0 : i32
    return %c0_i32, %c0_i32_0 : i32, i32
  }
  func.func @transform_4(%arg0: i32) -> (i32, i32, i32) {
    %c0_i32 = arith.constant 0 : i32
    %c0_i32_0 = arith.constant 0 : i32
    %c0_i32_1 = arith.constant 0 : i32
    %c0_i32_2 = arith.constant 0 : i32
    return %c0_i32, %c0_i32_0, %c0_i32_1 : i32, i32, i32
  }
  func.func @transform_5(%arg0: i32) -> (i32, i32) {
    %c0_i32 = arith.constant 0 : i32
    %c0_i32_0 = arith.constant 0 : i32
    %c0_i32_1 = arith.constant 0 : i32
    return %c0_i32, %c0_i32_0 : i32, i32
  }
  func.func @transform_6(%arg0: i32) -> (i32, i32) {
    %c0_i32 = arith.constant 0 : i32
    %c0_i32_0 = arith.constant 0 : i32
    %c0_i32_1 = arith.constant 0 : i32
    return %c0_i32, %c0_i32_0 : i32, i32
  }
  func.func @transform_7(%arg0: i32) -> (i32, i32, i32, i32) {
    %c0_i32 = arith.constant 0 : i32
    %c0_i32_0 = arith.constant 0 : i32
    %c0_i32_1 = arith.constant 0 : i32
    %c0_i32_2 = arith.constant 0 : i32
    return %arg0, %c0_i32, %c0_i32_0, %c0_i32_1 : i32, i32, i32, i32
  }
}

</mosaic_0001>

<bundles_post_ra>
// kernel: tpu_custom_call.1
= control target key start
LH: loop header
LB: loop body
LE: loop exit
PB: predicated region body
PF: predicated region fallthrough
CT: control target
= control target key end

     0   :  { %s10627_s0 = inlined_call_operand.hbm [shape: f32[2,16,16,128], index: 0, kind: input, shape index: {}]   ;;  %s10628_s1 = inlined_call_operand.hbm [shape: bf16[3,384,128], index: 1, kind: input, shape index: {}]   ;;  %s10629_s2 = inlined_call_operand.vmem [shape: f32[1,128], index: 2, kind: input, shape index: {}]   ;;  %s10630_s3 = inlined_call_operand.vmem [shape: f32[1,128], index: 3, kind: input, shape index: {}]   ;;  %s10631_s4 = inlined_call_operand.hbm [shape: bf16[3,384,128], index: 4, kind: input, shape index: {}]   ;;  %s10632_s5 = inlined_call_operand.vmem [shape: f32[1,128], index: 5, kind: input, shape index: {}]   ;;  %s10633_s6 = inlined_call_operand.vmem [shape: f32[1,128], index: 6, kind: input, shape index: {}]   ;;  %s10634_s7 = inlined_call_operand.hbm [shape: f32[2,16,16,128], index: 7, kind: output, shape index: {}]  }
   0x1   :  { %10643 = sst [smem:[#allocation22_spill]] %s10628_s1 }
   0x2   :  { %12 = vsyncpa [#allocation5], 0 }
   0x3   :  { %14 = vsyncpa [#allocation5 + $0x1], 0 }
   0x4   :  { %15 = vsyncpa [#allocation8], 0 }
   0x5   :  { %16 = vsyncpa [#allocation6], 0 }
   0x6   :  { %18 = vsyncpa [#allocation6 + $0x1], 0  ;;  %s8242_s24 = smov 0   ;;  %s8244_s25 = smov 0  }
   0x7   :  { %s8246_s26 = smov 0   ;;  %s8248_s27 = smov 0  }
   0x8 LB: > { %s8263_s28 = sadd.s32 4294967295, %s8189_s27   ;;  %s6220_s29 = sadd.s32 4294967294, %s8189_s27   ;;  %s8189_s27 = sphi %s8248_s27, %s10704_s27   ;;  %s8185_s26 = sphi %s8246_s26, %s10703_s26   ;;  %s8181_s25 = sphi %s8244_s25, %s10702_s25   ;;  %s8177_s24 = sphi %s8242_s24, %s10701_s24  }
   0x9   : > { %p44_p0 = scmp.ne.s32.totalorder %s8181_s25, %s8177_s24  ;;  %p10635_p1 = scmp.eq.s32.totalorder %s8263_s28, 0 }
   0xa   : > { %p200_p3 = scmp.eq.s32.totalorder %s6220_s29, 1  ;;  %p6221_p5 = scmp.ge.s32.totalorder %s8189_s27, 1 }
   0xb   : > { %p8272_p4 = por %p10635_p1, %p44_p0  ;;  %p207_p7 = scmp.lt.s32.totalorder %s8189_s27, 3 }
   0xc   : > { %p8277_p6 = por %p200_p3, %p44_p0  ;;  %s8191_s10 = smov [#allocation7]  }
   0xd   : > { %s10644_s30 = scalar_select %p8272_p4, 1, 0 }
   0xe   : > { %s10645_s8 = scalar_select %p8277_p6, 1, 0 }
   0xf   : > { %p8282_p8 = pnand %p6221_p5, %p207_p7  ;;  %s219_s11 = sshll.u32 %s8191_s10, 4  ;;  %s220_s11 = int_to_ptr.vmem [resolvable:$true] %s219_s11 }
  0x10   : > { %s8192_s13 = smov [#allocation9]   ;;  %s8052_s15 = scalar_lea.vmem %s220_s11, 9216 }
  0x11   : > { %s10646_s9 = scalar_select %p8282_p8, 1, 0 }
  0x12   : > { %p7704_p9 = pneg %p8282_p8  ;;  %s238_s14 = sshll.u32 %s8192_s13, 4  ;;  %s239_s14 = int_to_ptr.vmem [resolvable:$true] %s238_s14 }
  0x13   : > { %p8053_p13 = scmp.ne.s32.totalorder %s220_s11, %s8052_s15  ;;  %p8060_p5 = scmp.lt.s32.totalorder %s220_s11, %s220_s11 }
  0x14   : > { %p8291_p11 = pnand %p7704_p9, %p10635_p1  ;;  %p8061_p7 = scmp.lt.s32.totalorder %s8052_s15, %s8052_s15 }
  0x16   : > { %p8043_p12 = pneg %p8291_p11  ;;  %p8062_p10 = por %p8061_p7, %p8060_p5 }
  0x18   : > { %p8055_p0 = pnand %p8053_p13, %p8043_p12 }
  0x1a   : > { %p8056_p3 = pneg %p8055_p0 }
  0x1c   : > { %p8063_p9 = pnand %p8062_p10, %p8056_p3 }
  0x1e   : > { %8066 = shalt.err (!%p8063_p9)
}
  0x1f   : > { %s8193_s16 = smov 64   ;;  %s8194_s17 = smov 4  }
  0x20   : > { %s10648_s1 = sld [smem:[#allocation22_spill]]  ;;  %s8078_s20 = scalar_lea.vmem %s239_s14, 9216 }
  0x21   : > { %p8079_p1 = scmp.ne.s32.totalorder %s239_s14, %s8078_s20  ;;  %p8086_p2 = scmp.lt.s32.totalorder %s239_s14, %s239_s14 }
  0x22   : > { %p8087_p6 = scmp.lt.s32.totalorder %s8078_s20, %s8078_s20 }
  0x23   : > { %p8081_p13 = pnand %p8079_p1, %p8043_p12 }
  0x24   : > { %p8088_p5 = por %p8087_p6, %p8086_p2 }
  0x25   : > { %p8082_p0 = pneg %p8081_p13 }
  0x26   : > { %7707 = dma.hbm_to_vmem [thread:$0]  (!%p8291_p11), %s10648_s1, 9216, %s220_s11, [#allocation8], %s8193_s16, %s8193_s16, %s8194_s17  }
  0x27   : > { %p8089_p10 = pnand %p8088_p5, %p8082_p0 }
  0x29   : > { %8092 = shalt.err (!%p8089_p10)
}
  0x2a   : > { %7710 = dma.hbm_to_vmem [thread:$0]  (!%p8291_p11), %s10631_s4, 9216, %s239_s14, [#allocation8], %s8193_s16, %s8193_s16, %s8194_s17  }
  0x2b   : > { %s8314_s23 = sadd.s32 1, %s8189_s27   ;;  %s31_s29 = sadd.s32 1, %s8185_s26 }
  0x2c   : > { %s28_s10 = ssub.s32 %s8189_s27, %s8314_s23  ;;  %p38_p1 = scmp.ne.s32.totalorder %s8185_s26, %s8181_s25 }
  0x2d   : > { %p29_p2 = scmp.eq.s32.totalorder %s28_s10, 0  ;;  %p39_p6 = scmp.eq.s32.totalorder %s8189_s27, 0 }
  0x2e   : > { %p10649_p12 = scmp.eq.s32.totalorder %s8263_s28, 1  ;;  %p7721_p7 = scmp.lt.s32.totalorder %s8189_s27, 2 }
  0x2f   : > { %s8330_s12 = scalar_select %p29_p2, %s8185_s26, %s31_s29  }
  0x30   : > { %p8324_p3 = por %p10649_p12, %p38_p1  ;;  %p40_p9 = por %p39_p6, %p38_p1 }
  0x31   : > { %s258_s13 = sand.u32 1, %s8185_s26   ;;  %s6522_s14 = sshll.u32 %s8189_s27, 12 }
  0x32   : > { %s10650_s11 = scalar_select %p8324_p3, 1, 0 }
  0x33   : > { %s6225_s15 = sshll.u32 %s258_s13, 8  ;;  %s8337_s18 = scalar_lea.hbm %s10627_s0, %s6522_s14 }
  0x34   : > { %s262_s19 = scalar_lea.vmem [#allocation4], %s6225_s15  ;;  %p8341_p11 = pnand %p7721_p7, %p40_p9 }
  0x35   : > { %s269_s20 = sshll.u32 %s262_s19, 4  ;;  %s8345_s22 = scalar_lea.sflag [#allocation5], %s258_s13  ;;  %s8339_s20 = int_to_ptr.vmem [resolvable:$true] %s269_s20 }
  0x36   : > { %s8093_s29 = scalar_lea.hbm %s8337_s18, 4096  ;;  %p8095_p0 = pneg %p8341_p11 }
  0x37   : > { %p8094_p13 = scmp.ne.s32.totalorder %s8337_s18, %s8093_s29  ;;  %s8098_s15 = scalar_lea.hbm %s10627_s0, 8192 }
  0x38   : > { %p8099_p1 = scmp.lt.s32.totalorder %s8337_s18, %s10627_s0  ;;  %p8100_p2 = scmp.lt.s32.totalorder %s8098_s15, %s8093_s29 }
  0x39   : > { %p8096_p5 = pnand %p8095_p0, %p8094_p13 }
  0x3a   : > { %p8101_p6 = por %p8100_p2, %p8099_p1 }
  0x3b   : > { %p8097_p10 = pneg %p8096_p5 }
  0x3d   : > { %p8102_p12 = pnand %p8101_p6, %p8097_p10 }
  0x3f   : > { %8105 = shalt.err (!%p8102_p12)
}
  0x40   : > { %s8106_s13 = scalar_lea.vmem %s8339_s20, 4096  ;;  %s8195_s19 = smov [#allocation4]  }
  0x41   : > { %p8107_p7 = scmp.ne.s32.totalorder %s8339_s20, %s8106_s13  ;;  %s8111_s1 = sshll.u32 %s8195_s19, 4  ;;  %s8112_s1 = int_to_ptr.vmem [resolvable:$false] %s8111_s1 }
  0x42   : > { %s8113_s10 = scalar_lea.vmem %s8112_s1, 8192  ;;  %p8114_p5 = scmp.lt.s32.totalorder %s8339_s20, %s8112_s1 }
  0x43   : > { %p8109_p9 = pnand %p8107_p7, %p8095_p0  ;;  %p8115_p3 = scmp.lt.s32.totalorder %s8113_s10, %s8106_s13 }
  0x45   : > { %p8110_p13 = pneg %p8109_p9  ;;  %p8116_p4 = por %p8115_p3, %p8114_p5 }
  0x47   : > { %p8117_p8 = pnand %p8116_p4, %p8110_p13 }
  0x49   : > { %8120 = shalt.err (!%p8117_p8)
}
  0x4a   : > { %s8196_s29 = smov 128   ;;  %s8197_s14 = smov 8  }
  0x4b   : > { %7714 = dma.hbm_to_vmem [thread:$0]  (!%p8341_p11), %s8337_s18, 4096, %s8339_s20, %s8345_s22, %s8196_s29, %s8196_s29, %s8197_s14  }
  0x4c   : > { %p10652_p0 = scmp.ne.s32.totalorder %s10646_s9, 0 }
  0x4e   : > { %281 = sbr.rel (%p10652_p0) target bundleno = 1148 (0x47c), region = 48 }
  0x53   : > { %s8369_s15 = sand.u32 1, %s8181_s25   ;;  %p10653_p4 = scmp.ne.s32.totalorder %s10644_s30, 0 }
  0x54   : > { %s6229_s1 = sshll.u32 %s8369_s15, 8  ;;  %s284_s16 = scalar_lea.sflag [#allocation5], %s8369_s15 }
  0x55   : > { %s8375_s17 = scalar_lea.vmem [#allocation4], %s6229_s1 }
  0x56   : > { %8164 = dma.done.wait (%p10653_p4), %s284_s16, 4096  }
  0x57   : > { %8166 = vsyncadd (%p10653_p4), %s284_s16, 4294963200  ;;  %p10654_p8 = scmp.eq.s32.totalorder %s8263_s28, 0 }
  0x59   : > { %8168 = dma.done.wait (%p10654_p8), [#allocation8], 18432   ;;  %p10655_p3 = pmov %p10654_p8 }
  0x5a   : > { %v7766_v0 = vld [vmem:[#allocation7 + $0x138] sm:$0xff]   ;;  %v7769_v3 = vld [vmem:[#allocation7 + $0x130] sm:$0xff]   ;;  %vm368_vm0 = vsmask.f32 256  ;;  %v7772_v6 = vld [vmem:[#allocation7 + $0x128] sm:$0xff]   ;;  %v8198_v10 = vmov 0  }
  0x5b   : > { %8170 = vsyncadd (%p10655_p3), [#allocation8], 4294948864  ;;  %v7767_v1 = vld [vmem:[#allocation7 + $0x178] sm:$0xff]   ;;  %6588 = vmatprep.subr.bf16.mxu0 %v7766_v0  ;;  %v7770_v4 = vld [vmem:[#allocation7 + $0x170] sm:$0xff]   ;;  %359 = vst [vmem:[#allocation2] sm:$0xf] %v8198_v10 }
  0x5c   : > { %v7768_v2 = vld [vmem:[#allocation7 + $0xf8] sm:$0xff]   ;;  %7404 = vmatprep.subr.bf16.mxu1 %v7767_v1  ;;  %v7771_v5 = vld [vmem:[#allocation7 + $0xf0] sm:$0xff]   ;;  %v7773_v7 = vld [vmem:[#allocation7 + $0x168] sm:$0xff]   ;;  %360 = vst [vmem:[#allocation2 + $0x4] sm:$0xf] %v8198_v10  ;;  %vm367_vm1 = vcmask 1040384  }
  0x5d   : > { %6589 = vmatpush3.bf16.msra.mxu0 %v7768_v2  ;;  %7405 = vmatpush3.bf16.msra.mxu1 %v7767_v1  ;;  %v7774_v8 = vld [vmem:[#allocation7 + $0xe8] sm:$0xff]   ;;  %v7775_v9 = vld [vmem:[#allocation7 + $0x120] sm:$0xff]   ;;  %361 = vst [vmem:[#allocation2 + $0x8] sm:$0x1] %v8198_v10  ;;  %363 = vst [vmem:[#allocation2 + $0xcc] sm:$0xf] %v8198_v10 }
  0x5e   : > { %6590 = vmatprep.subr.bf16.mxu0 %v7769_v3  ;;  %7406 = vmatprep.subr.bf16.mxu1 %v7770_v4  ;;  %364 = vst [vmem:[#allocation2 + $0xd0] sm:$0xf] %v8198_v10  ;;  %365 = vst [vmem:[#allocation2 + $0xd4] sm:$0x1] %v8198_v10  ;;  %v7776_v11 = vld [vmem:[#allocation7 + $0x160] sm:$0xff]   ;;  %v7778_v13 = vld [vmem:[#allocation7 + $0x118] sm:$0xff]  }
  0x5f   : > { %3210 = vst [vmem:[#allocation3] sm:$0xf] %v8198_v10  ;;  %3211 = vst [vmem:[#allocation3 + $0x4] sm:$0xf] %v8198_v10  ;;  %v7777_v12 = vld [vmem:[#allocation7 + $0xe0] sm:$0xff]   ;;  %v7779_v14 = vld [vmem:[#allocation7 + $0x158] sm:$0xff]  }
  0x60   : > { %3212 = vst [vmem:[#allocation3 + $0x8] sm:$0x1] %v8198_v10  ;;  %3214 = vst [vmem:[#allocation3 + $0xcc] sm:$0xf] %v8198_v10  ;;  %vm418_vm3 = vsmask.f32 7938 }
  0x61   : > { %6591 = vmatpush3.bf16.msra.mxu0 %v7771_v5  ;;  %7407 = vmatpush3.bf16.msra.mxu1 %v7770_v4  ;;  %3215 = vst [vmem:[#allocation3 + $0xd0] sm:$0xf] %v8198_v10  ;;  %3216 = vst [vmem:[#allocation3 + $0xd4] sm:$0x1] %v8198_v10  ;;  %v7780_v16 = vld [vmem:[#allocation7 + $0xd8] sm:$0xff]   ;;  %v7781_v17 = vld [vmem:[#allocation7 + $0x110] sm:$0xff]  }
  0x62   : > { %6592 = vmatprep.subr.bf16.mxu0 %v7772_v6  ;;  %7408 = vmatprep.subr.bf16.mxu1 %v7773_v7  ;;  %vm8387_vm2 = vmand %vm367_vm1, %vm368_vm0  ;;  %v7782_v18 = vld [vmem:[#allocation7 + $0x150] sm:$0xff]   ;;  %v7784_v21 = vld [vmem:[#allocation7 + $0x108] sm:$0xff]   ;;  %vm564_vm5 = vsmask.f32 4368  ;;  %vm886_vm6 = vcmask 1043456   ;;  %v10660_v50 = vmov 0 }
  0x63   : > { %vm8393_vm4 = vmand %vm367_vm1, %vm418_vm3  ;;  %v7783_v20 = vld [vmem:[#allocation7 + $0xd0] sm:$0xff]   ;;  %v7785_v22 = vld [vmem:[#allocation7 + $0x148] sm:$0xff]   ;;  %vm1216_vm9 = vsmask.f32 7424  ;;  %vm1451_vm10 = vcmask 1046528   ;;  %s10394_s30 = scalar_lea.vmem [#allocation10], %s6229_s1 }
  0x64   : > { %v7786_v23 = vld [vmem:[#allocation7 + $0xc8] sm:$0xff]   ;;  %v7787_v24 = vld [vmem:[#allocation7 + $0x100] sm:$0xff]   ;;  %v370_v28 = vld [vmem:[#allocation2 + $0xc] sm:$0x1]  ;;  %s6587_s1 = sshll.u32 %s8263_s28, 12  ;;  %s6128_s9 = sshll.u32 %s10394_s30, 4  ;;  %s10583_s9 = int_to_ptr.vmem [resolvable:$true] %s6128_s9 }
  0x65   : > { %6593 = vmatpush3.bf16.msra.mxu0 %v7774_v8  ;;  %7409 = vmatpush3.bf16.msra.mxu1 %v7773_v7  ;;  %v7788_v25 = vld [vmem:[#allocation7 + $0x140] sm:$0xff]   ;;  %v328_v27 = vld [vmem:[%s8375_s17 + $0x8] sm:$0xff]  ;;  %v371_v29 = vsel %vm8387_vm2, 0, %v370_v28  ;;  %v329_v33 = vld [vmem:[%s8375_s17 + $0x10] sm:$0xff]  ;;  %s10581_s21 = scalar_lea.hbm %s10634_s7, %s6587_s1  ;;  %s6115_s22 = scalar_lea.sflag [#allocation6], %s8369_s15 }
  0x66   : > { %6594 = vmatprep.subr.bf16.mxu0 %v7775_v9  ;;  %7410 = vmatprep.subr.bf16.mxu1 %v7776_v11  ;;  %v327_v26 = vld [vmem:[%s8375_s17] sm:$0xff]  ;;  %v6524_v32 = vpack.c.bf16 %v328_v27, %v328_v27  ;;  %v330_v34 = vld [vmem:[%s8375_s17 + $0x18] sm:$0xff]  ;;  %372 = vst [vmem:[#allocation2 + $0xc] sm:$0x1] %v371_v29  ;;  %v373_v37 = vld [vmem:[#allocation2 + $0x18] sm:$0x1]  ;;  %v6525_v39 = vpack.c.bf16 %v329_v33, %v329_v33 }
  0x67   : > { %v420_v30 = vld [vmem:[#allocation2 + $0x14] sm:$0x1]  ;;  %v6523_v31 = vpack.c.bf16 %v327_v26, %v327_v26  ;;  %v423_v38 = vld [vmem:[#allocation2 + $0x20] sm:$0x1]  ;;  %v6526_v40 = vpack.c.bf16 %v330_v34, %v330_v34  ;;  %v8405_v45 = vld [vmem:[#allocation7 + $0xb8] sm:$0xff]   ;;  %v374_v46 = vsel %vm8387_vm2, 0, %v373_v37 }
  0x68   : > { %v7789_v35 = vld [vmem:[#allocation7 + $0xc0] sm:$0xff]   ;;  %v421_v36 = vsel %vm8393_vm4, 0, %v420_v30  ;;  %v575_v43 = vshrl.u32 %v6524_v32, 16  ;;  %v578_v44 = vshll.u32 %v6524_v32, 16  ;;  %v424_v47 = vsel %vm8393_vm4, 0, %v423_v38  ;;  %vm8413_vm7 = vmor %vm368_vm0, %vm564_vm5  ;;  %v7795_v56 = vld [vmem:[#allocation7 + $0x78] sm:$0xff]  }
  0x69   : > { %6595 = vmatpush3.bf16.msra.mxu0 %v7777_v12  ;;  %7411 = vmatpush3.bf16.msra.mxu1 %v7776_v11  ;;  %422 = vst [vmem:[#allocation2 + $0x14] sm:$0x1] %v421_v36  ;;  %v567_v41 = vshrl.u32 %v6523_v31, 16  ;;  %v570_v42 = vshll.u32 %v6523_v31, 16  ;;  %v584_v48 = vshrl.u32 %v6525_v39, 16  ;;  %v587_v49 = vshll.u32 %v6525_v39, 16  ;;  %vm8419_vm8 = vmand %vm886_vm6, %vm418_vm3 }
  0x6a   : > { %6596 = vmatprep.subr.bf16.mxu0 %v7778_v13  ;;  %7412 = vmatprep.subr.bf16.mxu1 %v7779_v14  ;;  %v10661_v50 = vsel %vm8413_vm7, 4294967295, %v10660_v50  ;;  %v577_v52 = vrot.slane %v575_v43, 7  ;;  %375 = vst [vmem:[#allocation2 + $0x18] sm:$0x1] %v374_v46  ;;  %425 = vst [vmem:[#allocation2 + $0x20] sm:$0x1] %v424_v47 }
  0x6b   : > { %10662 = vst [vmem:[#allocation14_spill] sm:$0xff] %v10661_v50  ;;  %v569_v51 = vrot.slane %v567_v41, 7  ;;  %v592_v53 = vshrl.u32 %v6526_v40, 16  ;;  %v595_v54 = vshll.u32 %v6526_v40, 16  ;;  %v586_v55 = vrot.slane %v584_v48, 7  ;;  %v331_v62 = vld [vmem:[%s8375_s17 + $0x20] sm:$0xff] }
  0x6c   : > { %v580_v59 = vor.u32 %v578_v44, %v577_v52  ;;  %v582_v60 = vrot.slane %v577_v52, 4  ;;  %v332_v2 = vld [vmem:[%s8375_s17 + $0x28] sm:$0xff]  ;;  %v376_v3 = vld [vmem:[#allocation2 + $0x24] sm:$0x1]  ;;  %v6527_v4 = vpack.c.bf16 %v331_v62, %v331_v62  ;;  %v426_v9 = vld [vmem:[#allocation2 + $0x2c] sm:$0x1] }
  0x6d   : > { %6597 = vmatpush3.bf16.msra.mxu0 %v7780_v16  ;;  %7413 = vmatpush3.bf16.msra.mxu1 %v7779_v14  ;;  %v572_v57 = vor.u32 %v570_v42, %v569_v51  ;;  %v573_v58 = vrot.slane %v569_v51, 4  ;;  %v589_v63 = vor.u32 %v587_v49, %v586_v55  ;;  %v590_v0 = vrot.slane %v586_v55, 4  ;;  %v333_v5 = vld [vmem:[%s8375_s17 + $0x30] sm:$0xff]  ;;  %v888_v7 = vld [vmem:[#allocation2 + $0xc] sm:$0xf]  ;;  %v335_v43 = vld [vmem:[%s8375_s17 + $0x40] sm:$0xff] }
  0x6e   : > { %6598 = vmatprep.subr.bf16.mxu0 %v7781_v17  ;;  %7414 = vmatprep.subr.bf16.mxu1 %v7782_v18  ;;  %v594_v1 = vrot.slane %v592_v53, 7  ;;  %v377_v8 = vsel %vm8387_vm2, 0, %v376_v3  ;;  %v6528_v10 = vpack.c.bf16 %v332_v2, %v332_v2  ;;  %v334_v11 = vld [vmem:[%s8375_s17 + $0x38] sm:$0xff]  ;;  %v8432_v12 = vpack.c.bf16 %v333_v5, %v333_v5  ;;  %v382_v48 = vld [vmem:[#allocation2 + $0x3c] sm:$0x1]  ;;  %s8121_s13 = scalar_lea.vmem %s10583_s9, 4096 }
  0x6f   : > { %v581_v6 = vsel %vm8413_vm7, %v573_v58, %v580_v59  ;;  %v889_v13 = vsel %vm8419_vm8, %v572_v57, %v888_v7  ;;  %378 = vst [vmem:[#allocation2 + $0x24] sm:$0x1] %v377_v8  ;;  %v6530_v31 = vpack.c.bf16 %v334_v11, %v334_v11  ;;  %v383_v53 = vsel %vm8387_vm2, 0, %v382_v48  ;;  %v7796_v11 = vld [vmem:[#allocation7 + $0x38] sm:$0xff]   ;;  %p8122_p11 = scmp.ne.s32.totalorder %s10583_s9, %s8121_s13  ;;  %p10698_p10 = scmp.ne.s32.totalorder %s10650_s11, 0 }
  0x70   : > { %891 = vst [vmem:[#allocation2 + $0x10] sm:$0xf] %v581_v6  ;;  %v892_v14 = vld [vmem:[#allocation2 + $0x14] sm:$0x1]  ;;  %v597_v16 = vor.u32 %v595_v54, %v594_v1  ;;  %v599_v17 = vrot.slane %v594_v1, 4  ;;  %v612_v29 = vshll.u32 %v6528_v10, 16  ;;  %v6531_v59 = vpack.c.bf16 %v335_v43, %v335_v43 }
  0x71   : > { %6599 = vmatpush3.bf16.msra.mxu0 %v7783_v20  ;;  %7415 = vmatpush3.bf16.msra.mxu1 %v7782_v18  ;;  %v427_v18 = vsel %vm8393_vm4, 0, %v426_v9  ;;  %v379_v20 = vld [vmem:[#allocation2 + $0x30] sm:$0x1]  ;;  %890 = vst [vmem:[#allocation2 + $0xc] sm:$0xf] %v889_v13  ;;  %v618_v37 = vshrl.u32 %v8432_v12, 16  ;;  %p8123_p1 = pnand %p8122_p11, %p10698_p10 }
  0x72   : > { %6600 = vmatprep.subr.bf16.mxu0 %v7784_v21  ;;  %7416 = vmatprep.subr.bf16.mxu1 %v7785_v22  ;;  %v893_v21 = vsel %vm8387_vm2, %v582_v60, %v892_v14  ;;  %428 = vst [vmem:[#allocation2 + $0x2c] sm:$0x1] %v427_v18  ;;  %v598_v26 = vsel %vm8413_vm7, %v590_v0, %v597_v16  ;;  %v895_v27 = vld [vmem:[#allocation2 + $0x18] sm:$0xf]  ;;  %v899_v28 = vld [vmem:[#allocation2 + $0x20] sm:$0x1] }
  0x73   : > { %894 = vst [vmem:[#allocation2 + $0x14] sm:$0x1] %v893_v21  ;;  %v380_v30 = vsel %vm8387_vm2, 0, %v379_v20  ;;  %v896_v32 = vsel %vm8419_vm8, %v589_v63, %v895_v27  ;;  %898 = vst [vmem:[#allocation2 + $0x1c] sm:$0xf] %v598_v26  ;;  %v900_v33 = vsel %vm8387_vm2, %v599_v17, %v899_v28  ;;  %v626_v38 = vshrl.u32 %v6530_v31, 16  ;;  %p8124_p2 = pneg %p8123_p1 }
  0x74   : > { %381 = vst [vmem:[#allocation2 + $0x30] sm:$0x1] %v380_v30  ;;  %897 = vst [vmem:[#allocation2 + $0x18] sm:$0xf] %v896_v32  ;;  %v620_v44 = vrot.slane %v618_v37, 7  ;;  %v629_v47 = vshll.u32 %v6530_v31, 16 }
  0x75   : > { %6601 = vmatpush3.bf16.msra.mxu0 %v7786_v23  ;;  %7417 = vmatpush3.bf16.msra.mxu1 %v7785_v22  ;;  %v601_v22 = vshrl.u32 %v6527_v4, 16  ;;  %v604_v23 = vshll.u32 %v6527_v4, 16  ;;  %901 = vst [vmem:[#allocation2 + $0x20] sm:$0x1] %v900_v33  ;;  %v628_v46 = vrot.slane %v626_v38, 7  ;;  %v621_v52 = vshll.u32 %v8432_v12, 16 }
  0x76   : > { %6602 = vmatprep.subr.bf16.mxu0 %v7787_v24  ;;  %7418 = vmatprep.subr.bf16.mxu1 %v7788_v25  ;;  %v609_v24 = vshrl.u32 %v6528_v10, 16  ;;  %v902_v51 = vld [vmem:[#allocation2 + $0x24] sm:$0xf]  ;;  %v624_v57 = vrot.slane %v620_v44, 4  ;;  %384 = vst [vmem:[#allocation2 + $0x3c] sm:$0x1] %v383_v53 }
  0x77   : > { %v603_v34 = vrot.slane %v601_v22, 7  ;;  %v631_v58 = vor.u32 %v629_v47, %v628_v46  ;;  %v633_v63 = vrot.slane %v628_v46, 4  ;;  %v336_v4 = vld [vmem:[%s8375_s17 + $0x48] sm:$0xff]  ;;  %v623_v7 = vor.u32 %v621_v52, %v620_v44  ;;  %v7801_v18 = vld [vmem:[#allocation7 + $0x70] sm:$0xff]   ;;  %v338_v28 = vld [vmem:[%s8375_s17 + $0x58] sm:$0xff]  ;;  %s8199_s28 = smov [#allocation10]  }
  0x78   : > { %v7790_v54 = vld [vmem:[#allocation2 + $0xc] sm:$0xff]   ;;  %v635_v12 = vshrl.u32 %v6531_v59, 16  ;;  %v8469_v20 = vpack.c.bf16 %v336_v4, %v336_v4  ;;  %v638_v21 = vshll.u32 %v6531_v59, 16  ;;  %v337_v22 = vld [vmem:[%s8375_s17 + $0x50] sm:$0xff] }
  0x79   : > { %6603 = vmatpush3.bf16.msra.mxu0 %v7789_v35  ;;  %7419 = vmatpush3.bf16.msra.mxu1 %v7788_v25  ;;  %v429_v25 = vld [vmem:[#allocation2 + $0x38] sm:$0x1]  ;;  %v611_v35 = vrot.slane %v609_v24, 7  ;;  %v606_v39 = vor.u32 %v604_v23, %v603_v34  ;;  %v607_v40 = vrot.slane %v603_v34, 4  ;;  %v1230_v0 = vshrl.u32 %v7790_v54, 16  ;;  %v7802_v37 = vld [vmem:[#allocation7 + $0x30] sm:$0xff]  }
  0x7a   : > { %7452 = vmatprep.subr.bf16.mxu0 %v8405_v45  ;;  %6724 = vmatprep.subr.bf16.mxu1 %v7795_v56  ;;  %v430_v36 = vsel %vm8393_vm4, 0, %v429_v25  ;;  %v906_v56 = vld [vmem:[#allocation2 + $0x2c] sm:$0x1]  ;;  %v7791_v60 = vld [vmem:[#allocation2 + $0x14] ss:$0 sps:$4 sm:$0x11]   ;;  %v632_v3 = vsel %vm8413_vm7, %v624_v57, %v631_v58 }
  0x7b   : > { %v614_v41 = vor.u32 %v612_v29, %v611_v35  ;;  %v616_v42 = vrot.slane %v611_v35, 4  ;;  %431 = vst [vmem:[#allocation2 + $0x38] sm:$0x1] %v430_v36  ;;  %v903_v55 = vsel %vm8419_vm8, %v606_v39, %v902_v51  ;;  %v1232_v1 = vshll.u32 %v7790_v54, 16  ;;  %912 = vst [vmem:[#allocation2 + $0x34] sm:$0xf] %v632_v3 }
  0x7c   : > { %904 = vst [vmem:[#allocation2 + $0x24] sm:$0xf] %v903_v55  ;;  %v1455_v2 = vrot.slane %v7790_v54, 1  ;;  %v1237_v5 = vshll.u32 %v7791_v60, 16  ;;  %v1456_v6 = vrot.slane %v7791_v60, 1  ;;  %v8464_v9 = vld [vmem:[#allocation2 + $0x18] sm:$0xff]   ;;  %v8496_v51 = vpack.c.bf16 %v338_v28, %v338_v28 }
  0x7d   : > { %v615_v49 = vsel %vm8413_vm7, %v607_v40, %v614_v41  ;;  %v907_v62 = vsel %vm8387_vm2, %v616_v42, %v906_v56  ;;  %v1234_v8 = vrot.slane %v1232_v1, 1  ;;  %v7793_v10 = vld [vmem:[#allocation2 + $0x20] ss:$0 sps:$4 sm:$0x11]   ;;  %v909_v16 = vld [vmem:[#allocation2 + $0x30] sm:$0xf] }
  0x7e   : > { %905 = vst [vmem:[#allocation2 + $0x28] sm:$0xf] %v615_v49  ;;  %908 = vst [vmem:[#allocation2 + $0x2c] sm:$0x1] %v907_v62  ;;  %v1239_v13 = vrot.slane %v1237_v5, 1  ;;  %v8467_v14 = vsel %vm1451_vm10, %v1455_v2, %v1456_v6  ;;  %v1458_v24 = vrot.slane %v8464_v9, 1  ;;  %v910_v31 = vsel %vm8419_vm8, %v623_v7, %v909_v16 }
  0x7f   : > { %v1235_v23 = vor.u32 %v1234_v8, %v1230_v0  ;;  %7420 = vmatprep.mubr.bf16.mxu1 %v8467_v14  ;;  %v1459_v25 = vrot.slane %v7793_v10, 1  ;;  %v1242_v26 = vshrl.u32 %v8464_v9, 16  ;;  %v432_v27 = vld [vmem:[#allocation2 + $0x44] sm:$0x1]  ;;  %v1244_v29 = vshll.u32 %v8464_v9, 16  ;;  %v7808_v57 = vld [vmem:[#allocation7 + $0x68] sm:$0xff]  }
  0x80   : > { %v1249_v30 = vshll.u32 %v7793_v10, 16  ;;  %v916_v33 = vld [vmem:[#allocation2 + $0x3c] sm:$0xf]  ;;  %911 = vst [vmem:[#allocation2 + $0x30] sm:$0xf] %v910_v31  ;;  %v433_v38 = vsel %vm8393_vm4, 0, %v432_v27  ;;  %v6533_v49 = vpack.c.bf16 %v337_v22, %v337_v22 }
  0x81   : > { %v8482_v34 = vsel %vm1216_vm9, %v1235_v23, %v1239_v13  ;;  %v8485_v35 = vsel %vm1451_vm10, %v1458_v24, %v1459_v25  ;;  %v637_v39 = vrot.slane %v635_v12, 7  ;;  %v7807_v40 = vld [vmem:[#allocation7 + $0xb0] sm:$0xff]   ;;  %v1246_v41 = vrot.slane %v1244_v29, 1  ;;  %434 = vst [vmem:[#allocation2 + $0x44] sm:$0x1] %v433_v38  ;;  %v7809_v0 = vld [vmem:[#allocation7 + $0x28] sm:$0xff]  }
  0x82   : > { %v913_v17 = vld [vmem:[#allocation2 + $0x38] sm:$0x1]  ;;  %1797 = vmatprep.mubr.bf16.mxu0 %v8482_v34  ;;  %7421 = vmatmul.mubr.bf16.vlgmr.msra.gmra.mxu1 %v8485_v35  ;;  %v1251_v42 = vrot.slane %v1249_v30, 1  ;;  %v643_v43 = vshrl.u32 %v8469_v20, 16  ;;  %v646_v44 = vshll.u32 %v8469_v20, 16  ;;  %v652_v13 = vshrl.u32 %v6533_v49, 16 }
  0x83   : > { %v914_v32 = vsel %vm8387_vm2, %v633_v63, %v913_v17  ;;  %1798 = vmatmul.mubr.bf16.vlgmr.msra.gmra.mxu0 %v7790_v54  ;;  %6725 = vmatpush3.bf16.msra.mxu1 %v7796_v11  ;;  %v640_v48 = vor.u32 %v638_v21, %v637_v39  ;;  %v1247_v52 = vor.u32 %v1246_v41, %v1242_v26  ;;  %v641_v56 = vrot.slane %v637_v39, 4  ;;  %v385_v54 = vld [vmem:[#allocation2 + $0x48] sm:$0x1]  ;;  %v435_v63 = vld [vmem:[#allocation2 + $0x50] sm:$0x1]  ;;  %v340_v5 = vld [vmem:[%s8375_s17 + $0x68] sm:$0xff] }
  0x84   : > { %915 = vst [vmem:[#allocation2 + $0x38] sm:$0x1] %v914_v32  ;;  %7453 = vmatpush3.bf16.msra.mxu0 %v8405_v45  ;;  %6726 = vmatprep.subr.bf16.mxu1 %v7801_v18  ;;  %v645_v60 = vrot.slane %v643_v43, 7  ;;  %v339_v45 = vld [vmem:[%s8375_s17 + $0x60] sm:$0xff]  ;;  %v386_v3 = vsel %vm8387_vm2, 0, %v385_v54  ;;  %v436_v4 = vsel %vm8393_vm4, 0, %v435_v63  ;;  %v8523_v22 = vpack.c.bf16 %v340_v5, %v340_v5 }
  0x85   : > { %v8487_v36 = vld [vmem:[#allocation2 + $0x24] sm:$0xff]   ;;  %v7798_v46 = vld [vmem:[#allocation2 + $0x2c] ss:$0 sps:$4 sm:$0x11]   ;;  %v917_v62 = vsel %vm8419_vm8, %v640_v48, %v916_v33  ;;  %7454 = vmatprep.subr.bf16.mxu0 %v7807_v40  ;;  %v8505_v1 = vsel %vm1216_vm9, %v1247_v52, %v1251_v42  ;;  %387 = vst [vmem:[#allocation2 + $0x48] sm:$0x1] %v386_v3  ;;  %v8521_v21 = vpack.c.bf16 %v339_v45, %v339_v45 }
  0x86   : > { %v1461_v47 = vrot.slane %v8487_v36, 1  ;;  %v1254_v53 = vshrl.u32 %v8487_v36, 16  ;;  %v1256_v55 = vshll.u32 %v8487_v36, 16  ;;  %v1462_v58 = vrot.slane %v7798_v46, 1  ;;  %918 = vst [vmem:[#allocation2 + $0x3c] sm:$0xf] %v917_v62  ;;  %1805 = vmatprep.mubr.bf16.mxu0 %v8505_v1 }
  0x87   : > { %v1261_v59 = vshll.u32 %v7798_v46, 16  ;;  %6727 = vmatpush3.bf16.msra.mxu1 %v7802_v37  ;;  %v648_v8 = vor.u32 %v646_v44, %v645_v60  ;;  %v650_v10 = vrot.slane %v645_v60, 4  ;;  %437 = vst [vmem:[#allocation2 + $0x50] sm:$0x1] %v436_v4  ;;  %v8517_v11 = vld [vmem:[#allocation2 + $0x30] sm:$0xff]   ;;  %v655_v20 = vshll.u32 %v6533_v49, 16 }
  0x88   : > { %v1258_v2 = vrot.slane %v1256_v55, 1  ;;  %v8514_v6 = vsel %vm1451_vm10, %v1461_v47, %v1462_v58  ;;  %7455 = vmatpush3.bf16.msra.mxu0 %v7807_v40  ;;  %v920_v18 = vld [vmem:[#allocation2 + $0x44] sm:$0x1]  ;;  %6728 = vmatprep.subr.bf16.mxu1 %v7808_v57  ;;  %v1464_v23 = vrot.slane %v8517_v11, 1  ;;  %v654_v26 = vrot.slane %v652_v13, 7  ;;  %v342_v55 = vld [vmem:[%s8375_s17 + $0x78] sm:$0xff] }
  0x89   : > { %v1263_v7 = vrot.slane %v1261_v59, 1  ;;  %7424 = vmatprep.mubr.bf16.mxu1 %v8514_v6  ;;  %v649_v17 = vsel %vm8413_vm7, %v641_v56, %v648_v8  ;;  %v921_v25 = vsel %vm8387_vm2, %v650_v10, %v920_v18  ;;  %v660_v28 = vshrl.u32 %v8496_v51, 16  ;;  %v388_v38 = vld [vmem:[#allocation2 + $0x54] sm:$0x1]  ;;  %v341_v39 = vld [vmem:[%s8375_s17 + $0x70] sm:$0xff] }
  0x8a   : > { %v1259_v12 = vor.u32 %v1258_v2, %v1254_v53  ;;  %919 = vst [vmem:[#allocation2 + $0x40] sm:$0xf] %v649_v17  ;;  %922 = vst [vmem:[#allocation2 + $0x44] sm:$0x1] %v921_v25  ;;  %v663_v29 = vshll.u32 %v8496_v51, 16  ;;  %v1266_v30 = vshrl.u32 %v8517_v11, 16  ;;  %v657_v31 = vor.u32 %v655_v20, %v654_v26 }
  0x8b   : > { %v7800_v16 = vld [vmem:[#allocation2 + $0x38] ss:$0 sps:$4 sm:$0x11]   ;;  %1806 = vmatmul.mubr.bf16.gmra.mxu0 %v8464_v9  ;;  %6729 = vmatpush3.bf16.msra.mxu1 %v7809_v0  ;;  %v658_v32 = vrot.slane %v654_v26, 4  ;;  %v1268_v33 = vshll.u32 %v8517_v11, 16  ;;  %v662_v40 = vrot.slane %v660_v28, 7  ;;  %v6537_v48 = vpack.c.bf16 %v341_v39, %v341_v39 }
  0x8c   : > { %v8527_v24 = vsel %vm1216_vm9, %v1259_v12, %v1263_v7  ;;  %v1465_v27 = vrot.slane %v7800_v16, 1  ;;  %v1273_v37 = vshll.u32 %v7800_v16, 16  ;;  %v389_v41 = vsel %vm8387_vm2, 0, %v388_v38  ;;  %v438_v42 = vld [vmem:[#allocation2 + $0x5c] sm:$0x1]  ;;  %v7814_v54 = vld [vmem:[#allocation7 + $0x60] sm:$0xff]  }
  0x8d   : > { %1813 = vmatprep.mubr.bf16.mxu0 %v8527_v24  ;;  %v923_v43 = vld [vmem:[#allocation2 + $0x48] sm:$0xf]  ;;  %v1270_v46 = vrot.slane %v1268_v33, 1  ;;  %390 = vst [vmem:[#allocation2 + $0x54] sm:$0x1] %v389_v41  ;;  %v665_v49 = vor.u32 %v663_v29, %v662_v40  ;;  %v667_v51 = vrot.slane %v662_v40, 4  ;;  %6730 = vmatprep.subr.bf16.mxu1 %v7814_v54  ;;  %v6538_v10 = vpack.c.bf16 %v342_v55, %v342_v55 }
  0x8e   : > { %v8539_v9 = vsel %vm1451_vm10, %v1464_v23, %v1465_v27  ;;  %v927_v44 = vld [vmem:[#allocation2 + $0x50] sm:$0x1]  ;;  %v1275_v47 = vrot.slane %v1273_v37, 1  ;;  %v924_v52 = vsel %vm8419_vm8, %v657_v31, %v923_v43  ;;  %v439_v53 = vsel %vm8393_vm4, 0, %v438_v42  ;;  %v391_v56 = vld [vmem:[#allocation2 + $0x60] sm:$0x1] }
  0x8f   : > { %7425 = vmatmul.mubr.bf16.gmra.mxu1 %v8539_v9  ;;  %925 = vst [vmem:[#allocation2 + $0x48] sm:$0xf] %v924_v52  ;;  %v1271_v57 = vor.u32 %v1270_v46, %v1266_v30  ;;  %440 = vst [vmem:[#allocation2 + $0x5c] sm:$0x1] %v439_v53  ;;  %v669_v58 = vshrl.u32 %v8521_v21, 16  ;;  %v672_v59 = vshll.u32 %v8521_v21, 16  ;;  %v666_v45 = vsel %vm8413_vm7, %v658_v32, %v665_v49 }
  0x90   : > { %v677_v60 = vshrl.u32 %v8523_v22, 16  ;;  %v441_v62 = vld [vmem:[#allocation2 + $0x68] sm:$0x1]  ;;  %v7815_v63 = vld [vmem:[#allocation7 + $0x20] sm:$0xff]   ;;  %v928_v2 = vsel %vm8387_vm2, %v667_v51, %v927_v44  ;;  %v680_v3 = vshll.u32 %v8523_v22, 16  ;;  %v392_v4 = vsel %vm8387_vm2, 0, %v391_v56 }
  0x91   : > { %v8552_v0 = vld [vmem:[#allocation2 + $0x3c] sm:$0xff]   ;;  %v7804_v5 = vld [vmem:[#allocation2 + $0x44] ss:$0 sps:$4 sm:$0x11]   ;;  %926 = vst [vmem:[#allocation2 + $0x4c] sm:$0xf] %v666_v45  ;;  %v8562_v7 = vsel %vm1216_vm9, %v1271_v57, %v1275_v47  ;;  %6731 = vmatpush3.bf16.msra.mxu1 %v7815_v63 }
  0x92   : > { %929 = vst [vmem:[#allocation2 + $0x50] sm:$0x1] %v928_v2  ;;  %v671_v8 = vrot.slane %v669_v58, 7  ;;  %393 = vst [vmem:[#allocation2 + $0x60] sm:$0x1] %v392_v4  ;;  %v1467_v12 = vrot.slane %v8552_v0, 1 }
  0x93   : > { %1814 = vmatmul.mubr.bf16.gmra.mxu0 %v8487_v36  ;;  %v679_v13 = vrot.slane %v677_v60, 7  ;;  %v442_v16 = vsel %vm8393_vm4, 0, %v441_v62  ;;  %v686_v17 = vshrl.u32 %v6537_v48, 16  ;;  %v1468_v18 = vrot.slane %v7804_v5, 1  ;;  %v343_v23 = vld [vmem:[%s8375_s17 + $0x80] sm:$0xff]  ;;  %v344_v25 = vld [vmem:[%s8375_s17 + $0x88] sm:$0xff] }
  0x94   : > { %1821 = vmatprep.mubr.bf16.mxu0 %v8562_v7  ;;  %v674_v20 = vor.u32 %v672_v59, %v671_v8  ;;  %v675_v21 = vrot.slane %v671_v8, 4  ;;  %443 = vst [vmem:[#allocation2 + $0x68] sm:$0x1] %v442_v16  ;;  %v689_v22 = vshll.u32 %v6537_v48, 16  ;;  %v930_v28 = vld [vmem:[#allocation2 + $0x54] sm:$0xf]  ;;  %v6539_v53 = vpack.c.bf16 %v343_v23, %v343_v23 }
  0x95   : > { %v682_v26 = vor.u32 %v680_v3, %v679_v13  ;;  %v684_v27 = vrot.slane %v679_v13, 4  ;;  %v688_v29 = vrot.slane %v686_v17, 7  ;;  %v694_v36 = vshrl.u32 %v6538_v10, 16  ;;  %v345_v30 = vld [vmem:[%s8375_s17 + $0x90] sm:$0xff]  ;;  %v394_v47 = vld [vmem:[#allocation2 + $0x6c] sm:$0x1] }
  0x96   : > { %v8573_v31 = vsel %vm1451_vm10, %v1467_v12, %v1468_v18  ;;  %v931_v32 = vsel %vm8419_vm8, %v674_v20, %v930_v28  ;;  %v697_v33 = vshll.u32 %v6538_v10, 16  ;;  %v1278_v37 = vshrl.u32 %v8552_v0, 16  ;;  %v934_v39 = vld [vmem:[#allocation2 + $0x5c] sm:$0x1]  ;;  %v444_v48 = vld [vmem:[#allocation2 + $0x74] sm:$0x1] }
  0x97   : > { %7428 = vmatprep.mubr.bf16.mxu1 %v8573_v31  ;;  %v683_v38 = vsel %vm8413_vm7, %v675_v21, %v682_v26  ;;  %932 = vst [vmem:[#allocation2 + $0x54] sm:$0xf] %v931_v32  ;;  %v691_v40 = vor.u32 %v689_v22, %v688_v29  ;;  %v692_v41 = vrot.slane %v688_v29, 4  ;;  %v696_v42 = vrot.slane %v694_v36, 7  ;;  %v346_v2 = vld [vmem:[%s8375_s17 + $0x98] sm:$0xff]  ;;  %v7820_v3 = vld [vmem:[#allocation7 + $0xa8] sm:$0xff]  }
  0x98   : > { %933 = vst [vmem:[#allocation2 + $0x58] sm:$0xf] %v683_v38  ;;  %v935_v43 = vsel %vm8387_vm2, %v684_v27, %v934_v39  ;;  %v1280_v44 = vshll.u32 %v8552_v0, 16  ;;  %v1285_v46 = vshll.u32 %v7804_v5, 16  ;;  %v8584_v49 = vld [vmem:[#allocation2 + $0x48] sm:$0xff]   ;;  %v6540_v55 = vpack.c.bf16 %v344_v25, %v344_v25  ;;  %7456 = vmatprep.subr.bf16.mxu0 %v7820_v3 }
  0x99   : > { %936 = vst [vmem:[#allocation2 + $0x5c] sm:$0x1] %v935_v43  ;;  %v699_v51 = vor.u32 %v697_v33, %v696_v42  ;;  %v701_v52 = vrot.slane %v696_v42, 4  ;;  %v8586_v56 = vld [vmem:[#allocation2 + $0x50] ss:$0 sps:$4 sm:$0x11]   ;;  %v6541_v58 = vpack.c.bf16 %v345_v30, %v345_v30  ;;  %7457 = vmatpush3.bf16.msra.mxu0 %v7820_v3  ;;  %v6542_v29 = vpack.c.bf16 %v346_v2, %v346_v2 }
  0x9a   : > { %v937_v54 = vld [vmem:[#allocation2 + $0x60] sm:$0xf]  ;;  %v1282_v57 = vrot.slane %v1280_v44, 1  ;;  %v1470_v59 = vrot.slane %v8584_v49, 1  ;;  %v1287_v45 = vrot.slane %v1285_v46, 1  ;;  %v1471_v4 = vrot.slane %v8586_v56, 1 }
  0x9b   : > { %1822 = vmatmul.mubr.bf16.gmra.mxu0 %v8517_v11  ;;  %v700_v60 = vsel %vm8413_vm7, %v692_v41, %v699_v51  ;;  %v938_v62 = vsel %vm8419_vm8, %v691_v40, %v937_v54  ;;  %v941_v63 = vld [vmem:[#allocation2 + $0x68] sm:$0x1]  ;;  %v395_v11 = vsel %vm8387_vm2, 0, %v394_v47  ;;  %v397_v10 = vld [vmem:[#allocation2 + $0x78] sm:$0x1]  ;;  %v445_v13 = vsel %vm8393_vm4, 0, %v444_v48 }
  0x9c   : > { %939 = vst [vmem:[#allocation2 + $0x60] sm:$0xf] %v938_v62  ;;  %940 = vst [vmem:[#allocation2 + $0x64] sm:$0xf] %v700_v60  ;;  %v942_v5 = vsel %vm8387_vm2, %v701_v52, %v941_v63  ;;  %v1283_v8 = vor.u32 %v1282_v57, %v1278_v37  ;;  %v447_v12 = vld [vmem:[#allocation2 + $0x80] sm:$0x1]  ;;  %v8603_v20 = vsel %vm1451_vm10, %v1470_v59, %v1471_v4 }
  0x9d   : > { %943 = vst [vmem:[#allocation2 + $0x68] sm:$0x1] %v942_v5  ;;  %396 = vst [vmem:[#allocation2 + $0x6c] sm:$0x1] %v395_v11  ;;  %v703_v16 = vshrl.u32 %v6539_v53, 16  ;;  %v706_v17 = vshll.u32 %v6539_v53, 16  ;;  %7429 = vmatmul.mubr.bf16.gmra.mxu1 %v8603_v20 }
  0x9e   : > { %v711_v18 = vshrl.u32 %v6540_v55, 16  ;;  %v8606_v21 = vsel %vm1216_vm9, %v1283_v8, %v1287_v45  ;;  %446 = vst [vmem:[#allocation2 + $0x74] sm:$0x1] %v445_v13  ;;  %v714_v22 = vshll.u32 %v6540_v55, 16  ;;  %v398_v23 = vsel %vm8387_vm2, 0, %v397_v10  ;;  %v7821_v43 = vld [vmem:[#allocation7 + $0x58] sm:$0xff]  }
  0x9f   : > { %v8611_v25 = vld [vmem:[#allocation2 + $0x54] sm:$0xff]   ;;  %1829 = vmatprep.mubr.bf16.mxu0 %v8606_v21  ;;  %v705_v26 = vrot.slane %v703_v16, 7  ;;  %399 = vst [vmem:[#allocation2 + $0x78] sm:$0x1] %v398_v23  ;;  %v448_v28 = vsel %vm8393_vm4, 0, %v447_v12  ;;  %v720_v30 = vshrl.u32 %v6541_v58, 16  ;;  %6732 = vmatprep.subr.bf16.mxu1 %v7821_v43 }
  0xa0   : > { %v713_v27 = vrot.slane %v711_v18, 7  ;;  %v8616_v36 = vld [vmem:[#allocation2 + $0x5c] ss:$0 sps:$4 sm:$0x11]   ;;  %449 = vst [vmem:[#allocation2 + $0x80] sm:$0x1] %v448_v28 }
  0xa1   : > { %v1473_v32 = vrot.slane %v8611_v25, 1  ;;  %v708_v33 = vor.u32 %v706_v17, %v705_v26  ;;  %v709_v37 = vrot.slane %v705_v26, 4  ;;  %v1474_v39 = vrot.slane %v8616_v36, 1  ;;  %v7822_v44 = vld [vmem:[#allocation7 + $0x18] sm:$0xff]   ;;  %v347_v13 = vld [vmem:[%s8375_s17 + $0xa0] sm:$0xff]  ;;  %v348_v16 = vld [vmem:[%s8375_s17 + $0xa8] sm:$0xff] }
  0xa2   : > { %v716_v38 = vor.u32 %v714_v22, %v713_v27  ;;  %v718_v40 = vrot.slane %v713_v27, 4  ;;  %v722_v41 = vrot.slane %v720_v30, 7  ;;  %v723_v42 = vshll.u32 %v6541_v58, 16  ;;  %6733 = vmatpush3.bf16.msra.mxu1 %v7822_v44  ;;  %v400_v17 = vld [vmem:[#allocation2 + $0x84] sm:$0x1] }
  0xa3   : > { %v8620_v46 = vld [vmem:[#allocation2 + $0x60] sm:$0xff]   ;;  %1830 = vmatmul.mubr.bf16.gmra.mxu0 %v8552_v0  ;;  %v728_v48 = vshrl.u32 %v6542_v29, 16  ;;  %v8626_v51 = vsel %vm1451_vm10, %v1473_v32, %v1474_v39  ;;  %v731_v63 = vshll.u32 %v6542_v29, 16  ;;  %v1290_v5 = vshrl.u32 %v8584_v49, 16  ;;  %v450_v23 = vld [vmem:[#allocation2 + $0x8c] sm:$0x1] }
  0xa4   : > { %v717_v47 = vsel %vm8413_vm7, %v709_v37, %v716_v38  ;;  %v8628_v52 = vld [vmem:[#allocation2 + $0x68] ss:$0 sps:$4 sm:$0x11]   ;;  %v725_v53 = vor.u32 %v723_v42, %v722_v41  ;;  %v726_v55 = vrot.slane %v722_v41, 4  ;;  %7432 = vmatprep.mubr.bf16.mxu1 %v8626_v51  ;;  %v1476_v54 = vrot.slane %v8620_v46, 1  ;;  %v349_v28 = vld [vmem:[%s8375_s17 + $0xb0] sm:$0xff] }
  0xa5   : > { %947 = vst [vmem:[#allocation2 + $0x70] sm:$0xf] %v717_v47  ;;  %v944_v57 = vld [vmem:[#allocation2 + $0x6c] sm:$0xf]  ;;  %v948_v58 = vld [vmem:[#allocation2 + $0x74] sm:$0x1]  ;;  %v6543_v26 = vpack.c.bf16 %v347_v13, %v347_v13  ;;  %v6544_v27 = vpack.c.bf16 %v348_v16, %v348_v16 }
  0xa6   : > { %v730_v59 = vrot.slane %v728_v48, 7  ;;  %v1477_v0 = vrot.slane %v8628_v52, 1  ;;  %v945_v60 = vsel %vm8419_vm8, %v708_v33, %v944_v57  ;;  %v949_v62 = vsel %vm8387_vm2, %v718_v40, %v948_v58  ;;  %v951_v45 = vld [vmem:[#allocation2 + $0x78] sm:$0xf]  ;;  %v350_v33 = vld [vmem:[%s8375_s17 + $0xb8] sm:$0xff]  ;;  %v7827_v38 = vld [vmem:[#allocation7 + $0x50] sm:$0xff]  }
  0xa7   : > { %946 = vst [vmem:[#allocation2 + $0x6c] sm:$0xf] %v945_v60  ;;  %950 = vst [vmem:[#allocation2 + $0x74] sm:$0x1] %v949_v62  ;;  %v952_v3 = vsel %vm8419_vm8, %v725_v53, %v951_v45  ;;  %v955_v4 = vld [vmem:[#allocation2 + $0x80] sm:$0x1]  ;;  %v6545_v48 = vpack.c.bf16 %v349_v28, %v349_v28  ;;  %6734 = vmatprep.subr.bf16.mxu1 %v7827_v38 }
  0xa8   : > { %v735_v2 = vrot.slane %v730_v59, 4  ;;  %v8641_v8 = vsel %vm1451_vm10, %v1476_v54, %v1477_v0  ;;  %v733_v11 = vor.u32 %v731_v63, %v730_v59  ;;  %953 = vst [vmem:[#allocation2 + $0x78] sm:$0xf] %v952_v3  ;;  %v1292_v10 = vshll.u32 %v8584_v49, 16  ;;  %v403_v37 = vld [vmem:[#allocation2 + $0x90] sm:$0x1] }
  0xa9   : > { %v1297_v12 = vshll.u32 %v8586_v56, 16  ;;  %7433 = vmatmul.mubr.bf16.gmra.mxu1 %v8641_v8  ;;  %v401_v22 = vsel %vm8387_vm2, 0, %v400_v17  ;;  %v451_v32 = vsel %vm8393_vm4, 0, %v450_v23  ;;  %v737_v39 = vshrl.u32 %v6543_v26, 16  ;;  %v453_v47 = vld [vmem:[#allocation2 + $0x98] sm:$0x1] }
  0xaa   : > { %v956_v18 = vsel %vm8387_vm2, %v735_v2, %v955_v4  ;;  %v734_v29 = vsel %vm8413_vm7, %v726_v55, %v733_v11  ;;  %v1294_v56 = vrot.slane %v1292_v10, 1  ;;  %402 = vst [vmem:[#allocation2 + $0x84] sm:$0x1] %v401_v22  ;;  %452 = vst [vmem:[#allocation2 + $0x8c] sm:$0x1] %v451_v32  ;;  %v740_v40 = vshll.u32 %v6543_v26, 16 }
  0xab   : > { %957 = vst [vmem:[#allocation2 + $0x80] sm:$0x1] %v956_v18  ;;  %v1299_v30 = vrot.slane %v1297_v12, 1  ;;  %954 = vst [vmem:[#allocation2 + $0x7c] sm:$0xf] %v734_v29  ;;  %v745_v41 = vshrl.u32 %v6544_v27, 16  ;;  %v6546_v3 = vpack.c.bf16 %v350_v33, %v350_v33 }
  0xac   : > { %v748_v42 = vshll.u32 %v6544_v27, 16  ;;  %v1295_v43 = vor.u32 %v1294_v56, %v1290_v5  ;;  %v404_v44 = vsel %vm8387_vm2, 0, %v403_v37  ;;  %v7828_v53 = vld [vmem:[#allocation7 + $0x10] sm:$0xff]   ;;  %v739_v55 = vrot.slane %v737_v39, 7  ;;  %v351_v38 = vld [vmem:[%s8375_s17 + $0xc0] sm:$0xff] }
  0xad   : > { %v747_v54 = vrot.slane %v745_v41, 7  ;;  %405 = vst [vmem:[#allocation2 + $0x90] sm:$0x1] %v404_v44  ;;  %v454_v57 = vsel %vm8393_vm4, 0, %v453_v47  ;;  %v1302_v58 = vshrl.u32 %v8611_v25, 16  ;;  %v754_v60 = vshrl.u32 %v6545_v48, 16  ;;  %6735 = vmatpush3.bf16.msra.mxu1 %v7828_v53 }
  0xae   : > { %v8663_v59 = vld [vmem:[#allocation2 + $0x6c] sm:$0xff]   ;;  %v8666_v0 = vsel %vm1216_vm9, %v1295_v43, %v1299_v30  ;;  %455 = vst [vmem:[#allocation2 + $0x98] sm:$0x1] %v454_v57  ;;  %v8668_v62 = vld [vmem:[#allocation2 + $0x74] ss:$0 sps:$4 sm:$0x11]   ;;  %v742_v63 = vor.u32 %v740_v40, %v739_v55  ;;  %v6547_v44 = vpack.c.bf16 %v351_v38, %v351_v38 }
  0xaf   : > { %1837 = vmatprep.mubr.bf16.mxu0 %v8666_v0  ;;  %v743_v45 = vrot.slane %v739_v55, 4  ;;  %v750_v2 = vor.u32 %v748_v42, %v747_v54  ;;  %v1479_v4 = vrot.slane %v8663_v59, 1  ;;  %v752_v5 = vrot.slane %v747_v54, 4  ;;  %v352_v43 = vld [vmem:[%s8375_s17 + $0xc8] sm:$0xff]  ;;  %v353_v47 = vld [vmem:[%s8375_s17 + $0xd0] sm:$0xff] }
  0xb0   : > { %1838 = vmatmul.mubr.bf16.gmra.mxu0 %v8584_v49  ;;  %v756_v11 = vrot.slane %v754_v60, 7  ;;  %v757_v10 = vshll.u32 %v6545_v48, 16  ;;  %v1480_v12 = vrot.slane %v8668_v62, 1  ;;  %v762_v29 = vshrl.u32 %v6546_v3, 16  ;;  %v406_v55 = vld [vmem:[#allocation2 + $0x9c] sm:$0x1] }
  0xb1   : > { %v751_v16 = vsel %vm8413_vm7, %v743_v45, %v750_v2  ;;  %v958_v18 = vld [vmem:[#allocation2 + $0x84] sm:$0xf]  ;;  %v962_v28 = vld [vmem:[#allocation2 + $0x8c] sm:$0x1]  ;;  %v765_v32 = vshll.u32 %v6546_v3, 16  ;;  %v1304_v37 = vshll.u32 %v8611_v25, 16  ;;  %v6548_v57 = vpack.c.bf16 %v352_v43, %v352_v43 }
  0xb2   : > { %v8674_v13 = vld [vmem:[#allocation2 + $0x80] ss:$0 sps:$4 sm:$0x11]   ;;  %v8678_v17 = vld [vmem:[#allocation2 + $0x78] sm:$0xff]   ;;  %961 = vst [vmem:[#allocation2 + $0x88] sm:$0xf] %v751_v16  ;;  %v759_v22 = vor.u32 %v757_v10, %v756_v11  ;;  %v8681_v26 = vsel %vm1451_vm10, %v1479_v4, %v1480_v12  ;;  %v959_v27 = vsel %vm8419_vm8, %v742_v63, %v958_v18  ;;  %v963_v30 = vsel %vm8387_vm2, %v752_v5, %v962_v28 }
  0xb3   : > { %v760_v23 = vrot.slane %v756_v11, 4  ;;  %v1483_v49 = vrot.slane %v8674_v13, 1  ;;  %7436 = vmatprep.mubr.bf16.mxu1 %v8681_v26  ;;  %v1482_v56 = vrot.slane %v8678_v17, 1  ;;  %960 = vst [vmem:[#allocation2 + $0x84] sm:$0xf] %v959_v27  ;;  %v764_v39 = vrot.slane %v762_v29, 7 }
  0xb4   : > { %v965_v33 = vld [vmem:[#allocation2 + $0x90] sm:$0xf]  ;;  %964 = vst [vmem:[#allocation2 + $0x8c] sm:$0x1] %v963_v30  ;;  %v1309_v42 = vshll.u32 %v8616_v36, 16  ;;  %v1306_v53 = vrot.slane %v1304_v37, 1  ;;  %v6549_v63 = vpack.c.bf16 %v353_v47, %v353_v47 }
  0xb5   : > { %v966_v40 = vsel %vm8419_vm8, %v759_v22, %v965_v33  ;;  %v969_v41 = vld [vmem:[#allocation2 + $0x98] sm:$0x1]  ;;  %v8698_v48 = vsel %vm1451_vm10, %v1482_v56, %v1483_v49  ;;  %v456_v54 = vld [vmem:[#allocation2 + $0xa4] sm:$0x1]  ;;  %v354_v60 = vld [vmem:[%s8375_s17 + $0xd8] sm:$0xff]  ;;  %v767_v45 = vor.u32 %v765_v32, %v764_v39  ;;  %v769_v2 = vrot.slane %v764_v39, 4 }
  0xb6   : > { %967 = vst [vmem:[#allocation2 + $0x90] sm:$0xf] %v966_v40  ;;  %7437 = vmatmul.mubr.bf16.gmra.mxu1 %v8698_v48  ;;  %v1311_v3 = vrot.slane %v1309_v42, 1  ;;  %v407_v36 = vsel %vm8387_vm2, 0, %v406_v55  ;;  %v409_v4 = vld [vmem:[#allocation2 + $0xa8] sm:$0x1]  ;;  %v1307_v11 = vor.u32 %v1306_v53, %v1302_v58  ;;  %v6550_v38 = vpack.c.bf16 %v354_v60, %v354_v60 }
  0xb7   : > { %v7833_v5 = vld [vmem:[#allocation7 + $0xa0] sm:$0xff]   ;;  %408 = vst [vmem:[#allocation2 + $0x9c] sm:$0x1] %v407_v36  ;;  %v457_v10 = vsel %vm8393_vm4, 0, %v456_v54  ;;  %v771_v12 = vshrl.u32 %v6547_v44, 16  ;;  %v774_v16 = vshll.u32 %v6547_v44, 16  ;;  %v768_v49 = vsel %vm8413_vm7, %v760_v23, %v767_v45 }
  0xb8   : > { %v459_v18 = vld [vmem:[#allocation2 + $0xb0] sm:$0x1]  ;;  %v7834_v22 = vld [vmem:[#allocation7 + $0x48] sm:$0xff]   ;;  %v970_v27 = vsel %vm8387_vm2, %v769_v2, %v969_v41  ;;  %458 = vst [vmem:[#allocation2 + $0xa4] sm:$0x1] %v457_v10  ;;  %v779_v28 = vshrl.u32 %v6548_v57, 16  ;;  %7458 = vmatprep.subr.bf16.mxu0 %v7833_v5  ;;  %v8711_v58 = vsel %vm1216_vm9, %v1307_v11, %v1311_v3 }
  0xb9   : > { %v782_v29 = vshll.u32 %v6548_v57, 16  ;;  %968 = vst [vmem:[#allocation2 + $0x94] sm:$0xf] %v768_v49  ;;  %971 = vst [vmem:[#allocation2 + $0x98] sm:$0x1] %v970_v27  ;;  %v773_v56 = vrot.slane %v771_v12, 7  ;;  %7459 = vmatpush3.bf16.msra.mxu0 %v7833_v5  ;;  %6736 = vmatprep.subr.bf16.mxu1 %v7834_v22 }
  0xba   : > { %v410_v30 = vsel %vm8387_vm2, 0, %v409_v4  ;;  %v460_v32 = vsel %vm8393_vm4, 0, %v459_v18  ;;  %v7835_v23 = vld [vmem:[#allocation7 + $0x8] sm:$0xff]   ;;  %v8717_v33 = vld [vmem:[#allocation2 + $0x84] sm:$0xff]   ;;  %1845 = vmatprep.mubr.bf16.mxu0 %v8711_v58  ;;  %v781_v37 = vrot.slane %v779_v28, 7  ;;  %v788_v39 = vshrl.u32 %v6549_v63, 16 }
  0xbb   : > { %411 = vst [vmem:[#allocation2 + $0xa8] sm:$0x1] %v410_v30  ;;  %461 = vst [vmem:[#allocation2 + $0xb0] sm:$0x1] %v460_v32  ;;  %v791_v40 = vshll.u32 %v6549_v63, 16  ;;  %v776_v42 = vor.u32 %v774_v16, %v773_v56  ;;  %v777_v43 = vrot.slane %v773_v56, 4  ;;  %1846 = vmatmul.mubr.bf16.gmra.mxu0 %v8611_v25  ;;  %6737 = vmatpush3.bf16.msra.mxu1 %v7835_v23 }
  0xbc   : > { %v8720_v41 = vld [vmem:[#allocation2 + $0x8c] ss:$0 sps:$4 sm:$0x11]   ;;  %v1485_v44 = vrot.slane %v8717_v33, 1  ;;  %v784_v47 = vor.u32 %v782_v29, %v781_v37  ;;  %v786_v53 = vrot.slane %v781_v37, 4  ;;  %v790_v55 = vrot.slane %v788_v39, 7 }
  0xbd   : > { %v355_v54 = vld [vmem:[%s8375_s17 + $0xe0] sm:$0xff]  ;;  %v1486_v57 = vrot.slane %v8720_v41, 1  ;;  %v796_v45 = vshrl.u32 %v6550_v38, 16  ;;  %v799_v2 = vshll.u32 %v6550_v38, 16  ;;  %v1314_v60 = vshrl.u32 %v8620_v46, 16 }
  0xbe   : > { %v785_v63 = vsel %vm8413_vm7, %v777_v43, %v784_v47  ;;  %v972_v3 = vld [vmem:[#allocation2 + $0x9c] sm:$0xf]  ;;  %v793_v36 = vor.u32 %v791_v40, %v790_v55  ;;  %v794_v4 = vrot.slane %v790_v55, 4  ;;  %v1316_v25 = vshll.u32 %v8620_v46, 16 }
  0xbf   : > { %v8731_v5 = vsel %vm1451_vm10, %v1485_v44, %v1486_v57  ;;  %v973_v11 = vsel %vm8419_vm8, %v776_v42, %v972_v3  ;;  %975 = vst [vmem:[#allocation2 + $0xa0] sm:$0xf] %v785_v63  ;;  %v976_v10 = vld [vmem:[#allocation2 + $0xa4] sm:$0x1]  ;;  %v798_v12 = vrot.slane %v796_v45, 7  ;;  %v1321_v16 = vshll.u32 %v8628_v52, 16 }
  0xc0   : > { %7440 = vmatprep.mubr.bf16.mxu1 %v8731_v5  ;;  %v8737_v18 = vld [vmem:[#allocation2 + $0x90] sm:$0xff]   ;;  %974 = vst [vmem:[#allocation2 + $0x9c] sm:$0xf] %v973_v11  ;;  %v977_v22 = vsel %vm8387_vm2, %v786_v53, %v976_v10  ;;  %v1318_v49 = vrot.slane %v1316_v25, 1  ;;  %v6551_v30 = vpack.c.bf16 %v355_v54, %v355_v54  ;;  %v356_v43 = vld [vmem:[%s8375_s17 + $0xe8] sm:$0xff]  ;;  %v357_v45 = vld [vmem:[%s8375_s17 + $0xf0] sm:$0xff] }
  0xc1   : > { %v8741_v27 = vld [vmem:[#allocation2 + $0x98] ss:$0 sps:$4 sm:$0x11]   ;;  %978 = vst [vmem:[#allocation2 + $0xa4] sm:$0x1] %v977_v22  ;;  %v801_v28 = vor.u32 %v799_v2, %v798_v12  ;;  %v803_v29 = vrot.slane %v798_v12, 4  ;;  %v6552_v57 = vpack.c.bf16 %v356_v43, %v356_v43  ;;  %v6553_v22 = vpack.c.bf16 %v357_v45, %v357_v45 }
  0xc2   : > { %v979_v56 = vld [vmem:[#allocation2 + $0xa8] sm:$0xf]  ;;  %v1488_v32 = vrot.slane %v8737_v18, 1  ;;  %v983_v23 = vld [vmem:[#allocation2 + $0xb0] sm:$0x1]  ;;  %v1319_v37 = vor.u32 %v1318_v49, %v1314_v60  ;;  %v1323_v38 = vrot.slane %v1321_v16, 1 }
  0xc3   : > { %v980_v52 = vsel %vm8419_vm8, %v793_v36, %v979_v56  ;;  %v1489_v39 = vrot.slane %v8741_v27, 1  ;;  %v802_v40 = vsel %vm8413_vm7, %v794_v4, %v801_v28  ;;  %v984_v42 = vsel %vm8387_vm2, %v803_v29, %v983_v23  ;;  %v412_v44 = vld [vmem:[#allocation2 + $0xb4] sm:$0x1]  ;;  %v462_v47 = vld [vmem:[#allocation2 + $0xbc] sm:$0x1]  ;;  %v358_v2 = vld [vmem:[%s8375_s17 + $0xf8] sm:$0xff] }
  0xc4   : > { %981 = vst [vmem:[#allocation2 + $0xa8] sm:$0xf] %v980_v52  ;;  %982 = vst [vmem:[#allocation2 + $0xac] sm:$0xf] %v802_v40  ;;  %v8753_v53 = vsel %vm1216_vm9, %v1319_v37, %v1323_v38  ;;  %v413_v55 = vsel %vm8387_vm2, 0, %v412_v44  ;;  %v463_v54 = vsel %vm8393_vm4, 0, %v462_v47 }
  0xc5   : > { %985 = vst [vmem:[#allocation2 + $0xb0] sm:$0x1] %v984_v42  ;;  %v415_v60 = vld [vmem:[#allocation2 + $0xc0] sm:$0x1]  ;;  %v8762_v63 = vsel %vm1451_vm10, %v1488_v32, %v1489_v39  ;;  %1853 = vmatprep.mubr.bf16.mxu0 %v8753_v53  ;;  %414 = vst [vmem:[#allocation2 + $0xb4] sm:$0x1] %v413_v55  ;;  %v6554_v32 = vpack.c.bf16 %v358_v2, %v358_v2 }
  0xc6   : > { %464 = vst [vmem:[#allocation2 + $0xbc] sm:$0x1] %v463_v54  ;;  %v805_v3 = vshrl.u32 %v6551_v30, 16  ;;  %v808_v36 = vshll.u32 %v6551_v30, 16  ;;  %v416_v4 = vsel %vm8387_vm2, 0, %v415_v60  ;;  %v7840_v11 = vld [vmem:[#allocation7 + $0x40] sm:$0xff]   ;;  %7441 = vmatmul.mubr.bf16.gmra.mxu1 %v8762_v63  ;;  %1854 = vmatmul.mubr.bf16.gmra.mxu0 %v8620_v46 }
  0xc7   : > { %v465_v25 = vld [vmem:[#allocation2 + $0xc8] sm:$0x1]  ;;  %v813_v10 = vshrl.u32 %v6552_v57, 16  ;;  %v816_v12 = vshll.u32 %v6552_v57, 16  ;;  %417 = vst [vmem:[#allocation2 + $0xc0] sm:$0x1] %v416_v4  ;;  %6738 = vmatprep.subr.bf16.mxu1 %v7840_v11 }
  0xc8   : > { %v466_v16 = vsel %vm8393_vm4, 0, %v465_v25  ;;  %v7841_v49 = vld [vmem:[#allocation7] sm:$0xff]   ;;  %v8771_v28 = vld [vmem:[#allocation2 + $0x9c] sm:$0xff]   ;;  %v807_v29 = vrot.slane %v805_v3, 7  ;;  %v822_v37 = vshrl.u32 %v6553_v22, 16  ;;  %v825_v42 = vshll.u32 %v6553_v22, 16 }
  0xc9   : > { %467 = vst [vmem:[#allocation2 + $0xc8] sm:$0x1] %v466_v16  ;;  %v8773_v56 = vld [vmem:[#allocation2 + $0xa4] ss:$0 sps:$4 sm:$0x11]   ;;  %v815_v30 = vrot.slane %v813_v10, 7  ;;  %6739 = vmatpush3.bf16.msra.mxu1 %v7841_v49 }
  0xca   : > { %v1491_v52 = vrot.slane %v8771_v28, 1  ;;  %v810_v23 = vor.u32 %v808_v36, %v807_v29  ;;  %v811_v46 = vrot.slane %v807_v29, 4  ;;  %v1492_v38 = vrot.slane %v8773_v56, 1  ;;  %v7844_v43 = vld [vmem:[#allocation7 + $0x98] sm:$0xff]   ;;  %v8790_v10 = vld [vmem:[#allocation2] sm:$0xff]  }
  0xcb   : > { %v818_v39 = vor.u32 %v816_v12, %v815_v30  ;;  %v820_v40 = vrot.slane %v815_v30, 4  ;;  %v8777_v44 = vld [vmem:[#allocation2 + $0xa8] sm:$0xff]   ;;  %v824_v47 = vrot.slane %v822_v37, 7  ;;  %v830_v2 = vshrl.u32 %v6554_v32, 16  ;;  %7460 = vmatprep.subr.bf16.mxu0 %v7844_v43 }
  0xcc   : > { %v8780_v55 = vsel %vm1451_vm10, %v1491_v52, %v1492_v38  ;;  %v8782_v54 = vld [vmem:[#allocation2 + $0xb0] ss:$0 sps:$4 sm:$0x11]   ;;  %v986_v45 = vld [vmem:[#allocation2 + $0xb4] sm:$0xf]  ;;  %v1494_v60 = vrot.slane %v8777_v44, 1  ;;  %7461 = vmatpush3.bf16.msra.mxu0 %v7844_v43 }
  0xcd   : > { %v819_v57 = vsel %vm8413_vm7, %v811_v46, %v818_v39  ;;  %7444 = vmatprep.mubr.bf16.mxu1 %v8780_v55  ;;  %v987_v3 = vsel %vm8419_vm8, %v810_v23, %v986_v45  ;;  %v990_v36 = vld [vmem:[#allocation2 + $0xbc] sm:$0x1]  ;;  %v827_v4 = vor.u32 %v825_v42, %v824_v47  ;;  %v828_v25 = vrot.slane %v824_v47, 4  ;;  %v8795_v30 = vld [vmem:[#allocation7 + $0x238] sm:$0xff]  }
  0xce   : > { %989 = vst [vmem:[#allocation2 + $0xb8] sm:$0xf] %v819_v57  ;;  %v993_v11 = vld [vmem:[#allocation2 + $0xc0] sm:$0xf]  ;;  %v1495_v12 = vrot.slane %v8782_v54, 1  ;;  %v991_v16 = vsel %vm8387_vm2, %v820_v40, %v990_v36  ;;  %v832_v22 = vrot.slane %v830_v2, 7  ;;  %7500 = vmatprep.subr.bf16.mxu1 %v8795_v30 }
  0xcf   : > { %988 = vst [vmem:[#allocation2 + $0xb4] sm:$0xf] %v987_v3  ;;  %v833_v49 = vshll.u32 %v6554_v32, 16  ;;  %992 = vst [vmem:[#allocation2 + $0xbc] sm:$0x1] %v991_v16  ;;  %v994_v52 = vsel %vm8419_vm8, %v827_v4, %v993_v11  ;;  %v1326_v23 = vshrl.u32 %v8663_v59, 16 }
  0xd0   : > { %v997_v29 = vld [vmem:[#allocation2 + $0xc8] sm:$0x1]  ;;  %v1328_v46 = vshll.u32 %v8663_v59, 16  ;;  %v8802_v37 = vsel %vm1451_vm10, %v1494_v60, %v1495_v12  ;;  %v837_v39 = vrot.slane %v832_v22, 4  ;;  %995 = vst [vmem:[#allocation2 + $0xc0] sm:$0xf] %v994_v52 }
  0xd1   : > { %v835_v38 = vor.u32 %v833_v49, %v832_v22  ;;  %v1333_v40 = vshll.u32 %v8668_v62, 16  ;;  %7445 = vmatmul.mubr.bf16.gmra.mxu1 %v8802_v37  ;;  %v8807_v42 = vld [vmem:[#allocation2 + $0x8] ss:$0 sps:$4 sm:$0x11]   ;;  %v1218_v2 = vshrl.u32 %v8790_v10, 16  ;;  %v1220_v62 = vshll.u32 %v8790_v10, 16 }
  0xd2   : > { %v1330_v32 = vrot.slane %v1328_v46, 1  ;;  %v998_v47 = vsel %vm8387_vm2, %v837_v39, %v997_v29  ;;  %v1225_v60 = vshll.u32 %v8807_v42, 16  ;;  %v1338_v3 = vshrl.u32 %v8678_v17, 16  ;;  %v7846_v46 = vld [vmem:[#allocation7 + $0x90] sm:$0xff]  }
  0xd3   : > { %v836_v43 = vsel %vm8413_vm7, %v828_v25, %v835_v38  ;;  %v1335_v57 = vrot.slane %v1333_v40, 1  ;;  %999 = vst [vmem:[#allocation2 + $0xc8] sm:$0x1] %v998_v47  ;;  %v1340_v36 = vshll.u32 %v8678_v17, 16  ;;  %v1345_v4 = vshll.u32 %v8674_v13, 16  ;;  %7462 = vmatprep.subr.bf16.mxu0 %v7846_v46 }
  0xd4   : > { %996 = vst [vmem:[#allocation2 + $0xc4] sm:$0xf] %v836_v43  ;;  %v1331_v45 = vor.u32 %v1330_v32, %v1326_v23  ;;  %v1222_v12 = vrot.slane %v1220_v62, 1  ;;  %v1350_v16 = vshrl.u32 %v8717_v33, 16  ;;  %v1352_v22 = vshll.u32 %v8717_v33, 16  ;;  %7463 = vmatpush3.bf16.msra.mxu0 %v7846_v46 }
  0xd5   : > { %v1342_v29 = vrot.slane %v1340_v36, 1  ;;  %v1347_v13 = vrot.slane %v1345_v4, 1  ;;  %v1357_v40 = vshll.u32 %v8720_v41, 16  ;;  %v1227_v32 = vrot.slane %v1225_v60, 1  ;;  %v7848_v4 = vld [vmem:[#allocation7 + $0x88] sm:$0xff]  }
  0xd6   : > { %v8819_v25 = vld [vmem:[#allocation2 + $0xb4] sm:$0xff]   ;;  %v8822_v11 = vsel %vm1216_vm9, %v1331_v45, %v1335_v57  ;;  %v8826_v49 = vld [vmem:[#allocation2 + $0xbc] ss:$0 sps:$4 sm:$0x11]   ;;  %v1354_v23 = vrot.slane %v1352_v22, 1  ;;  %v1223_v45 = vor.u32 %v1222_v12, %v1218_v2  ;;  %v1364_v41 = vshll.u32 %v8737_v18, 16  ;;  %7464 = vmatprep.subr.bf16.mxu0 %v7848_v4 }
  0xd7   : > { %1861 = vmatprep.mubr.bf16.mxu0 %v8822_v11  ;;  %v1497_v52 = vrot.slane %v8819_v25, 1  ;;  %v1498_v38 = vrot.slane %v8826_v49, 1  ;;  %v1343_v39 = vor.u32 %v1342_v29, %v1338_v3  ;;  %v1362_v3 = vshrl.u32 %v8737_v18, 16 }
  0xd8   : > { %1862 = vmatmul.mubr.bf16.gmra.mxu0 %v8663_v59  ;;  %v1355_v43 = vor.u32 %v1354_v23, %v1350_v16  ;;  %v1359_v59 = vrot.slane %v1357_v40, 1  ;;  %v1366_v16 = vrot.slane %v1364_v41, 1  ;;  %v1369_v22 = vshll.u32 %v8741_v27, 16  ;;  %v7852_v27 = vld [vmem:[#allocation7 + $0x1f8] sm:$0xff]  }
  0xd9   : > { %v8834_v47 = vsel %vm1451_vm10, %v1497_v52, %v1498_v38  ;;  %v8839_v62 = vsel %vm1216_vm9, %v1343_v39, %v1347_v13  ;;  %v1228_v29 = vsel %vm1216_vm9, %v1223_v45, %v1227_v32  ;;  %v7850_v13 = vld [vmem:[#allocation7 + $0x80] sm:$0xff]   ;;  %v1376_v38 = vshll.u32 %v8771_v28, 16  ;;  %7465 = vmatpush3.bf16.msra.mxu0 %v7848_v4 }
  0xda   : > { %7448 = vmatprep.mubr.bf16.mxu1 %v8834_v47  ;;  %v8842_v36 = vld [vmem:[#allocation2 + $0xc8] ss:$0 sps:$4 sm:$0x11]   ;;  %1869 = vmatprep.mubr.bf16.mxu0 %v8839_v62  ;;  %v8850_v12 = vsel %vm1216_vm9, %v1355_v43, %v1359_v59  ;;  %v1367_v23 = vor.u32 %v1366_v16, %v1362_v3  ;;  %v1371_v46 = vrot.slane %v1369_v22, 1  ;;  %v1374_v39 = vshrl.u32 %v8771_v28, 16  ;;  %v7847_v43 = vld [vmem:[#allocation7 + $0x230] sm:$0xff]  }
  0xdb   : > { %v8836_v57 = vld [vmem:[#allocation2 + $0xc0] sm:$0xff]   ;;  %v1501_v2 = vrot.slane %v8842_v36, 1  ;;  %7466 = vmatprep.subr.bf16.mxu0 %v7850_v13  ;;  %v1378_v32 = vrot.slane %v1376_v38, 1  ;;  %v1388_v41 = vshll.u32 %v8777_v44, 16  ;;  %v1393_v4 = vshll.u32 %v8782_v54, 16 }
  0xdc   : > { %v1500_v60 = vrot.slane %v8836_v57, 1  ;;  %v8863_v40 = vsel %vm1216_vm9, %v1367_v23, %v1371_v46  ;;  %v1398_v16 = vshrl.u32 %v8819_v25, 16  ;;  %v1405_v22 = vshll.u32 %v8826_v49, 16  ;;  %v7854_v23 = vld [vmem:[#allocation7 + $0x218] sm:$0xff]  }
  0xdd   : > { %7467 = vmatpush3.bf16.msra.mxu0 %v7850_v13  ;;  %v1379_v45 = vor.u32 %v1378_v32, %v1374_v39  ;;  %v1395_v13 = vrot.slane %v1393_v4, 1  ;;  %v1412_v54 = vshll.u32 %v8836_v57, 16  ;;  %v1410_v38 = vshrl.u32 %v8836_v57, 16  ;;  %v8910_v4 = vld [vmem:[#allocation2 + $0x30] sm:$0xff]  }
  0xde   : > { %v8855_v52 = vsel %vm1451_vm10, %v1500_v60, %v1501_v2  ;;  %6860 = vmatprep.subr.bf16.mxu0 %v7852_v27  ;;  %v7849_v60 = vld [vmem:[#allocation7 + $0x228] sm:$0xff]   ;;  %v7851_v2 = vld [vmem:[#allocation7 + $0x220] sm:$0xff]   ;;  %v1407_v27 = vrot.slane %v1405_v22, 1  ;;  %v1452_v39 = vrot.slane %v8790_v10, 1  ;;  %v7856_v22 = vld [vmem:[#allocation7 + $0x1b0] sm:$0xff]  }
  0xdf   : > { %7449 = vmatmul.mubr.bf16.gmra.mxu1 %v8855_v52  ;;  %v1414_v49 = vrot.slane %v1412_v54, 1  ;;  %v7860_v54 = vld [vmem:[#allocation7 + $0x1e0] sm:$0xff]  }
  0xe0   : > { %1870 = vmatmul.mubr.bf16.gmra.mxu0 %v8678_v17  ;;  %2263 = vmatprep.mubr.bf16.mxu1 %v1228_v29  ;;  %v1381_v17 = vshll.u32 %v8773_v56, 16  ;;  %v1386_v56 = vshrl.u32 %v8777_v44, 16 }
  0xe1   : > { %1877 = vmatprep.mubr.bf16.mxu0 %v8850_v12 }
  0xe2   : > { %v1383_v59 = vrot.slane %v1381_v17, 1  ;;  %v1453_v17 = vrot.slane %v8807_v42, 1 }
  0xe4   : > { %v8874_v3 = vsel %vm1216_vm9, %v1379_v45, %v1383_v59  ;;  %v7859_v45 = vld [vmem:[#allocation7 + $0x210] sm:$0xff]   ;;  %v7864_v59 = vld [vmem:[#allocation7 + $0x208] sm:$0xff]  }
  0xe7   : > { %2264 = vmatmul.mubr.bf16.vlgmr.msra.gmra.mxu1 %v8790_v10 }
  0xe8   : > { %1878 = vmatmul.mubr.bf16.gmra.mxu0 %v8717_v33  ;;  %7501 = vmatpush3.bf16.msra.mxu1 %v8795_v30  ;;  %v1390_v33 = vrot.slane %v1388_v41, 1  ;;  %v7982_v30 = vld [vmem:[#allocation2 + $0xc] sm:$0xff]  }
  0xe9   : > { %1885 = vmatprep.mubr.bf16.mxu0 %v8863_v40  ;;  %2271 = vmatprep.mubr.bf16.mxu1 %v8482_v34  ;;  %v1400_v34 = vshll.u32 %v8819_v25, 16  ;;  %v7869_v41 = vld [vmem:[#allocation7 + $0x200] sm:$0xff]  }
  0xea   : > { %7502 = vmatprep.subr.bf16.mxu1 %v7847_v43  ;;  %v1391_v29 = vor.u32 %v1390_v33, %v1386_v56  ;;  %v1415_v56 = vor.u32 %v1414_v49, %v1410_v38  ;;  %v7865_v38 = vld [vmem:[#allocation7 + $0x1d0] sm:$0xff]   ;;  %v7867_v49 = vld [vmem:[#allocation7 + $0x1c8] sm:$0xff]  }
  0xeb   : > { %v1402_v46 = vrot.slane %v1400_v34, 1  ;;  %v8917_v34 = vld [vmem:[#allocation2 + $0x3c] sm:$0xff]  }
  0xec   : > { %7503 = vmatpush3.bf16.msra.mxu1 %v7847_v43  ;;  %v8888_v32 = vsel %vm1216_vm9, %v1391_v29, %v1395_v13  ;;  %v7857_v29 = vld [vmem:[#allocation7 + $0x1e8] sm:$0xff]   ;;  %v8922_v13 = vld [vmem:[#allocation2 + $0x48] sm:$0xff]  }
  0xed   : > { %7504 = vmatprep.subr.bf16.mxu1 %v7849_v60  ;;  %v1403_v10 = vor.u32 %v1402_v46, %v1398_v16  ;;  %v7855_v16 = vld [vmem:[#allocation7 + $0x1f0] sm:$0xff]   ;;  %v7863_v46 = vld [vmem:[#allocation7 + $0x198] sm:$0xff]  }
  0xef   : > { %2272 = vmatmul.mubr.bf16.gmra.mxu1 %v7982_v30  ;;  %v8898_v42 = vsel %vm1216_vm9, %v1403_v10, %v1407_v27  ;;  %v7853_v30 = vld [vmem:[#allocation7 + $0x1b8] sm:$0xff]   ;;  %v7866_v27 = vld [vmem:[#allocation7 + $0x190] sm:$0xff]   ;;  %v8946_v10 = vld [vmem:[#allocation2 + $0x78] sm:$0xff]  }
  0xf0   : > { %1886 = vmatmul.mubr.bf16.gmra.mxu0 %v8737_v18  ;;  %2279 = vmatprep.mubr.bf16.mxu1 %v8505_v1  ;;  %v1417_v18 = vshll.u32 %v8842_v36, 16  ;;  %v8892_v36 = vld [vmem:[#allocation2 + $0x18] sm:$0xff]  }
  0xf1   : > { %1893 = vmatprep.mubr.bf16.mxu0 %v8874_v3  ;;  %7505 = vmatpush3.bf16.msra.mxu1 %v7849_v60  ;;  %v8901_v60 = vld [vmem:[#allocation2 + $0x24] sm:$0xff]  }
  0xf2   : > { %7506 = vmatprep.subr.bf16.mxu1 %v7851_v2  ;;  %v1419_v43 = vrot.slane %v1417_v18, 1  ;;  %v7861_v18 = vld [vmem:[#allocation7 + $0x1a0] sm:$0xff]  }
  0xf4   : > { %v8907_v33 = vsel %vm1216_vm9, %v1415_v56, %v1419_v43  ;;  %v7870_v43 = vld [vmem:[#allocation7 + $0x1c0] sm:$0xff]  }
  0xf5   : > { %7507 = vmatpush3.bf16.msra.mxu1 %v7851_v2  ;;  %v1454_v2 = vsel %vm1451_vm10, %v1452_v39, %v1453_v17  ;;  %v8934_v39 = vld [vmem:[#allocation2 + $0x60] sm:$0xff]   ;;  %v7868_v17 = vld [vmem:[#allocation7 + $0x188] sm:$0xff]  }
  0xf6   : > { %7508 = vmatprep.subr.bf16.mxu1 %v7854_v23 }
  0xf7   : > { %2280 = vmatmul.mubr.bf16.gmra.mxu1 %v8892_v36 }
  0xf8   : > { %1894 = vmatmul.mubr.bf16.gmra.mxu0 %v8771_v28  ;;  %2287 = vmatprep.mubr.bf16.mxu1 %v8527_v24 }
  0xf9   : > { %1901 = vmatprep.mubr.bf16.mxu0 %v8888_v32  ;;  %7509 = vmatpush3.bf16.msra.mxu1 %v7854_v23  ;;  %v8928_v23 = vld [vmem:[#allocation2 + $0x54] sm:$0xff]  }
  0xfa   : > { %7510 = vmatprep.subr.bf16.mxu1 %v7859_v45 }
  0xfd   : > { %7511 = vmatpush3.bf16.msra.mxu1 %v7859_v45  ;;  %v8940_v45 = vld [vmem:[#allocation2 + $0x6c] sm:$0xff]  }
  0xfe   : > { %7512 = vmatprep.subr.bf16.mxu1 %v7864_v59 }
  0xff   : > { %2288 = vmatmul.mubr.bf16.gmra.mxu1 %v8901_v60 }
 0x100   : > { %1902 = vmatmul.mubr.bf16.gmra.mxu0 %v8777_v44  ;;  %2295 = vmatprep.mubr.bf16.mxu1 %v8562_v7 }
 0x101   : > { %1909 = vmatprep.mubr.bf16.mxu0 %v8898_v42  ;;  %7513 = vmatpush3.bf16.msra.mxu1 %v7864_v59  ;;  %v7871_v59 = vld [vmem:[#allocation7 + $0x180] sm:$0xff]  }
 0x102   : > { %7514 = vmatprep.subr.bf16.mxu1 %v7869_v41 }
 0x105   : > { %7515 = vmatpush3.bf16.msra.mxu1 %v7869_v41  ;;  %v8952_v41 = vld [vmem:[#allocation2 + $0x84] sm:$0xff]  }
 0x107   : > { %2296 = vmatmul.mubr.bf16.gmra.mxu1 %v8910_v4 }
 0x108   : > { %1910 = vmatmul.mubr.bf16.gmra.mxu0 %v8819_v25  ;;  %2303 = vmatprep.mubr.bf16.mxu1 %v8606_v21 }
 0x109   : > { %1917 = vmatprep.mubr.bf16.mxu0 %v8907_v33 }
 0x10f   : > { %2304 = vmatmul.mubr.bf16.gmra.mxu1 %v8917_v34 }
 0x110   : > { %1918 = vmatmul.mubr.bf16.gmra.mxu0 %v8836_v57  ;;  %2311 = vmatprep.mubr.bf16.mxu1 %v8666_v0  ;;  %v7858_v57 = vld [vmem:[#allocation7 + $0x1a8] sm:$0xff]  }
 0x111   : > { %7468 = vmatprep.mubr.bf16.mxu0 %v1454_v2 }
 0x117   : > { %2312 = vmatmul.mubr.bf16.gmra.mxu1 %v8922_v13 }
 0x118   : > { %7469 = vmatmul.mubr.bf16.vlgmr.msra.gmra.mxu0 %v8467_v14  ;;  %2319 = vmatprep.mubr.bf16.mxu1 %v8711_v58  ;;  %v7862_v14 = vld [vmem:[#allocation7 + $0x1d8] sm:$0xff]  }
 0x119   : > { %6861 = vmatpush3.bf16.msra.mxu0 %v7853_v30  ;;  %7472 = vmatprep.mubr.bf16.mxu0 %v8485_v35 }
 0x11a   : > { %6862 = vmatprep.subr.bf16.mxu0 %v7855_v16 }
 0x11d   : > { %6863 = vmatpush3.bf16.msra.mxu0 %v7856_v22 }
 0x11e   : > { %6864 = vmatprep.subr.bf16.mxu0 %v7857_v29 }
 0x11f   : > { %2320 = vmatmul.mubr.bf16.gmra.mxu1 %v8928_v23 }
 0x120   : > { %7473 = vmatmul.mubr.bf16.gmra.mxu0 %v8514_v6  ;;  %2327 = vmatprep.mubr.bf16.mxu1 %v8753_v53 }
 0x121   : > { %7476 = vmatprep.mubr.bf16.mxu0 %v8539_v9  ;;  %6865 = vmatpush3.bf16.msra.mxu0 %v7858_v57 }
 0x122   : > { %6866 = vmatprep.subr.bf16.mxu0 %v7860_v54 }
 0x125   : > { %6867 = vmatpush3.bf16.msra.mxu0 %v7861_v18  ;;  %v8960_v18 = vld [vmem:[#allocation2 + $0x90] sm:$0xff]  }
 0x126   : > { %6868 = vmatprep.subr.bf16.mxu0 %v7862_v14 }
 0x127   : > { %2328 = vmatmul.mubr.bf16.gmra.mxu1 %v8934_v39 }
 0x128   : > { %7477 = vmatmul.mubr.bf16.gmra.mxu0 %v8573_v31  ;;  %2335 = vmatprep.mubr.bf16.mxu1 %v8822_v11 }
 0x129   : > { %7480 = vmatprep.mubr.bf16.mxu0 %v8603_v20  ;;  %6869 = vmatpush3.bf16.msra.mxu0 %v7863_v46 }
 0x12a   : > { %6870 = vmatprep.subr.bf16.mxu0 %v7865_v38 }
 0x12d   : > { %6871 = vmatpush3.bf16.msra.mxu0 %v7866_v27 }
 0x12e   : > { %6872 = vmatprep.subr.bf16.mxu0 %v7867_v49 }
 0x12f   : > { %2336 = vmatmul.mubr.bf16.gmra.mxu1 %v8940_v45 }
 0x130   : > { %7481 = vmatmul.mubr.bf16.gmra.mxu0 %v8626_v51  ;;  %2343 = vmatprep.mubr.bf16.mxu1 %v8839_v62 }
 0x131   : > { %7484 = vmatprep.mubr.bf16.mxu0 %v8641_v8  ;;  %6873 = vmatpush3.bf16.msra.mxu0 %v7868_v17 }
 0x132   : > { %6874 = vmatprep.subr.bf16.mxu0 %v7870_v43 }
 0x135   : > { %6875 = vmatpush3.bf16.msra.mxu0 %v7871_v59 }
 0x137   : > { %2344 = vmatmul.mubr.bf16.gmra.mxu1 %v8946_v10 }
 0x138   : > { %7485 = vmatmul.mubr.bf16.gmra.mxu0 %v8681_v26  ;;  %2351 = vmatprep.mubr.bf16.mxu1 %v8850_v12 }
 0x139   : > { %7488 = vmatprep.mubr.bf16.mxu0 %v8698_v48 }
 0x13f   : > { %2352 = vmatmul.mubr.bf16.gmra.mxu1 %v8952_v41 }
 0x140   : > { %7489 = vmatmul.mubr.bf16.gmra.mxu0 %v8731_v5  ;;  %2359 = vmatprep.mubr.bf16.mxu1 %v8863_v40 }
 0x141   : > { %7492 = vmatprep.mubr.bf16.mxu0 %v8762_v63 }
 0x142   : > { %v7422_v56 = vpop.f32.mrf.mxu1 }
 0x143   : > { %v6604_v2 = vpop.f32.mrf.mxu0 }
 0x144   : > { %v1960_v30 = vpop.f32.mrf.mxu1 }
 0x145   : > { %v6605_v16 = vpop.f32.mrf.mxu0 }
 0x146   : > { %v6606_v22 = vadd.f32 %v6605_v16, %v6604_v2  ;;  %v7423_v57 = vpop.f32.mrf.mxu1 }
 0x147   : > { %v6607_v29 = vpop.f32.mrf.mxu0  ;;  %2360 = vmatmul.mubr.bf16.gmra.mxu1 %v8960_v18 }
 0x148   : > { %7493 = vmatmul.mubr.bf16.gmra.mxu0 %v8780_v55  ;;  %v8958_v54 = vadd.f32 %v6606_v22, %v1960_v30  ;;  %2367 = vmatprep.mubr.bf16.mxu1 %v8874_v3  ;;  %v1963_v38 = vpop.f32.mrf.mxu1 }
 0x149   : > { %7496 = vmatprep.mubr.bf16.mxu0 %v8802_v37  ;;  %v6608_v14 = vpop.f32.mrf.mxu0 }
 0x14a   : > { %v6609_v46 = vadd.f32 %v6608_v14, %v6607_v29 }
 0x14b   : > { %v6610_v27 = vpop.f32.mrf.mxu0 }
 0x14c   : > { %v8965_v49 = vadd.f32 %v6609_v46, %v1963_v38 }
 0x14d   : > { %v6611_v17 = vpop.f32.mrf.mxu0 }
 0x14e   : > { %v6612_v43 = vadd.f32 %v6611_v17, %v6610_v27 }
 0x14f   : > { %v7426_v59 = vpop.f32.mrf.mxu1  ;;  %v6613_v2 = vpop.f32.mrf.mxu0  ;;  %2368 = vmatmul.mubr.bf16.gmra.mxu1 %v8771_v28 }
 0x150   : > { %7497 = vmatmul.mubr.bf16.gmra.mxu0 %v8834_v47  ;;  %v8968_v30 = vadd.f32 %v7422_v56, %v6612_v43  ;;  %2375 = vmatprep.mubr.bf16.mxu1 %v8888_v32 }
 0x151   : > { %2778 = vmatprep.mubr.bf16.mxu0 %v8505_v1  ;;  %v6614_v16 = vpop.f32.mrf.mxu0  ;;  %v1976_v29 = vpop.f32.mrf.mxu1 }
 0x152   : > { %v6615_v22 = vadd.f32 %v6614_v16, %v6613_v2 }
 0x153   : > { %v6616_v14 = vpop.f32.mrf.mxu0  ;;  %v7427_v17 = vpop.f32.mrf.mxu1 }
 0x154   : > { %v8973_v46 = vadd.f32 %v7423_v57, %v6615_v22 }
 0x155   : > { %v6617_v38 = vpop.f32.mrf.mxu0  ;;  %v1979_v43 = vpop.f32.mrf.mxu1 }
 0x156   : > { %v6618_v27 = vadd.f32 %v6617_v38, %v6616_v14 }
 0x157   : > { %v6619_v50 = vpop.f32.mrf.mxu0  ;;  %2376 = vmatmul.mubr.bf16.gmra.mxu1 %v8777_v44 }
 0x158   : > { %2779 = vmatmul.mubr.bf16.vlgmr.msra.gmra.mxu0 %v8892_v36  ;;  %v8976_v56 = vadd.f32 %v6618_v27, %v1976_v29  ;;  %2383 = vmatprep.mubr.bf16.mxu1 %v8898_v42 }
 0x159   : > { %2786 = vmatprep.mubr.bf16.mxu0 %v8527_v24  ;;  %v6620_v1 = vpop.f32.mrf.mxu0 }
 0x15a   : > { %v6621_v28 = vadd.f32 %v6620_v1, %v6619_v50 }
 0x15b   : > { %v6622_v2 = vpop.f32.mrf.mxu0 }
 0x15c   : > { %v8981_v57 = vadd.f32 %v6621_v28, %v1979_v43 }
 0x15d   : > { %v6623_v16 = vpop.f32.mrf.mxu0  ;;  %v7430_v14 = vpop.f32.mrf.mxu1 }
 0x15e   : > { %v6624_v22 = vadd.f32 %v6623_v16, %v6622_v2 }
 0x15f   : > { %v6625_v38 = vpop.f32.mrf.mxu0  ;;  %2384 = vmatmul.mubr.bf16.gmra.mxu1 %v8819_v25  ;;  %v1992_v24 = vpop.f32.mrf.mxu1 }
 0x160   : > { %2787 = vmatmul.mubr.bf16.gmra.mxu0 %v8901_v60  ;;  %v8984_v36 = vadd.f32 %v7426_v59, %v6624_v22  ;;  %7516 = vmatprep.mubr.bf16.mxu1 %v8485_v35 }
 0x161   : > { %2794 = vmatprep.mubr.bf16.mxu0 %v8562_v7  ;;  %v6626_v44 = vpop.f32.mrf.mxu0  ;;  %v7431_v29 = vpop.f32.mrf.mxu1 }
 0x162   : > { %v6627_v50 = vadd.f32 %v6626_v44, %v6625_v38 }
 0x163   : > { %v6628_v27 = vpop.f32.mrf.mxu0  ;;  %v1995_v28 = vpop.f32.mrf.mxu1 }
 0x164   : > { %v8989_v1 = vadd.f32 %v7427_v17, %v6627_v50 }
 0x165   : > { %v6629_v43 = vpop.f32.mrf.mxu0 }
 0x166   : > { %v6630_v2 = vadd.f32 %v6629_v43, %v6628_v27 }
 0x167   : > { %v6631_v16 = vpop.f32.mrf.mxu0  ;;  %7517 = vmatmul.mubr.bf16.vlgmr.msra.gmra.mxu1 %v8514_v6 }
 0x168   : > { %2795 = vmatmul.mubr.bf16.gmra.mxu0 %v8910_v4  ;;  %v8992_v60 = vadd.f32 %v6630_v2, %v1992_v24  ;;  %7520 = vmatprep.mubr.bf16.mxu1 %v8539_v9 }
 0x169   : > { %2802 = vmatprep.mubr.bf16.mxu0 %v8606_v21  ;;  %v7434_v7 = vpop.f32.mrf.mxu1  ;;  %v6632_v25 = vpop.f32.mrf.mxu0 }
 0x16a   : > { %v6633_v35 = vadd.f32 %v6632_v25, %v6631_v16 }
 0x16b   : > { %v2008_v59 = vpop.f32.mrf.mxu1 }
 0x16c   : > { %v8997_v17 = vadd.f32 %v6633_v35, %v1995_v28 }
 0x16d   : > { %v7435_v22 = vpop.f32.mrf.mxu1 }
 0x16f   : > { %7521 = vmatmul.mubr.bf16.gmra.mxu1 %v8573_v31  ;;  %v2011_v21 = vpop.f32.mrf.mxu1 }
 0x170   : > { %2803 = vmatmul.mubr.bf16.gmra.mxu0 %v8917_v34  ;;  %v6634_v38 = vpop.f32.mrf.mxu0  ;;  %7524 = vmatprep.mubr.bf16.mxu1 %v8603_v20 }
 0x171   : > { %2810 = vmatprep.mubr.bf16.mxu0 %v8666_v0 }
 0x172   : > { %v6635_v6 = vpop.f32.mrf.mxu0 }
 0x173   : > { %v6636_v4 = vadd.f32 %v6635_v6, %v6634_v38 }
 0x174   : > { %v6637_v24 = vpop.f32.mrf.mxu0 }
 0x175   : > { %v9003_v44 = vadd.f32 %v7430_v14, %v6636_v4 }
 0x176   : > { %v6638_v9 = vpop.f32.mrf.mxu0  ;;  %v9005_v50 = vpop.f32.mrf.mxu1 }
 0x177   : > { %v6639_v27 = vadd.f32 %v6638_v9, %v6637_v24  ;;  %7525 = vmatmul.mubr.bf16.gmra.mxu1 %v8626_v51 }
 0x178   : > { %2811 = vmatmul.mubr.bf16.gmra.mxu0 %v8922_v13  ;;  %7528 = vmatprep.mubr.bf16.mxu1 %v8641_v8  ;;  %v2024_v20 = vpop.f32.mrf.mxu1 }
 0x179   : > { %2818 = vmatprep.mubr.bf16.mxu0 %v8711_v58  ;;  %v9010_v31 = vadd.f32 %v7431_v29, %v6639_v27 }
 0x17a   : > { %v9013_v28 = vpop.f32.mrf.mxu1 }
 0x17b   : > { %v6640_v0 = vpop.f32.mrf.mxu0 }
 0x17c   : > { %v9021_v13 = vpop.f32.mrf.mxu1 }
 0x17d   : > { %v6641_v34 = vpop.f32.mrf.mxu0 }
 0x17e   : > { %v6642_v14 = vadd.f32 %v6641_v34, %v6640_v0 }
 0x17f   : > { %v6643_v43 = vpop.f32.mrf.mxu0  ;;  %7529 = vmatmul.mubr.bf16.gmra.mxu1 %v8681_v26 }
 0x180   : > { %2819 = vmatmul.mubr.bf16.gmra.mxu0 %v8928_v23  ;;  %v9018_v51 = vadd.f32 %v6642_v14, %v2008_v59  ;;  %7532 = vmatprep.mubr.bf16.mxu1 %v8698_v48  ;;  %v7877_v14 = vld [vmem:[#allocation9 + $0x130] sm:$0xff]  }
 0x181   : > { %2826 = vmatprep.mubr.bf16.mxu0 %v8753_v53  ;;  %v6644_v58 = vpop.f32.mrf.mxu0 }
 0x182   : > { %v6645_v8 = vadd.f32 %v6644_v58, %v6643_v43  ;;  %v7878_v43 = vld [vmem:[#allocation9 + $0xf0] sm:$0xff]  }
 0x184   : > { %v9023_v29 = vadd.f32 %v6645_v8, %v2011_v21 }
 0x186   : > { %v9025_v2 = vpop.f32.mrf.mxu1  ;;  %v6646_v16 = vpop.f32.mrf.mxu0 }
 0x187   : > { %7533 = vmatmul.mubr.bf16.gmra.mxu1 %v8731_v5 }
 0x188   : > { %2827 = vmatmul.mubr.bf16.gmra.mxu0 %v8934_v39  ;;  %v9028_v23 = vpop.f32.mrf.mxu1  ;;  %v6647_v26 = vpop.f32.mrf.mxu0  ;;  %7536 = vmatprep.mubr.bf16.mxu1 %v8762_v63 }
 0x189   : > { %2834 = vmatprep.mubr.bf16.mxu0 %v8822_v11  ;;  %v6648_v53 = vadd.f32 %v6647_v26, %v6646_v16  ;;  %v9049_v11 = vld [vmem:[#allocation2 + $0xcc] sm:$0xff]  }
 0x18a   : > { %v9033_v48 = vpop.f32.mrf.mxu1  ;;  %v6649_v25 = vpop.f32.mrf.mxu0 }
 0x18b   : > { %v9035_v35 = vadd.f32 %v7434_v7, %v6648_v53  ;;  %v9051_v7 = vld [vmem:[#allocation2 + $0xd4] ss:$0 sps:$4 sm:$0x11]  }
 0x18c   : > { %v6650_v59 = vpop.f32.mrf.mxu0  ;;  %v9037_v38 = vpop.f32.mrf.mxu1  ;;  %v1504_v24 = vrot.slane %v9051_v7, 1 }
 0x18d   : > { %v6651_v6 = vadd.f32 %v6650_v59, %v6649_v25 }
 0x18f   : > { %v9040_v39 = vadd.f32 %v7435_v22, %v6651_v6  ;;  %7537 = vmatmul.mubr.bf16.gmra.mxu1 %v8780_v55  ;;  %v7875_v22 = vld [vmem:[#allocation9 + $0xf8] sm:$0xff]  }
 0x190   : > { %2835 = vmatmul.mubr.bf16.gmra.mxu0 %v8940_v45  ;;  %7540 = vmatprep.mubr.bf16.mxu1 %v8802_v37  ;;  %v7874_v45 = vld [vmem:[#allocation9 + $0x138] sm:$0xff]   ;;  %v1503_v37 = vrot.slane %v9049_v11, 1 }
 0x191   : > { %2842 = vmatprep.mubr.bf16.mxu0 %v8839_v62  ;;  %v9044_v5 = vpop.f32.mrf.mxu1  ;;  %v7876_v55 = vld [vmem:[#allocation9 + $0x178] sm:$0xff]   ;;  %6996 = vmatprep.subr.bf16.mxu1 %v7874_v45 }
 0x192   : > { %6997 = vmatpush3.bf16.msra.mxu1 %v7875_v22  ;;  %7548 = vmatprep.subr.bf16.mxu0 %v7876_v55 }
 0x193   : > { %v9047_v63 = vpop.f32.mrf.mxu1  ;;  %7549 = vmatpush3.bf16.msra.mxu0 %v7876_v55  ;;  %6998 = vmatprep.subr.bf16.mxu1 %v7877_v14 }
 0x195   : > { %v9054_v4 = vpop.f32.mrf.mxu1 }
 0x196   : > { %6999 = vmatpush3.bf16.msra.mxu1 %v7878_v43 }
 0x197   : > { %7541 = vmatmul.mubr.bf16.gmra.mxu1 %v8834_v47  ;;  %v9061_v27 = vpop.f32.mrf.mxu1  ;;  %v1505_v47 = vsel %vm1451_vm10, %v1503_v37, %v1504_v24 }
 0x198   : > { %v6652_v21 = vpop.f32.mrf.mxu0  ;;  %2843 = vmatmul.mubr.bf16.gmra.mxu0 %v8946_v10  ;;  %7544 = vmatprep.mubr.bf16.mxu1 %v8855_v52 }
 0x199   : > { %2850 = vmatprep.mubr.bf16.mxu0 %v8850_v12 }
 0x19a   : > { %v6653_v62 = vpop.f32.mrf.mxu0 }
 0x19b   : > { %v6654_v9 = vadd.f32 %v6653_v62, %v6652_v21 }
 0x19c   : > { %v6655_v10 = vpop.f32.mrf.mxu0 }
 0x19d   : > { %v9063_v0 = vadd.f32 %v6654_v9, %v2024_v20  ;;  %v7880_v9 = vld [vmem:[#allocation9 + $0xe8] sm:$0xff]  }
 0x19e   : > { %v6656_v12 = vpop.f32.mrf.mxu0 }
 0x19f   : > { %v9066_v34 = vadd.f32 %v6656_v12, %v6655_v10  ;;  %v9069_v58 = vpop.f32.mrf.mxu1  ;;  %7545 = vmatmul.mubr.bf16.gmra.mxu1 %v1505_v47  ;;  %v7881_v10 = vld [vmem:[#allocation9 + $0x170] sm:$0xff]  }
 0x1a0   : > { %v6658_v52 = vpop.f32.mrf.mxu0  ;;  %2851 = vmatmul.mubr.bf16.gmra.mxu0 %v8952_v41  ;;  %7550 = vmatprep.subr.bf16.mxu0 %v7881_v10 }
 0x1a1   : > { %2858 = vmatprep.mubr.bf16.mxu0 %v8863_v40  ;;  %v9072_v16 = vpop.f32.mrf.mxu1  ;;  %7551 = vmatpush3.bf16.msra.mxu0 %v7881_v10  ;;  %v7995_v10 = vld [vmem:[#allocation2 + $0xa8] sm:$0xff]  }
 0x1a2   : > { %v6659_v8 = vpop.f32.mrf.mxu0 }
 0x1a3   : > { %v6660_v20 = vadd.f32 %v6659_v8, %v6658_v52  ;;  %v9074_v53 = vpop.f32.mrf.mxu1  ;;  %v7994_v8 = vld [vmem:[#allocation2 + $0x9c] sm:$0xff]  }
 0x1a4   : > { %v6661_v26 = vpop.f32.mrf.mxu0 }
 0x1a5   : > { %v9077_v25 = vadd.f32 %v9005_v50, %v6660_v20  ;;  %v9079_v59 = vpop.f32.mrf.mxu1  ;;  %v7879_v50 = vld [vmem:[#allocation9 + $0x128] sm:$0xff]  }
 0x1a6   : > { %v6662_v41 = vpop.f32.mrf.mxu0  ;;  %7000 = vmatprep.subr.bf16.mxu1 %v7879_v50 }
 0x1a7   : > { %v6663_v6 = vadd.f32 %v6662_v41, %v6661_v26  ;;  %v6740_v40 = vpop.f32.mrf.mxu1  ;;  %7001 = vmatpush3.bf16.msra.mxu1 %v7880_v9 }
 0x1a8   : > { %v6664_v21 = vpop.f32.mrf.mxu0  ;;  %2859 = vmatmul.mubr.bf16.gmra.mxu0 %v8960_v18 }
 0x1a9   : > { %v9083_v45 = vadd.f32 %v9013_v28, %v6663_v6  ;;  %2866 = vmatprep.mubr.bf16.mxu0 %v8874_v3  ;;  %v6741_v55 = vpop.f32.mrf.mxu1 }
 0x1aa   : > { %v6665_v22 = vpop.f32.mrf.mxu0  ;;  %v6742_v37 = vadd.f32 %v6741_v55, %v6740_v40  ;;  %v3218_v40 = vld [vmem:[#allocation3 + $0xc] sm:$0x1] }
 0x1ab   : > { %v6666_v62 = vadd.f32 %v6665_v22, %v6664_v21  ;;  %v6743_v12 = vpop.f32.mrf.mxu1 }
 0x1ac   : > { %v6667_v24 = vpop.f32.mrf.mxu0  ;;  %v9090_v18 = vadd.f32 %v6742_v37, %v8958_v54 }
 0x1ad   : > { %v9087_v47 = vadd.f32 %v6666_v62, %v9028_v23  ;;  %v6744_v28 = vpop.f32.mrf.mxu1  ;;  %v3219_v62 = vsel %vm8387_vm2, 0, %v3218_v40 }
 0x1ae   : > { %v6668_v52 = vpop.f32.mrf.mxu0  ;;  %v6745_v14 = vadd.f32 %v6744_v28, %v6743_v12  ;;  %3220 = vst [vmem:[#allocation3 + $0xc] sm:$0x1] %v3219_v62  ;;  %v1424_v28 = vshll.u32 %v9049_v11, 16 }
 0x1af   : > { %v9092_v3 = vadd.f32 %v6668_v52, %v6667_v24  ;;  %v6746_v20 = vpop.f32.mrf.mxu1 }
 0x1b0   : > { %v6670_v43 = vpop.f32.mrf.mxu0  ;;  %2867 = vmatmul.mubr.bf16.gmra.mxu0 %v7994_v8  ;;  %v9096_v26 = vadd.f32 %v6745_v14, %v8965_v49 }
 0x1b1   : > { %2874 = vmatprep.mubr.bf16.mxu0 %v8888_v32  ;;  %v6747_v54 = vpop.f32.mrf.mxu1 }
 0x1b2   : > { %v6671_v23 = vpop.f32.mrf.mxu0  ;;  %v6748_v6 = vadd.f32 %v6747_v54, %v6746_v20 }
 0x1b3   : > { %v6672_v41 = vadd.f32 %v6671_v23, %v6670_v43  ;;  %v6749_v22 = vpop.f32.mrf.mxu1 }
 0x1b4   : > { %v6673_v21 = vpop.f32.mrf.mxu0  ;;  %v9104_v24 = vadd.f32 %v6748_v6, %v8968_v30  ;;  %v3266_v30 = vld [vmem:[#allocation3 + $0x14] sm:$0x1]  ;;  %v1422_v6 = vshrl.u32 %v9049_v11, 16 }
 0x1b5   : > { %v9099_v55 = vadd.f32 %v9025_v2, %v6672_v41  ;;  %v6750_v32 = vpop.f32.mrf.mxu1  ;;  %v3267_v20 = vsel %vm8393_vm4, 0, %v3266_v30  ;;  %v3269_v30 = vld [vmem:[#allocation3 + $0x20] sm:$0x1] }
 0x1b6   : > { %v6674_v37 = vpop.f32.mrf.mxu0  ;;  %v6751_v50 = vadd.f32 %v6750_v32, %v6749_v22  ;;  %3268 = vst [vmem:[#allocation3 + $0x14] sm:$0x1] %v3267_v20  ;;  %v3221_v22 = vld [vmem:[#allocation3 + $0x18] sm:$0x1]  ;;  %v7886_v32 = vld [vmem:[#allocation9 + $0x168] sm:$0xff]   ;;  %v3270_v20 = vsel %vm8393_vm4, 0, %v3269_v30 }
 0x1b7   : > { %v6675_v49 = vadd.f32 %v6674_v37, %v6673_v21  ;;  %v6752_v12 = vpop.f32.mrf.mxu1  ;;  %v1429_v21 = vshll.u32 %v9051_v7, 16  ;;  %v3222_v37 = vsel %vm8387_vm2, 0, %v3221_v22  ;;  %7552 = vmatprep.subr.bf16.mxu0 %v7886_v32  ;;  %3271 = vst [vmem:[#allocation3 + $0x20] sm:$0x1] %v3270_v20  ;;  %v7887_v30 = vld [vmem:[#allocation9 + $0x110] sm:$0xff]  }
 0x1b8   : > { %v6676_v9 = vpop.f32.mrf.mxu0  ;;  %2875 = vmatmul.mubr.bf16.gmra.mxu0 %v7995_v10  ;;  %v9112_v14 = vadd.f32 %v6751_v50, %v8973_v46  ;;  %v1426_v46 = vrot.slane %v1424_v28, 1  ;;  %3223 = vst [vmem:[#allocation3 + $0x18] sm:$0x1] %v3222_v37 }
 0x1b9   : > { %v9107_v52 = vadd.f32 %v9033_v48, %v6675_v49  ;;  %2882 = vmatprep.mubr.bf16.mxu0 %v8898_v42  ;;  %v6753_v43 = vpop.f32.mrf.mxu1  ;;  %7553 = vmatpush3.bf16.msra.mxu0 %v7886_v32 }
 0x1ba   : > { %v6677_v2 = vpop.f32.mrf.mxu0  ;;  %v6754_v23 = vadd.f32 %v6753_v43, %v6752_v12  ;;  %v7883_v12 = vld [vmem:[#allocation9 + $0xe0] sm:$0xff]  }
 0x1bb   : > { %v6678_v8 = vadd.f32 %v6677_v2, %v6676_v9  ;;  %v6755_v48 = vpop.f32.mrf.mxu1  ;;  %v7882_v9 = vld [vmem:[#allocation9 + $0x120] sm:$0xff]   ;;  %v1431_v2 = vrot.slane %v1429_v21, 1 }
 0x1bc   : > { %v9116_v54 = vpop.f32.mrf.mxu0  ;;  %v9126_v40 = vadd.f32 %v6754_v23, %v8976_v56  ;;  %v1427_v56 = vor.u32 %v1426_v46, %v1422_v6  ;;  %7002 = vmatprep.subr.bf16.mxu1 %v7882_v9  ;;  %v7884_v23 = vld [vmem:[#allocation9 + $0x118] sm:$0xff]   ;;  %v7889_v6 = vld [vmem:[#allocation9 + $0x160] sm:$0xff]  }
 0x1bd   : > { %v9119_v41 = vadd.f32 %v6678_v8, %v9047_v63  ;;  %v6756_v62 = vpop.f32.mrf.mxu1  ;;  %v7996_v63 = vld [vmem:[#allocation2 + $0xb4] sm:$0xff]   ;;  %7003 = vmatpush3.bf16.msra.mxu1 %v7883_v12  ;;  %7554 = vmatprep.subr.bf16.mxu0 %v7889_v6  ;;  %v7892_v9 = vld [vmem:[#allocation9 + $0x158] sm:$0xff]   ;;  %v7997_v12 = vld [vmem:[#allocation2 + $0xc0] sm:$0xff]  }
 0x1be   : > { %v9121_v42 = vpop.f32.mrf.mxu0  ;;  %v6757_v49 = vadd.f32 %v6756_v62, %v6755_v48  ;;  %v7885_v48 = vld [vmem:[#allocation9 + $0xd8] sm:$0xff]   ;;  %v3224_v62 = vld [vmem:[#allocation3 + $0x24] sm:$0x1]  ;;  %7004 = vmatprep.subr.bf16.mxu1 %v7884_v23  ;;  %v1432_v32 = vsel %vm1216_vm9, %v1427_v56, %v1431_v2  ;;  %7555 = vmatpush3.bf16.msra.mxu0 %v7889_v6  ;;  %v7888_v56 = vld [vmem:[#allocation9 + $0xd0] sm:$0xff]  }
 0x1bf   : > { %v6758_v10 = vpop.f32.mrf.mxu1  ;;  %v3225_v21 = vsel %vm8387_vm2, 0, %v3224_v62  ;;  %7556 = vmatprep.subr.bf16.mxu0 %v7892_v9  ;;  %v7890_v62 = vld [vmem:[#allocation9 + $0x108] sm:$0xff]  }
 0x1c0   : > { %v6682_v50 = vpop.f32.mrf.mxu0  ;;  %2883 = vmatmul.mubr.bf16.gmra.mxu0 %v7996_v63  ;;  %v9132_v28 = vadd.f32 %v6757_v49, %v8981_v57  ;;  %3226 = vst [vmem:[#allocation3 + $0x24] sm:$0x1] %v3225_v21  ;;  %v3227_v21 = vld [vmem:[#allocation3 + $0x30] sm:$0x1] }
 0x1c1   : > { %2890 = vmatprep.mubr.bf16.mxu0 %v8907_v33  ;;  %v6759_v43 = vpop.f32.mrf.mxu1  ;;  %7005 = vmatpush3.bf16.msra.mxu1 %v7885_v48 }
 0x1c2   : > { %v6683_v7 = vpop.f32.mrf.mxu0  ;;  %v6760_v33 = vadd.f32 %v6759_v43, %v6758_v10  ;;  %7006 = vmatprep.subr.bf16.mxu1 %v7887_v30  ;;  %7557 = vmatpush3.bf16.msra.mxu0 %v7892_v9  ;;  %v7891_v9 = vld [vmem:[#allocation9 + $0xc8] sm:$0xff]   ;;  %v7895_v30 = vld [vmem:[#allocation9 + $0xc0] sm:$0xff]  }
 0x1c3   : > { %v6684_v8 = vadd.f32 %v6683_v7, %v6682_v50  ;;  %v6761_v46 = vpop.f32.mrf.mxu1  ;;  %v3272_v7 = vld [vmem:[#allocation3 + $0x2c] sm:$0x1] }
 0x1c4   : > { %v6685_v22 = vpop.f32.mrf.mxu0  ;;  %v9143_v49 = vadd.f32 %v6760_v33, %v8984_v36  ;;  %v3273_v36 = vsel %vm8393_vm4, 0, %v3272_v7  ;;  %v7893_v33 = vld [vmem:[#allocation9 + $0x150] sm:$0xff]  }
 0x1c5   : > { %v9137_v57 = vadd.f32 %v9044_v5, %v6684_v8  ;;  %v6762_v50 = vpop.f32.mrf.mxu1  ;;  %3274 = vst [vmem:[#allocation3 + $0x2c] sm:$0x1] %v3273_v36  ;;  %7007 = vmatpush3.bf16.msra.mxu1 %v7888_v56  ;;  %7558 = vmatprep.subr.bf16.mxu0 %v7893_v33  ;;  %v3230_v56 = vld [vmem:[#allocation3 + $0x3c] sm:$0x1] }
 0x1c6   : > { %v6686_v37 = vpop.f32.mrf.mxu0  ;;  %v6763_v10 = vadd.f32 %v6762_v50, %v6761_v46  ;;  %v3228_v50 = vsel %vm8387_vm2, 0, %v3227_v21  ;;  %7008 = vmatprep.subr.bf16.mxu1 %v7890_v62  ;;  %7559 = vmatpush3.bf16.msra.mxu0 %v7893_v33  ;;  %v7899_v33 = vld [vmem:[#allocation9 + $0x140] sm:$0xff]  }
 0x1c7   : > { %v6687_v63 = vadd.f32 %v6686_v37, %v6685_v22  ;;  %v6764_v43 = vpop.f32.mrf.mxu1  ;;  %v3275_v37 = vld [vmem:[#allocation3 + $0x38] sm:$0x1]  ;;  %3229 = vst [vmem:[#allocation3 + $0x30] sm:$0x1] %v3228_v50 }
 0x1c8   : > { %v6688_v5 = vpop.f32.mrf.mxu0  ;;  %2891 = vmatmul.mubr.bf16.gmra.mxu0 %v7997_v12  ;;  %v9151_v20 = vadd.f32 %v6763_v10, %v8989_v1 }
 0x1c9   : > { %v9146_v8 = vadd.f32 %v9054_v4, %v6687_v63  ;;  %2898 = vmatprep.mubr.bf16.mxu0 %v1432_v32  ;;  %v6765_v23 = vpop.f32.mrf.mxu1  ;;  %v3276_v63 = vsel %vm8393_vm4, 0, %v3275_v37  ;;  %7009 = vmatpush3.bf16.msra.mxu1 %v7891_v9 }
 0x1ca   : > { %v6689_v2 = vpop.f32.mrf.mxu0  ;;  %v6766_v22 = vadd.f32 %v6765_v23, %v6764_v43  ;;  %3277 = vst [vmem:[#allocation3 + $0x38] sm:$0x1] %v3276_v63 }
 0x1cb   : > { %v6690_v48 = vadd.f32 %v6689_v2, %v6688_v5  ;;  %v6767_v6 = vpop.f32.mrf.mxu1 }
 0x1cc   : > { %v9153_v4 = vpop.f32.mrf.mxu0  ;;  %v9161_v32 = vadd.f32 %v6766_v22, %v8992_v60  ;;  %v7894_v60 = vld [vmem:[#allocation9 + $0x100] sm:$0xff]  }
 0x1cd   : > { %v9156_v46 = vadd.f32 %v6690_v48, %v9072_v16  ;;  %v6768_v10 = vpop.f32.mrf.mxu1  ;;  %v7896_v16 = vld [vmem:[#allocation9 + $0x148] sm:$0xff]   ;;  %7010 = vmatprep.subr.bf16.mxu1 %v7894_v60  ;;  %v3231_v48 = vsel %vm8387_vm2, 0, %v3230_v56  ;;  %v3233_v60 = vld [vmem:[#allocation3 + $0x48] sm:$0x1] }
 0x1ce   : > { %v9158_v1 = vpop.f32.mrf.mxu0  ;;  %v6769_v5 = vadd.f32 %v6768_v10, %v6767_v6  ;;  %7560 = vmatprep.subr.bf16.mxu0 %v7896_v16  ;;  %3232 = vst [vmem:[#allocation3 + $0x3c] sm:$0x1] %v3231_v48  ;;  %7011 = vmatpush3.bf16.msra.mxu1 %v7895_v30  ;;  %v3278_v10 = vld [vmem:[#allocation3 + $0x44] sm:$0x1]  ;;  %v3234_v30 = vsel %vm8387_vm2, 0, %v3233_v60 }
 0x1cf   : > { %v6770_v7 = vpop.f32.mrf.mxu1  ;;  %7561 = vmatpush3.bf16.msra.mxu0 %v7896_v16  ;;  %3235 = vst [vmem:[#allocation3 + $0x48] sm:$0x1] %v3234_v30  ;;  %v3236_v30 = vld [vmem:[#allocation3 + $0x54] sm:$0x1] }
 0x1d0   : > { %v6694_v12 = vpop.f32.mrf.mxu0  ;;  %2899 = vmatmul.mubr.bf16.gmra.mxu0 %v9049_v11  ;;  %v9169_v36 = vadd.f32 %v6769_v5, %v8997_v17  ;;  %7562 = vmatprep.subr.bf16.mxu0 %v7899_v33 }
 0x1d1   : > { %v6771_v2 = vpop.f32.mrf.mxu1 }
 0x1d2   : > { %v6695_v43 = vpop.f32.mrf.mxu0  ;;  %v6772_v22 = vadd.f32 %v6771_v2, %v6770_v7 }
 0x1d3   : > { %v6696_v23 = vadd.f32 %v6695_v43, %v6694_v12  ;;  %v6773_v62 = vpop.f32.mrf.mxu1  ;;  %7563 = vmatpush3.bf16.msra.mxu0 %v7899_v33 }
 0x1d4   : > { %v6697_v11 = vpop.f32.mrf.mxu0  ;;  %v2306_v21 = vadd.f32 %v6772_v22, %v9003_v44 }
 0x1d5   : > { %v9174_v6 = vadd.f32 %v9069_v58, %v6696_v23  ;;  %v6774_v37 = vpop.f32.mrf.mxu1  ;;  %v3279_v58 = vsel %vm8393_vm4, 0, %v3278_v10 }
 0x1d6   : > { %v6698_v17 = vpop.f32.mrf.mxu0  ;;  %v6775_v63 = vadd.f32 %v6774_v37, %v6773_v62  ;;  %3280 = vst [vmem:[#allocation3 + $0x44] sm:$0x1] %v3279_v58 }
 0x1d7   : > { %v6699_v50 = vadd.f32 %v6698_v17, %v6697_v11  ;;  %v6776_v16 = vpop.f32.mrf.mxu1 }
 0x1d8   : > { %v7470_v9 = vpop.f32.mrf.mxu0  ;;  %v2309_v44 = vadd.f32 %v6775_v63, %v9010_v31 }
 0x1d9   : > { %v9178_v5 = vadd.f32 %v9074_v53, %v6699_v50  ;;  %v9181_v12 = vadd.f32 %v7470_v9, %v9104_v24  ;;  %v6777_v43 = vpop.f32.mrf.mxu1  ;;  %v3281_v53 = vld [vmem:[#allocation3 + $0x50] sm:$0x1] }
 0x1da   : > { %v2426_v7 = vpop.f32.mrf.mxu0  ;;  %v6778_v2 = vadd.f32 %v6777_v43, %v6776_v16  ;;  %v3282_v23 = vsel %vm8393_vm4, 0, %v3281_v53 }
 0x1db   : > { %v9189_v56 = vadd.f32 %v2426_v7, %v9090_v18  ;;  %v6779_v48 = vpop.f32.mrf.mxu1  ;;  %3283 = vst [vmem:[#allocation3 + $0x50] sm:$0x1] %v3282_v23 }
 0x1dc   : > { %v7471_v24 = vpop.f32.mrf.mxu0  ;;  %v2314_v22 = vadd.f32 %v6778_v2, %v9018_v51 }
 0x1dd   : > { %v9194_v33 = vadd.f32 %v7471_v24, %v9112_v14  ;;  %v6780_v11 = vpop.f32.mrf.mxu1 }
 0x1de   : > { %v9196_v31 = vpop.f32.mrf.mxu0  ;;  %v6781_v62 = vadd.f32 %v6780_v11, %v6779_v48 }
 0x1df   : > { %v6782_v17 = vpop.f32.mrf.mxu1 }
 0x1e0   : > { %v7474_v18 = vpop.f32.mrf.mxu0  ;;  %v9203_v63 = vadd.f32 %v6781_v62, %v9023_v29  ;;  %v3237_v29 = vsel %vm8387_vm2, 0, %v3236_v30 }
 0x1e1   : > { %v9200_v37 = vadd.f32 %v7474_v18, %v9143_v49  ;;  %v6783_v9 = vpop.f32.mrf.mxu1  ;;  %v9214_v49 = vld [vmem:[#allocation9 + $0xb8] sm:$0xff]   ;;  %3238 = vst [vmem:[#allocation3 + $0x54] sm:$0x1] %v3237_v29  ;;  %v3284_v18 = vld [vmem:[#allocation3 + $0x5c] sm:$0x1] }
 0x1e2   : > { %v2442_v50 = vpop.f32.mrf.mxu0  ;;  %v6784_v10 = vadd.f32 %v6783_v9, %v6782_v17  ;;  %7596 = vmatprep.subr.bf16.mxu1 %v9214_v49  ;;  %v3285_v9 = vsel %vm8393_vm4, 0, %v3284_v18 }
 0x1e3   : > { %v9206_v14 = vadd.f32 %v2442_v50, %v9126_v40  ;;  %v6785_v58 = vpop.f32.mrf.mxu1  ;;  %3286 = vst [vmem:[#allocation3 + $0x5c] sm:$0x1] %v3285_v9 }
 0x1e4   : > { %v7475_v16 = vpop.f32.mrf.mxu0  ;;  %v2322_v7 = vadd.f32 %v6784_v10, %v9035_v35 }
 0x1e5   : > { %v9209_v51 = vadd.f32 %v7475_v16, %v9151_v20  ;;  %v6786_v43 = vpop.f32.mrf.mxu1 }
 0x1e6   : > { %v9211_v60 = vpop.f32.mrf.mxu0  ;;  %v6787_v53 = vadd.f32 %v6786_v43, %v6785_v58 }
 0x1e7   : > { %v6788_v2 = vpop.f32.mrf.mxu1 }
 0x1e8   : > { %v7478_v40 = vpop.f32.mrf.mxu0  ;;  %v2325_v23 = vadd.f32 %v6787_v53, %v9040_v39  ;;  %v3239_v39 = vld [vmem:[#allocation3 + $0x60] sm:$0x1]  ;;  %v3287_v53 = vld [vmem:[#allocation3 + $0x68] sm:$0x1] }
 0x1e9   : > { %v9219_v24 = vadd.f32 %v7478_v40, %v2306_v21  ;;  %v6789_v48 = vpop.f32.mrf.mxu1  ;;  %v3240_v43 = vsel %vm8387_vm2, 0, %v3239_v39 }
 0x1ea   : > { %v2458_v20 = vpop.f32.mrf.mxu0  ;;  %v6790_v11 = vadd.f32 %v6789_v48, %v6788_v2  ;;  %3241 = vst [vmem:[#allocation3 + $0x60] sm:$0x1] %v3240_v43 }
 0x1eb   : > { %v9223_v35 = vadd.f32 %v2458_v20, %v9161_v32  ;;  %v6791_v17 = vpop.f32.mrf.mxu1  ;;  %v2028_v32 = vadd.f32 %v9066_v34, %v9021_v13 }
 0x1ec   : > { %v7479_v62 = vpop.f32.mrf.mxu0  ;;  %v2330_v21 = vadd.f32 %v6790_v11, %v9063_v0  ;;  %v3288_v0 = vsel %vm8393_vm4, 0, %v3287_v53  ;;  %v3242_v11 = vld [vmem:[#allocation3 + $0x6c] sm:$0x1] }
 0x1ed   : > { %v9225_v50 = vadd.f32 %v7479_v62, %v2309_v44  ;;  %v6792_v16 = vpop.f32.mrf.mxu1  ;;  %3289 = vst [vmem:[#allocation3 + $0x68] sm:$0x1] %v3288_v0  ;;  %v3290_v0 = vld [vmem:[#allocation3 + $0x74] sm:$0x1] }
 0x1ee   : > { %v9229_v10 = vpop.f32.mrf.mxu0  ;;  %v6793_v58 = vadd.f32 %v6792_v16, %v6791_v17 }
 0x1ef   : > { %v6794_v44 = vpop.f32.mrf.mxu1 }
 0x1f0   : > { %v7482_v30 = vpop.f32.mrf.mxu0  ;;  %v9238_v2 = vadd.f32 %v6793_v58, %v2028_v32 }
 0x1f1   : > { %v9236_v29 = vadd.f32 %v7482_v30, %v2322_v7  ;;  %v6795_v20 = vpop.f32.mrf.mxu1  ;;  %v3243_v7 = vsel %vm8387_vm2, 0, %v3242_v11 }
 0x1f2   : > { %v2474_v40 = vpop.f32.mrf.mxu0  ;;  %v6796_v13 = vadd.f32 %v6795_v20, %v6794_v44  ;;  %3244 = vst [vmem:[#allocation3 + $0x6c] sm:$0x1] %v3243_v7 }
 0x1f3   : > { %v9242_v48 = vadd.f32 %v2474_v40, %v2314_v22  ;;  %v6797_v62 = vpop.f32.mrf.mxu1 }
 0x1f4   : > { %v7483_v34 = vpop.f32.mrf.mxu0  ;;  %v2338_v9 = vadd.f32 %v6796_v13, %v9077_v25  ;;  %v3291_v25 = vsel %vm8393_vm4, 0, %v3290_v0 }
 0x1f5   : > { %v9244_v18 = vadd.f32 %v7483_v34, %v2325_v23  ;;  %v6798_v16 = vpop.f32.mrf.mxu1  ;;  %3292 = vst [vmem:[#allocation3 + $0x74] sm:$0x1] %v3291_v25 }
 0x1f6   : > { %v9248_v17 = vpop.f32.mrf.mxu0  ;;  %v6799_v39 = vadd.f32 %v6798_v16, %v6797_v62  ;;  %v3245_v16 = vld [vmem:[#allocation3 + $0x78] sm:$0x1] }
 0x1f7   : > { %v6800_v22 = vpop.f32.mrf.mxu1 }
 0x1f8   : > { %v7486_v32 = vpop.f32.mrf.mxu0  ;;  %v2341_v43 = vadd.f32 %v6799_v39, %v9083_v45  ;;  %v2044_v45 = vadd.f32 %v9092_v3, %v9037_v38 }
 0x1f9   : > { %v9251_v58 = vadd.f32 %v7486_v32, %v2338_v9  ;;  %v6801_v44 = vpop.f32.mrf.mxu1 }
 0x1fa   : > { %v2490_v30 = vpop.f32.mrf.mxu0  ;;  %v6802_v53 = vadd.f32 %v6801_v44, %v6800_v22  ;;  %v3246_v22 = vsel %vm8387_vm2, 0, %v3245_v16 }
 0x1fb   : > { %v9254_v23 = vadd.f32 %v2490_v30, %v2330_v21  ;;  %v6803_v20 = vpop.f32.mrf.mxu1  ;;  %3247 = vst [vmem:[#allocation3 + $0x78] sm:$0x1] %v3246_v22  ;;  %v6681_v22 = vadd.f32 %v9121_v42, %v9116_v54 }
 0x1fc   : > { %v7487_v40 = vpop.f32.mrf.mxu0  ;;  %v2346_v11 = vadd.f32 %v6802_v53, %v9087_v47 }
 0x1fd   : > { %v9256_v34 = vadd.f32 %v7487_v40, %v2341_v43  ;;  %v6804_v62 = vpop.f32.mrf.mxu1  ;;  %v3293_v40 = vld [vmem:[#allocation3 + $0x80] sm:$0x1] }
 0x1fe   : > { %v9260_v13 = vpop.f32.mrf.mxu0  ;;  %v6805_v21 = vadd.f32 %v6804_v62, %v6803_v20  ;;  %v3294_v0 = vsel %vm8393_vm4, 0, %v3293_v40 }
 0x1ff   : > { %v6806_v9 = vpop.f32.mrf.mxu1  ;;  %3295 = vst [vmem:[#allocation3 + $0x80] sm:$0x1] %v3294_v0 }
 0x200   : > { %v7490_v7 = vpop.f32.mrf.mxu0  ;;  %v9265_v32 = vadd.f32 %v6805_v21, %v2044_v45  ;;  %v3248_v21 = vld [vmem:[#allocation3 + $0x84] sm:$0x1] }
 0x201   : > { %v6807_v30 = vpop.f32.mrf.mxu1 }
 0x202   : > { %v2506_v39 = vpop.f32.mrf.mxu0  ;;  %v6808_v47 = vadd.f32 %v6807_v30, %v6806_v9 }
 0x203   : > { %v9269_v43 = vadd.f32 %v2506_v39, %v2346_v11  ;;  %v6809_v53 = vpop.f32.mrf.mxu1  ;;  %v3249_v39 = vsel %vm8387_vm2, 0, %v3248_v21 }
 0x204   : > { %v7491_v44 = vpop.f32.mrf.mxu0  ;;  %v2354_v38 = vadd.f32 %v6808_v47, %v9099_v55  ;;  %3250 = vst [vmem:[#allocation3 + $0x84] sm:$0x1] %v3249_v39 }
 0x205   : > { %v6810_v20 = vpop.f32.mrf.mxu1 }
 0x206   : > { %v9272_v3 = vpop.f32.mrf.mxu0  ;;  %v6811_v25 = vadd.f32 %v6810_v20, %v6809_v53  ;;  %v9276_v62 = vadd.f32 %v7490_v7, %v2354_v38  ;;  %v3296_v7 = vld [vmem:[#allocation3 + $0x8c] sm:$0x1] }
 0x207   : > { %v6812_v11 = vpop.f32.mrf.mxu1  ;;  %v3297_v38 = vsel %vm8393_vm4, 0, %v3296_v7 }
 0x208   : > { %v7494_v45 = vpop.f32.mrf.mxu0  ;;  %v2357_v9 = vadd.f32 %v6811_v25, %v9107_v52  ;;  %3298 = vst [vmem:[#allocation3 + $0x8c] sm:$0x1] %v3297_v38  ;;  %v2060_v25 = vadd.f32 %v6681_v22, %v9061_v27 }
 0x209   : > { %v6813_v55 = vpop.f32.mrf.mxu1 }
 0x20a   : > { %v2522_v16 = vpop.f32.mrf.mxu0  ;;  %v6814_v30 = vadd.f32 %v6813_v55, %v6812_v11  ;;  %v9283_v47 = vadd.f32 %v7491_v44, %v2357_v9  ;;  %v3251_v9 = vld [vmem:[#allocation3 + $0x90] sm:$0x1] }
 0x20b   : > { %v6815_v40 = vpop.f32.mrf.mxu1  ;;  %v3252_v7 = vsel %vm8387_vm2, 0, %v3251_v9 }
 0x20c   : > { %10665 = vst [vmem:[#allocation15_spill] sm:$0xff] %v9283_v47  ;;  %v7495_v53 = vpop.f32.mrf.mxu0  ;;  %v2362_v52 = vadd.f32 %v6814_v30, %v9119_v41  ;;  %3253 = vst [vmem:[#allocation3 + $0x90] sm:$0x1] %v3252_v7 }
 0x20d   : > { %v6816_v20 = vpop.f32.mrf.mxu1 }
 0x20e   : > { %v9288_v0 = vpop.f32.mrf.mxu0  ;;  %v6817_v21 = vadd.f32 %v6816_v20, %v6815_v40  ;;  %v9291_v39 = vadd.f32 %v2522_v16, %v2362_v52  ;;  %v3299_v20 = vld [vmem:[#allocation3 + $0x98] sm:$0x1] }
 0x20f   : > { %v6818_v42 = vpop.f32.mrf.mxu1 }
 0x210   : > { %10666 = vst [vmem:[#allocation16_spill] sm:$0xff] %v9291_v39  ;;  %v7498_v54 = vpop.f32.mrf.mxu0  ;;  %v9293_v44 = vadd.f32 %v6817_v21, %v2060_v25  ;;  %v3300_v21 = vsel %vm8393_vm4, 0, %v3299_v20 }
 0x211   : > { %v6819_v55 = vpop.f32.mrf.mxu1  ;;  %3301 = vst [vmem:[#allocation3 + $0x98] sm:$0x1] %v3300_v21 }
 0x212   : > { %v2538_v11 = vpop.f32.mrf.mxu0  ;;  %v6820_v41 = vadd.f32 %v6819_v55, %v6818_v42 }
 0x213   : > { %v6821_v38 = vpop.f32.mrf.mxu1 }
 0x214   : > { %v7499_v30 = vpop.f32.mrf.mxu0  ;;  %v2370_v47 = vadd.f32 %v6820_v41, %v9137_v57  ;;  %v6693_v57 = vadd.f32 %v9158_v1, %v9153_v4 }
 0x215   : > { %v6822_v16 = vpop.f32.mrf.mxu1 }
 0x216   : > { %v9298_v27 = vpop.f32.mrf.mxu0  ;;  %v6823_v22 = vadd.f32 %v6822_v16, %v6821_v38  ;;  %v9300_v40 = vadd.f32 %v7494_v45, %v2370_v47  ;;  %v3254_v47 = vld [vmem:[#allocation3 + $0x9c] sm:$0x1] }
 0x217   : > { %10667 = vst [vmem:[#allocation17_spill] sm:$0xff] %v9298_v27  ;;  %v6824_v25 = vpop.f32.mrf.mxu1  ;;  %v3255_v20 = vsel %vm8387_vm2, 0, %v3254_v47 }
 0x218   : > { %10668 = vst [vmem:[#allocation18_spill] sm:$0xff] %v9300_v40  ;;  %v6876_v52 = vpop.f32.mrf.mxu0  ;;  %v2373_v9 = vadd.f32 %v6823_v22, %v9146_v8  ;;  %3256 = vst [vmem:[#allocation3 + $0x9c] sm:$0x1] %v3255_v20  ;;  %v2076_v8 = vadd.f32 %v6693_v57, %v9079_v59 }
 0x219   : > { %v6825_v55 = vpop.f32.mrf.mxu1 }
 0x21a   : > { %v6877_v42 = vpop.f32.mrf.mxu0  ;;  %v6826_v7 = vadd.f32 %v6825_v55, %v6824_v25  ;;  %v9307_v41 = vadd.f32 %v7495_v53, %v2373_v9  ;;  %v3302_v53 = vld [vmem:[#allocation3 + $0xa4] sm:$0x1] }
 0x21b   : > { %v6827_v45 = vpop.f32.mrf.mxu1 }
 0x21c   : > { %10669 = vst [vmem:[#allocation19_spill] sm:$0xff] %v9307_v41  ;;  %v6879_v38 = vpop.f32.mrf.mxu0  ;;  %v2378_v16 = vadd.f32 %v6826_v7, %v9156_v46  ;;  %v3303_v46 = vsel %vm8393_vm4, 0, %v3302_v53  ;;  %v3257_v41 = vld [vmem:[#allocation3 + $0xa8] sm:$0x1] }
 0x21d   : > { %v6828_v40 = vpop.f32.mrf.mxu1  ;;  %3304 = vst [vmem:[#allocation3 + $0xa4] sm:$0x1] %v3303_v46  ;;  %v3258_v59 = vsel %vm8387_vm2, 0, %v3257_v41 }
 0x21e   : > { %v6880_v27 = vpop.f32.mrf.mxu0  ;;  %v6829_v22 = vadd.f32 %v6828_v40, %v6827_v45  ;;  %v9313_v21 = vadd.f32 %v2538_v11, %v2378_v16  ;;  %3259 = vst [vmem:[#allocation3 + $0xa8] sm:$0x1] %v3258_v59 }
 0x21f   : > { %v6830_v1 = vpop.f32.mrf.mxu1 }
 0x220   : > { %10670 = vst [vmem:[#allocation20_spill] sm:$0xff] %v9313_v21  ;;  %v6882_v4 = vpop.f32.mrf.mxu0  ;;  %v9315_v25 = vadd.f32 %v6829_v22, %v2076_v8  ;;  %v6878_v22 = vadd.f32 %v6877_v42, %v6876_v52  ;;  %v9333_v42 = vld [vmem:[%s10629_s2] ss:$0 sm:$0xff] }
 0x221   : > { %v6831_v55 = vpop.f32.mrf.mxu1 }
 0x222   : > { %10671 = vst [vmem:[#allocation21_spill] sm:$0xff] %v9315_v25  ;;  %v6883_v9 = vpop.f32.mrf.mxu0  ;;  %v6832_v7 = vadd.f32 %v6831_v55, %v6830_v1  ;;  %v3305_v25 = vld [vmem:[#allocation3 + $0xb0] sm:$0x1] }
 0x223   : > { %v6833_v20 = vpop.f32.mrf.mxu1  ;;  %v6884_v40 = vadd.f32 %v6883_v9, %v6882_v4  ;;  %v3306_v1 = vsel %vm8393_vm4, 0, %v3305_v25 }
 0x224   : > { %v6885_v47 = vpop.f32.mrf.mxu0  ;;  %v2386_v11 = vadd.f32 %v6832_v7, %v9174_v6  ;;  %3307 = vst [vmem:[#allocation3 + $0xb0] sm:$0x1] %v3306_v1 }
 0x225   : > { %v6834_v45 = vpop.f32.mrf.mxu1 }
 0x226   : > { %v6886_v57 = vpop.f32.mrf.mxu0  ;;  %v9322_v16 = vadd.f32 %v7498_v54, %v2386_v11  ;;  %v6835_v8 = vadd.f32 %v6834_v45, %v6833_v20  ;;  %v6881_v54 = vadd.f32 %v6880_v27, %v6879_v38  ;;  %v9341_v27 = vadd.f32 %v9211_v60, %v9132_v28 }
 0x227   : > { %v7518_v46 = vpop.f32.mrf.mxu1  ;;  %v6887_v41 = vadd.f32 %v6886_v57, %v6885_v47  ;;  %v9353_v28 = vadd.f32 %v9229_v10, %v9169_v36  ;;  %v9365_v36 = vadd.f32 %v9260_v13, %v9238_v2  ;;  %v9373_v10 = vadd.f32 %v9288_v0, %v9293_v44 }
 0x228   : > { %v6888_v53 = vpop.f32.mrf.mxu0  ;;  %v2389_v55 = vadd.f32 %v6835_v8, %v9178_v5  ;;  %v2950_v21 = vadd.f32 %v7518_v46, %v6884_v40 }
 0x229   : > { %v2941_v6 = vpop.f32.mrf.mxu1 }
 0x22a   : > { %v6889_v39 = vpop.f32.mrf.mxu0  ;;  %v9327_v4 = vadd.f32 %v7499_v30, %v2389_v55  ;;  %v2942_v9 = vadd.f32 %v6878_v22, %v2941_v6  ;;  %v3070_v7 = vadd.f32 %v2950_v21, %v9181_v12  ;;  %v2430_v30 = vadd.f32 %v9196_v31, %v9096_v26  ;;  %v9346_v12 = vld [vmem:[%s10630_s3] ss:$0 sm:$0xff]  ;;  %v7921_v21 = vld [vmem:[#allocation9 + $0x78] sm:$0xff]  }
 0x22b   : > { %v7519_v25 = vpop.f32.mrf.mxu1  ;;  %v3260_v26 = vld [vmem:[#allocation3 + $0xb4] sm:$0x1]  ;;  %v9357_v31 = vadd.f32 %v9248_v17, %v9203_v63  ;;  %v6890_v8 = vadd.f32 %v6889_v39, %v6888_v53  ;;  %7132 = vmatprep.subr.bf16.mxu0 %v7921_v21  ;;  %v9369_v63 = vadd.f32 %v9272_v3, %v9265_v32 }
 0x22c   : > { %v6891_v52 = vpop.f32.mrf.mxu0  ;;  %v3068_v5 = vadd.f32 %v2942_v9, %v9189_v56  ;;  %v3109_v47 = vmul.f32 %v9333_v42, %v3070_v7  ;;  %v2953_v20 = vadd.f32 %v7519_v25, %v6887_v41  ;;  %v3261_v22 = vsel %vm8387_vm2, 0, %v3260_v26  ;;  %v3308_v25 = vld [vmem:[#allocation3 + $0xbc] sm:$0x1] }
 0x22d   : > { %v2944_v38 = vpop.f32.mrf.mxu1  ;;  %3262 = vst [vmem:[#allocation3 + $0xb4] sm:$0x1] %v3261_v22  ;;  %v3309_v32 = vsel %vm8393_vm4, 0, %v3308_v25 }
 0x22e   : > { %v6892_v59 = vpop.f32.mrf.mxu0  ;;  %v3107_v56 = vmul.f32 %v9333_v42, %v3068_v5  ;;  %v2945_v11 = vadd.f32 %v6881_v54, %v2944_v38  ;;  %v3148_v40 = vadd.f32 %v9346_v12, %v3109_v47  ;;  %v3071_v57 = vadd.f32 %v2953_v20, %v9194_v33  ;;  %3310 = vst [vmem:[#allocation3 + $0xbc] sm:$0x1] %v3309_v32 }
 0x22f   : > { %v7522_v60 = vpop.f32.mrf.mxu1  ;;  %v6893_v5 = vadd.f32 %v6892_v59, %v6891_v52 }
 0x230   : > { %v6894_v45 = vpop.f32.mrf.mxu0  ;;  %v3146_v46 = vadd.f32 %v9346_v12, %v3107_v56  ;;  %v3069_v1 = vadd.f32 %v2945_v11, %v2430_v30  ;;  %v3180_v33 = vmax.f32 %v3148_v40, 0.0  ;;  %v3110_v55 = vmul.f32 %v9333_v42, %v3071_v57 }
 0x231   : > { %v2957_v17 = vpop.f32.mrf.mxu1 }
 0x232   : > { %v6895_v41 = vpop.f32.mrf.mxu0  ;;  %v3178_v53 = vmax.f32 %v3146_v46, 0.0  ;;  %v3108_v6 = vmul.f32 %v9333_v42, %v3069_v1  ;;  %v6557_v9 = vpack.c.bf16 %v3180_v33, %v3180_v33  ;;  %v3149_v54 = vadd.f32 %v9346_v12, %v3110_v55 }
 0x233   : > { %v6896_v39 = vadd.f32 %v6895_v41, %v6894_v45  ;;  %v7523_v2 = vpop.f32.mrf.mxu1  ;;  %v2958_v13 = vadd.f32 %v6890_v8, %v2957_v17  ;;  %v3737_v17 = vld [vmem:[#allocation3 + $0x18] sm:$0xf] }
 0x234   : > { %v6897_v7 = vpop.f32.mrf.mxu0  ;;  %v6555_v3 = vpack.c.bf16 %v3178_v53, %v3178_v53  ;;  %v3147_v0 = vadd.f32 %v9346_v12, %v3108_v6  ;;  %v3428_v44 = vshrl.u32 %v6557_v9, 16  ;;  %v3431_v20 = vshll.u32 %v6557_v9, 16 }
 0x235   : > { %v2966_v47 = vadd.f32 %v7522_v60, %v6896_v39  ;;  %v3181_v38 = vmax.f32 %v3149_v54, 0.0  ;;  %v3072_v21 = vadd.f32 %v2958_v13, %v9206_v14  ;;  %v2960_v56 = vpop.f32.mrf.mxu1  ;;  %v3730_v39 = vld [vmem:[#allocation3 + $0xc] sm:$0xf] }
 0x236   : > { %v6898_v30 = vpop.f32.mrf.mxu0  ;;  %v3411_v57 = vshrl.u32 %v6555_v3, 16  ;;  %v3414_v52 = vshll.u32 %v6555_v3, 16  ;;  %v3179_v59 = vmax.f32 %v3147_v0, 0.0  ;;  %v3430_v45 = vrot.slane %v3428_v44, 7 }
 0x237   : > { %v3074_v11 = vadd.f32 %v2966_v47, %v9200_v37  ;;  %v6899_v40 = vadd.f32 %v6898_v30, %v6897_v7  ;;  %v6558_v60 = vpack.c.bf16 %v3181_v38, %v3181_v38  ;;  %v3111_v8 = vmul.f32 %v9333_v42, %v3072_v21  ;;  %v9384_v1 = vpop.f32.mrf.mxu1  ;;  %v3741_v21 = vld [vmem:[#allocation3 + $0x20] sm:$0x1] }
 0x238   : > { %v6900_v26 = vpop.f32.mrf.mxu0  ;;  %v2961_v22 = vadd.f32 %v6893_v5, %v2960_v56  ;;  %v3413_v33 = vrot.slane %v3411_v57, 7  ;;  %v6556_v55 = vpack.c.bf16 %v3179_v59, %v3179_v59  ;;  %v3433_v14 = vor.u32 %v3431_v20, %v3430_v45  ;;  %v3734_v57 = vld [vmem:[#allocation3 + $0x14] sm:$0x1] }
 0x239   : > { %v3113_v46 = vmul.f32 %v9333_v42, %v3074_v11  ;;  %v3434_v41 = vrot.slane %v3430_v45, 4  ;;  %v3436_v53 = vshrl.u32 %v6558_v60, 16  ;;  %v3439_v6 = vshll.u32 %v6558_v60, 16  ;;  %v2973_v20 = vpop.f32.mrf.mxu1 }
 0x23a   : > { %v6901_v37 = vpop.f32.mrf.mxu0  ;;  %v3150_v9 = vadd.f32 %v9346_v12, %v3111_v8  ;;  %v3073_v54 = vadd.f32 %v2961_v22, %v9341_v27  ;;  %v3416_v7 = vor.u32 %v3414_v52, %v3413_v33  ;;  %v3417_v25 = vrot.slane %v3413_v33, 4 }
 0x23b   : > { %v3419_v13 = vshrl.u32 %v6556_v55, 16  ;;  %v3422_v5 = vshll.u32 %v6556_v55, 16  ;;  %v3738_v32 = vsel %vm8419_vm8, %v3433_v14, %v3737_v17  ;;  %v3438_v3 = vrot.slane %v3436_v53, 7  ;;  %v9400_v53 = vpop.f32.mrf.mxu1 }
 0x23c   : > { %v6903_v47 = vpop.f32.mrf.mxu0  ;;  %v3182_v0 = vmax.f32 %v3150_v9, 0.0  ;;  %v3112_v44 = vmul.f32 %v9333_v42, %v3073_v54  ;;  %v3731_v30 = vsel %vm8419_vm8, %v3416_v7, %v3730_v39  ;;  %3739 = vst [vmem:[#allocation3 + $0x18] sm:$0xf] %v3738_v32  ;;  %v3152_v27 = vadd.f32 %v9346_v12, %v3113_v46 }
 0x23d   : > { %v3421_v38 = vrot.slane %v3419_v13, 7  ;;  %v2969_v56 = vadd.f32 %v7523_v2, %v6899_v40  ;;  %3732 = vst [vmem:[#allocation3 + $0xc] sm:$0xf] %v3731_v30  ;;  %v3441_v52 = vor.u32 %v3439_v6, %v3438_v3  ;;  %v3443_v59 = vrot.slane %v3438_v3, 4  ;;  %v3744_v3 = vld [vmem:[#allocation3 + $0x24] sm:$0xf] }
 0x23e   : > { %v6904_v11 = vpop.f32.mrf.mxu0  ;;  %v6559_v45 = vpack.c.bf16 %v3182_v0, %v3182_v0  ;;  %v3151_v60 = vadd.f32 %v9346_v12, %v3112_v44  ;;  %v3184_v33 = vmax.f32 %v3152_v27, 0.0 }
 0x23f   : > { %v3424_v8 = vor.u32 %v3422_v5, %v3421_v38  ;;  %v3426_v22 = vrot.slane %v3421_v38, 4  ;;  %v3075_v55 = vadd.f32 %v2969_v56, %v9209_v51  ;;  %v3442_v39 = vsel %vm8413_vm7, %v3434_v41, %v3441_v52  ;;  %v2976_v52 = vpop.f32.mrf.mxu1 }
 0x240   : > { %v6906_v14 = vpop.f32.mrf.mxu0  ;;  %v3742_v2 = vsel %vm8387_vm2, %v3443_v59, %v3741_v21  ;;  %v3445_v40 = vshrl.u32 %v6559_v45, 16  ;;  %v3448_v46 = vshll.u32 %v6559_v45, 16  ;;  %3740 = vst [vmem:[#allocation3 + $0x1c] sm:$0xf] %v3442_v39  ;;  %v3183_v51 = vmax.f32 %v3151_v60, 0.0 }
 0x241   : > { %v3425_v6 = vsel %vm8413_vm7, %v3417_v25, %v3424_v8  ;;  %v3735_v9 = vsel %vm8387_vm2, %v3426_v22, %v3734_v57  ;;  %3743 = vst [vmem:[#allocation3 + $0x20] sm:$0x1] %v3742_v2  ;;  %v6561_v54 = vpack.c.bf16 %v3184_v33, %v3184_v33  ;;  %v3114_v13 = vmul.f32 %v9333_v42, %v3075_v55 }
 0x242   : > { %v6907_v7 = vpop.f32.mrf.mxu0  ;;  %3733 = vst [vmem:[#allocation3 + $0x10] sm:$0xf] %v3425_v6  ;;  %3736 = vst [vmem:[#allocation3 + $0x14] sm:$0x1] %v3735_v9  ;;  %v3447_v41 = vrot.slane %v3445_v40, 7  ;;  %v6902_v5 = vadd.f32 %v6901_v37, %v6900_v26  ;;  %v6905_v32 = vadd.f32 %v6904_v11, %v6903_v47  ;;  %v6560_v0 = vpack.c.bf16 %v3183_v51, %v3183_v51 }
 0x243   : > { %v3462_v44 = vshrl.u32 %v6561_v54, 16  ;;  %v3465_v30 = vshll.u32 %v6561_v54, 16  ;;  %v6908_v25 = vadd.f32 %v6907_v7, %v6906_v14  ;;  %v3153_v56 = vadd.f32 %v9346_v12, %v3114_v13  ;;  %v3751_v37 = vld [vmem:[#allocation3 + $0x30] sm:$0xf]  ;;  %v3748_v40 = vld [vmem:[#allocation3 + $0x2c] sm:$0x1] }
 0x244   : > { %v6909_v38 = vpop.f32.mrf.mxu0  ;;  %v3450_v21 = vor.u32 %v3448_v46, %v3447_v41  ;;  %v3451_v27 = vrot.slane %v3447_v41, 4  ;;  %v2974_v57 = vadd.f32 %v6902_v5, %v2973_v20  ;;  %v3453_v59 = vshrl.u32 %v6560_v0, 16 }
 0x245   : > { %v3456_v45 = vshll.u32 %v6560_v0, 16  ;;  %v9408_v60 = vrot.slane %v3462_v44, 7  ;;  %v2977_v8 = vadd.f32 %v6905_v32, %v2976_v52  ;;  %v3185_v47 = vmax.f32 %v3153_v56, 0.0  ;;  %v3755_v56 = vld [vmem:[#allocation3 + $0x38] sm:$0x1] }
 0x246   : > { %v6910_v22 = vpop.f32.mrf.mxu0  ;;  %v3745_v26 = vsel %vm8419_vm8, %v3450_v21, %v3744_v3  ;;  %v3076_v11 = vadd.f32 %v2974_v57, %v9223_v35  ;;  %v2982_v33 = vadd.f32 %v9384_v1, %v6908_v25  ;;  %v3455_v55 = vrot.slane %v3453_v59, 7 }
 0x247   : > { %3746 = vst [vmem:[#allocation3 + $0x24] sm:$0xf] %v3745_v26  ;;  %v3467_v20 = vor.u32 %v3465_v30, %v9408_v60  ;;  %v3468_v14 = vrot.slane %v9408_v60, 4  ;;  %v3077_v39 = vadd.f32 %v2977_v8, %v9353_v28  ;;  %v6562_v46 = vpack.c.bf16 %v3185_v47, %v3185_v47 }
 0x248   : > { %v9417_v2 = vpop.f32.mrf.mxu0  ;;  %v3115_v6 = vmul.f32 %v9333_v42, %v3076_v11  ;;  %v3078_v9 = vadd.f32 %v2982_v33, %v9219_v24  ;;  %v6911_v51 = vadd.f32 %v6910_v22, %v6909_v38  ;;  %v3458_v35 = vor.u32 %v3456_v45, %v3455_v55  ;;  %v9441_v22 = vld [vmem:[#allocation3 + $0x18] sm:$0xff]  }
 0x249   : > { %v3460_v54 = vrot.slane %v3455_v55, 4  ;;  %v3752_v1 = vsel %vm8419_vm8, %v3467_v20, %v3751_v37  ;;  %v3116_v7 = vmul.f32 %v9333_v42, %v3077_v39  ;;  %v9424_v41 = vld [vmem:[#allocation3 + $0xc] sm:$0xff]   ;;  %v3470_v28 = vshrl.u32 %v6562_v46, 16  ;;  %v7898_v3 = vld [vmem:[#allocation3 + $0x14] ss:$0 sps:$4 sm:$0x11]   ;;  %v9448_v55 = vpop.f32.mrf.mxu1 }
 0x24a   : > { %v9426_v13 = vpop.f32.mrf.mxu0  ;;  %3753 = vst [vmem:[#allocation3 + $0x30] sm:$0xf] %v3752_v1  ;;  %v3473_v5 = vshll.u32 %v6562_v46, 16  ;;  %v3154_v32 = vadd.f32 %v9346_v12, %v3115_v6  ;;  %v3117_v24 = vmul.f32 %v9333_v42, %v3078_v9  ;;  %v3459_v0 = vsel %vm8413_vm7, %v3451_v27, %v3458_v35  ;;  %v9450_v20 = vld [vmem:[#allocation3 + $0x20] ss:$0 sps:$4 sm:$0x11]  }
 0x24b   : > { %v3749_v44 = vsel %vm8387_vm2, %v3460_v54, %v3748_v40  ;;  %v3155_v30 = vadd.f32 %v9346_v12, %v3116_v7  ;;  %v4295_v25 = vrot.slane %v9424_v41, 1  ;;  %3747 = vst [vmem:[#allocation3 + $0x28] sm:$0xf] %v3459_v0  ;;  %v3472_v21 = vrot.slane %v3470_v28, 7  ;;  %v3758_v28 = vld [vmem:[#allocation3 + $0x3c] sm:$0xf] }
 0x24c   : > { %v9436_v38 = vpop.f32.mrf.mxu0  ;;  %3750 = vst [vmem:[#allocation3 + $0x2c] sm:$0x1] %v3749_v44  ;;  %v3186_v57 = vmax.f32 %v3154_v32, 0.0  ;;  %v4296_v52 = vrot.slane %v7898_v3, 1  ;;  %v3156_v59 = vadd.f32 %v9346_v12, %v3117_v24  ;;  %v4071_v27 = vshrl.u32 %v9424_v41, 16 }
 0x24d   : > { %v3187_v45 = vmax.f32 %v3155_v30, 0.0  ;;  %v4073_v60 = vshll.u32 %v9424_v41, 16  ;;  %v4078_v8 = vshll.u32 %v7898_v3, 16  ;;  %v3475_v37 = vor.u32 %v3473_v5, %v3472_v21 }
 0x24e   : > { %v9443_v26 = vpop.f32.mrf.mxu0  ;;  %v3477_v47 = vrot.slane %v3472_v21, 4  ;;  %v6563_v11 = vpack.c.bf16 %v3186_v57, %v3186_v57  ;;  %v9446_v33 = vsel %vm1451_vm10, %v4295_v25, %v4296_v52  ;;  %v3188_v40 = vmax.f32 %v3156_v59, 0.0  ;;  %v2989_v25 = vpop.f32.mrf.mxu1  ;;  %v7924_v57 = vld [vmem:[#allocation9 + $0x38] sm:$0xff]  }
 0x24f   : > { %v6564_v39 = vpack.c.bf16 %v3187_v45, %v3187_v45  ;;  %7564 = vmatprep.mubr.bf16.mxu0 %v9446_v33  ;;  %v4075_v46 = vrot.slane %v4073_v60, 1  ;;  %v4080_v6 = vrot.slane %v4078_v8, 1  ;;  %v3476_v35 = vsel %vm8413_vm7, %v3468_v14, %v3475_v37 }
 0x250   : > { %v9453_v9 = vpop.f32.mrf.mxu0  ;;  %v3756_v54 = vsel %vm8387_vm2, %v3477_v47, %v3755_v56  ;;  %v3479_v1 = vshrl.u32 %v6563_v11, 16  ;;  %v3482_v7 = vshll.u32 %v6563_v11, 16  ;;  %3754 = vst [vmem:[#allocation3 + $0x34] sm:$0xf] %v3476_v35  ;;  %v6565_v3 = vpack.c.bf16 %v3188_v40, %v3188_v40  ;;  %v7905_v56 = vld [vmem:[#allocation9 + $0xb0] sm:$0xff]  }
 0x251   : > { %3757 = vst [vmem:[#allocation3 + $0x38] sm:$0x1] %v3756_v54  ;;  %v3487_v5 = vshrl.u32 %v6564_v39, 16  ;;  %v3490_v32 = vshll.u32 %v6564_v39, 16  ;;  %v4076_v24 = vor.u32 %v4075_v46, %v4071_v27  ;;  %v2985_v30 = vadd.f32 %v9400_v53, %v6911_v51  ;;  %v7925_v27 = vld [vmem:[#allocation9 + $0x70] sm:$0xff]  }
 0x252   : > { %v9459_v0 = vpop.f32.mrf.mxu0  ;;  %v3481_v44 = vrot.slane %v3479_v1, 7  ;;  %v4298_v14 = vrot.slane %v9441_v22, 1  ;;  %v4299_v21 = vrot.slane %v9450_v20, 1  ;;  %v3496_v59 = vshrl.u32 %v6565_v3, 16  ;;  %v3762_v11 = vld [vmem:[#allocation3 + $0x44] sm:$0x1] }
 0x253   : > { %v3489_v52 = vrot.slane %v3487_v5, 7  ;;  %v3499_v45 = vshll.u32 %v6565_v3, 16  ;;  %v9465_v60 = vsel %vm1216_vm9, %v4076_v24, %v4080_v6  ;;  %v3079_v53 = vadd.f32 %v2985_v30, %v9225_v50  ;;  %v9480_v35 = vld [vmem:[#allocation3 + $0x24] sm:$0xff]   ;;  %v9482_v54 = vld [vmem:[#allocation3 + $0x2c] ss:$0 sps:$4 sm:$0x11]  }
 0x254   : > { %v9467_v8 = vpop.f32.mrf.mxu0  ;;  %v3484_v37 = vor.u32 %v3482_v7, %v3481_v44  ;;  %v3485_v47 = vrot.slane %v3481_v44, 4  ;;  %4637 = vmatprep.mubr.bf16.mxu1 %v9465_v60  ;;  %v9472_v51 = vsel %vm1451_vm10, %v4298_v14, %v4299_v21  ;;  %v9474_v46 = vrot.slane %v3496_v59, 7  ;;  %v3765_v7 = vld [vmem:[#allocation3 + $0x48] sm:$0xf]  ;;  %v7910_v30 = vld [vmem:[#allocation9 + $0xa8] sm:$0xff]  }
 0x255   : > { %v3492_v39 = vor.u32 %v3490_v32, %v3489_v52  ;;  %v3494_v40 = vrot.slane %v3489_v52, 4  ;;  %4638 = vmatmul.mubr.bf16.vlgmr.msra.gmra.mxu1 %v9424_v41  ;;  %7565 = vmatmul.mubr.bf16.vlgmr.msra.gmra.mxu0 %v9472_v51  ;;  %v6914_v6 = vadd.f32 %v9426_v13, %v9417_v2  ;;  %v3118_v5 = vmul.f32 %v9333_v42, %v3079_v53  ;;  %v9488_v32 = vpop.f32.mrf.mxu1  ;;  %v7928_v2 = vld [vmem:[#allocation9 + $0x30] sm:$0xff]   ;;  %v7930_v14 = vld [vmem:[#allocation9 + $0x68] sm:$0xff]  }
 0x256   : > { %v6922_v1 = vpop.f32.mrf.mxu0  ;;  %v3759_v50 = vsel %vm8419_vm8, %v3484_v37, %v3758_v28  ;;  %7597 = vmatpush3.bf16.msra.mxu1 %v9214_v49  ;;  %v4083_v41 = vshrl.u32 %v9441_v22, 16  ;;  %v4085_v3 = vshll.u32 %v9441_v22, 16  ;;  %7133 = vmatpush3.bf16.msra.mxu0 %v7924_v57  ;;  %v3501_v24 = vor.u32 %v3499_v45, %v9474_v46 }
 0x257   : > { %3760 = vst [vmem:[#allocation3 + $0x3c] sm:$0xf] %v3759_v50  ;;  %v3493_v13 = vsel %vm8413_vm7, %v3485_v47, %v3492_v39  ;;  %v3763_v28 = vsel %vm8387_vm2, %v3494_v40, %v3762_v11  ;;  %v3502_v44 = vrot.slane %v9474_v46, 4  ;;  %7598 = vmatprep.subr.bf16.mxu1 %v7905_v56  ;;  %7134 = vmatprep.subr.bf16.mxu0 %v7925_v27  ;;  %v4090_v59 = vshll.u32 %v9450_v20, 16  ;;  %v7933_v20 = vld [vmem:[#allocation9 + $0x28] sm:$0xff]  }
 0x258   : > { %v9498_v49 = vpop.f32.mrf.mxu0  ;;  %3761 = vst [vmem:[#allocation3 + $0x40] sm:$0xf] %v3493_v13  ;;  %3764 = vst [vmem:[#allocation3 + $0x44] sm:$0x1] %v3763_v28  ;;  %v3157_v21 = vadd.f32 %v9346_v12, %v3118_v5  ;;  %v2990_v57 = vadd.f32 %v6914_v6, %v2989_v25  ;;  %v4087_v52 = vrot.slane %v4085_v3, 1  ;;  %v3766_v37 = vsel %vm8419_vm8, %v3501_v24, %v3765_v7  ;;  %v2992_v25 = vpop.f32.mrf.mxu1  ;;  %v9525_v13 = vld [vmem:[#allocation3 + $0x30] sm:$0xff]  }
 0x259   : > { %v6917_v45 = vadd.f32 %v9443_v26, %v9436_v38  ;;  %v4301_v47 = vrot.slane %v9480_v35, 1  ;;  %v4302_v11 = vrot.slane %v9482_v54, 1  ;;  %3767 = vst [vmem:[#allocation3 + $0x48] sm:$0xf] %v3766_v37  ;;  %v4092_v6 = vrot.slane %v4090_v59, 1 }
 0x25a   : > { %v9508_v27 = vpop.f32.mrf.mxu0  ;;  %v3189_v53 = vmax.f32 %v3157_v21, 0.0  ;;  %v3080_v39 = vadd.f32 %v2990_v57, %v9242_v48  ;;  %v4088_v40 = vor.u32 %v4087_v52, %v4083_v41  ;;  %7599 = vmatpush3.bf16.msra.mxu1 %v7905_v56  ;;  %7135 = vmatpush3.bf16.msra.mxu0 %v7928_v2  ;;  %v6920_v38 = vadd.f32 %v9459_v0, %v9453_v9  ;;  %v7934_v48 = vld [vmem:[#allocation9 + $0x60] sm:$0xff]  }
 0x25b   : > { %v2993_v50 = vadd.f32 %v6917_v45, %v2992_v25  ;;  %v9512_v7 = vsel %vm1451_vm10, %v4301_v47, %v4302_v11  ;;  %v4095_v26 = vshrl.u32 %v9480_v35, 16  ;;  %7600 = vmatprep.subr.bf16.mxu1 %v7910_v30  ;;  %7136 = vmatprep.subr.bf16.mxu0 %v7930_v14  ;;  %v4097_v2 = vshll.u32 %v9480_v35, 16  ;;  %v7915_v9 = vld [vmem:[#allocation9 + $0xa0] sm:$0xff]  }
 0x25c   : > { %v9517_v5 = vpop.f32.mrf.mxu0  ;;  %v6566_v3 = vpack.c.bf16 %v3189_v53, %v3189_v53  ;;  %v3119_v41 = vmul.f32 %v9333_v42, %v3080_v39  ;;  %v9521_v56 = vsel %vm1216_vm9, %v4088_v40, %v4092_v6  ;;  %7568 = vmatprep.mubr.bf16.mxu0 %v9512_v7  ;;  %v2998_v28 = vadd.f32 %v9448_v55, %v6920_v38  ;;  %v9532_v21 = vld [vmem:[#allocation3 + $0x38] ss:$0 sps:$4 sm:$0x11]   ;;  %v3769_v40 = vld [vmem:[#allocation3 + $0x50] sm:$0x1] }
 0x25d   : > { %4645 = vmatprep.mubr.bf16.mxu1 %v9521_v56  ;;  %v3081_v0 = vadd.f32 %v2993_v50, %v9357_v31  ;;  %v4102_v24 = vshll.u32 %v9482_v54, 16  ;;  %v6923_v14 = vadd.f32 %v6922_v1, %v9467_v8  ;;  %v4099_v45 = vrot.slane %v4097_v2, 1  ;;  %v7937_v47 = vld [vmem:[#allocation9 + $0x20] sm:$0xff]   ;;  %v7939_v38 = vld [vmem:[#allocation9 + $0x58] sm:$0xff]  }
 0x25e   : > { %v9534_v57 = vpop.f32.mrf.mxu0  ;;  %v3504_v52 = vshrl.u32 %v6566_v3, 16  ;;  %v3507_v59 = vshll.u32 %v6566_v3, 16  ;;  %v3158_v37 = vadd.f32 %v9346_v12, %v3119_v41  ;;  %4646 = vmatmul.mubr.bf16.gmra.mxu1 %v9441_v22  ;;  %7137 = vmatpush3.bf16.msra.mxu0 %v7933_v20  ;;  %v3082_v55 = vadd.f32 %v2998_v28, %v9236_v29  ;;  %v7920_v22 = vld [vmem:[#allocation9 + $0x98] sm:$0xff]   ;;  %v9546_v29 = vpop.f32.mrf.mxu1 }
 0x25f   : > { %v3120_v31 = vmul.f32 %v9333_v42, %v3081_v0  ;;  %v4104_v54 = vrot.slane %v4102_v24, 1  ;;  %v3001_v8 = vadd.f32 %v9488_v32, %v6923_v14  ;;  %7601 = vmatpush3.bf16.msra.mxu1 %v7910_v30  ;;  %7138 = vmatprep.subr.bf16.mxu0 %v7934_v48  ;;  %v4100_v39 = vor.u32 %v4099_v45, %v4095_v26  ;;  %v7942_v2 = vld [vmem:[#allocation9 + $0x18] sm:$0xff]  }
 0x260   : > { %v9541_v1 = vpop.f32.mrf.mxu0  ;;  %v3506_v11 = vrot.slane %v3504_v52, 7  ;;  %v3190_v53 = vmax.f32 %v3158_v37, 0.0  ;;  %v4304_v25 = vrot.slane %v9525_v13, 1  ;;  %7602 = vmatprep.subr.bf16.mxu1 %v7915_v9  ;;  %v3121_v20 = vmul.f32 %v9333_v42, %v3082_v55  ;;  %v7943_v52 = vld [vmem:[#allocation9 + $0x50] sm:$0xff]  }
 0x261   : > { %v3159_v6 = vadd.f32 %v9346_v12, %v3120_v31  ;;  %v3083_v32 = vadd.f32 %v3001_v8, %v9244_v18  ;;  %v4305_v50 = vrot.slane %v9532_v21, 1  ;;  %v9553_v41 = vsel %vm1216_vm9, %v4100_v39, %v4104_v54  ;;  %v7929_v31 = vld [vmem:[#allocation9 + $0x90] sm:$0xff]   ;;  %v3005_v8 = vpop.f32.mrf.mxu1 }
 0x262   : > { %v9550_v30 = vpop.f32.mrf.mxu0  ;;  %v3509_v48 = vor.u32 %v3507_v59, %v3506_v11  ;;  %v3511_v26 = vrot.slane %v3506_v11, 4  ;;  %v6567_v3 = vpack.c.bf16 %v3190_v53, %v3190_v53  ;;  %7139 = vmatpush3.bf16.msra.mxu0 %v7937_v47  ;;  %v3160_v28 = vadd.f32 %v9346_v12, %v3121_v20  ;;  %4653 = vmatprep.mubr.bf16.mxu1 %v9553_v41 }
 0x263   : > { %v3191_v0 = vmax.f32 %v3159_v6, 0.0  ;;  %v3122_v18 = vmul.f32 %v9333_v42, %v3083_v32  ;;  %v9559_v24 = vsel %vm1451_vm10, %v4304_v25, %v4305_v50  ;;  %7603 = vmatpush3.bf16.msra.mxu1 %v7915_v9  ;;  %v6926_v46 = vadd.f32 %v9508_v27, %v9498_v49  ;;  %7140 = vmatprep.subr.bf16.mxu0 %v7939_v38  ;;  %v3772_v6 = vld [vmem:[#allocation3 + $0x54] sm:$0xf]  ;;  %v7948_v27 = vld [vmem:[#allocation9 + $0x48] sm:$0xff]  }
 0x264   : > { %10673 = vst [vmem:[#allocation14_spill] sm:$0xff] %v9559_v24  ;;  %v9561_v14 = vpop.f32.mrf.mxu0  ;;  %v3510_v59 = vsel %vm8413_vm7, %v3502_v44, %v3509_v48  ;;  %v3770_v37 = vsel %vm8387_vm2, %v3511_v26, %v3769_v40  ;;  %v3513_v45 = vshrl.u32 %v6567_v3, 16  ;;  %v3516_v47 = vshll.u32 %v6567_v3, 16  ;;  %7569 = vmatmul.mubr.bf16.gmra.mxu0 %v9559_v24  ;;  %7604 = vmatprep.subr.bf16.mxu1 %v7920_v22  ;;  %v7946_v40 = vld [vmem:[#allocation9 + $0x10] sm:$0xff]  }
 0x265   : > { %3768 = vst [vmem:[#allocation3 + $0x4c] sm:$0xf] %v3510_v59  ;;  %3771 = vst [vmem:[#allocation3 + $0x50] sm:$0x1] %v3770_v37  ;;  %v6568_v55 = vpack.c.bf16 %v3191_v0, %v3191_v0  ;;  %v3192_v54 = vmax.f32 %v3160_v28, 0.0  ;;  %v3161_v9 = vadd.f32 %v9346_v12, %v3122_v18  ;;  %v4107_v53 = vshrl.u32 %v9525_v13, 16  ;;  %v9581_v37 = vpop.f32.mrf.mxu1 }
 0x266   : > { %v9573_v44 = vpop.f32.mrf.mxu0  ;;  %v3515_v11 = vrot.slane %v3513_v45, 7  ;;  %4654 = vmatmul.mubr.bf16.gmra.mxu1 %v9480_v35  ;;  %v4109_v39 = vshll.u32 %v9525_v13, 16  ;;  %v4114_v25 = vshll.u32 %v9532_v21, 16  ;;  %7141 = vmatpush3.bf16.msra.mxu0 %v7942_v2  ;;  %v3006_v26 = vadd.f32 %v6926_v46, %v3005_v8  ;;  %v7938_v0 = vld [vmem:[#allocation9 + $0x88] sm:$0xff]   ;;  %v3776_v21 = vld [vmem:[#allocation3 + $0x5c] sm:$0x1] }
 0x267   : > { %v3521_v20 = vshrl.u32 %v6568_v55, 16  ;;  %v3524_v32 = vshll.u32 %v6568_v55, 16  ;;  %v6569_v50 = vpack.c.bf16 %v3192_v54, %v3192_v54  ;;  %v3193_v48 = vmax.f32 %v3161_v9, 0.0  ;;  %7605 = vmatpush3.bf16.msra.mxu1 %v7920_v22  ;;  %7142 = vmatprep.subr.bf16.mxu0 %v7943_v52  ;;  %v3779_v52 = vld [vmem:[#allocation3 + $0x60] sm:$0xf]  ;;  %v7952_v46 = vld [vmem:[#allocation9 + $0x40] sm:$0xff]  }
 0x268   : > { %v9579_v49 = vpop.f32.mrf.mxu0  ;;  %v3518_v38 = vor.u32 %v3516_v47, %v3515_v11  ;;  %v3519_v35 = vrot.slane %v3515_v11, 4  ;;  %v4111_v3 = vrot.slane %v4109_v39, 1  ;;  %7606 = vmatprep.subr.bf16.mxu1 %v7929_v31  ;;  %v3084_v47 = vadd.f32 %v3006_v26, %v9254_v23  ;;  %v9588_v9 = vld [vmem:[#allocation3 + $0x3c] sm:$0xff]  }
 0x269   : > { %v3523_v28 = vrot.slane %v3521_v20, 7  ;;  %v3530_v2 = vshrl.u32 %v6569_v50, 16  ;;  %v3533_v18 = vshll.u32 %v6569_v50, 16  ;;  %v6570_v59 = vpack.c.bf16 %v3193_v48, %v3193_v48  ;;  %v7951_v8 = vld [vmem:[#allocation9 + $0x8] sm:$0xff]  }
 0x26a   : > { %v9583_v45 = vpop.f32.mrf.mxu0  ;;  %v3773_v22 = vsel %vm8419_vm8, %v3518_v38, %v3772_v6  ;;  %v4112_v55 = vor.u32 %v4111_v3, %v4107_v53  ;;  %v4116_v54 = vrot.slane %v4114_v25, 1  ;;  %7143 = vmatpush3.bf16.msra.mxu0 %v7946_v40  ;;  %v7909_v48 = vld [vmem:[#allocation3 + $0x44] ss:$0 sps:$4 sm:$0x11]   ;;  %v3123_v23 = vmul.f32 %v9333_v42, %v3084_v47  ;;  %v7947_v40 = vld [vmem:[#allocation9 + $0x80] sm:$0xff]  }
 0x26b   : > { %3774 = vst [vmem:[#allocation3 + $0x54] sm:$0xf] %v3773_v22  ;;  %v3526_v11 = vor.u32 %v3524_v32, %v3523_v28  ;;  %v3528_v39 = vrot.slane %v3523_v28, 4  ;;  %v3532_v20 = vrot.slane %v3530_v2, 7  ;;  %v3538_v50 = vshrl.u32 %v6570_v59, 16  ;;  %7607 = vmatpush3.bf16.msra.mxu1 %v7929_v31  ;;  %7144 = vmatprep.subr.bf16.mxu0 %v7948_v27  ;;  %v3008_v27 = vpop.f32.mrf.mxu1 }
 0x26c   : > { %v9590_v24 = vpop.f32.mrf.mxu0  ;;  %v3541_v6 = vshll.u32 %v6570_v59, 16  ;;  %v9594_v53 = vsel %vm1216_vm9, %v4112_v55, %v4116_v54  ;;  %v6929_v25 = vadd.f32 %v9534_v57, %v9517_v5  ;;  %7608 = vmatprep.subr.bf16.mxu1 %v7938_v0  ;;  %v3162_v5 = vadd.f32 %v9346_v12, %v3123_v23  ;;  %v3783_v2 = vld [vmem:[#allocation3 + $0x68] sm:$0x1]  ;;  %v7953_v55 = vld [vmem:[#allocation9] sm:$0xff]  }
 0x26d   : > { %v3527_v32 = vsel %vm8413_vm7, %v3519_v35, %v3526_v11  ;;  %v3777_v38 = vsel %vm8387_vm2, %v3528_v39, %v3776_v21  ;;  %v3535_v26 = vor.u32 %v3533_v18, %v3532_v20  ;;  %v3536_v31 = vrot.slane %v3532_v20, 4  ;;  %4661 = vmatprep.mubr.bf16.mxu1 %v9594_v53  ;;  %v9616_v39 = vld [vmem:[#allocation3 + $0x48] sm:$0xff]   ;;  %v9618_v20 = vld [vmem:[#allocation9 + $0x238] sm:$0xff]  }
 0x26e   : > { %v9603_v3 = vpop.f32.mrf.mxu0  ;;  %3775 = vst [vmem:[#allocation3 + $0x58] sm:$0xf] %v3527_v32  ;;  %3778 = vst [vmem:[#allocation3 + $0x5c] sm:$0x1] %v3777_v38  ;;  %v3540_v28 = vrot.slane %v3538_v50, 7  ;;  %v3009_v57 = vadd.f32 %v6929_v25, %v3008_v27  ;;  %4662 = vmatmul.mubr.bf16.gmra.mxu1 %v9525_v13  ;;  %v4307_v35 = vrot.slane %v9588_v9, 1  ;;  %7145 = vmatpush3.bf16.msra.mxu0 %v7951_v8 }
 0x26f   : > { %v3780_v21 = vsel %vm8419_vm8, %v3535_v26, %v3779_v52  ;;  %v4308_v18 = vrot.slane %v7909_v48, 1  ;;  %v6932_v59 = vadd.f32 %v9550_v30, %v9541_v1  ;;  %v4119_v22 = vshrl.u32 %v9588_v9, 16  ;;  %7609 = vmatpush3.bf16.msra.mxu1 %v7938_v0  ;;  %7146 = vmatprep.subr.bf16.mxu0 %v7952_v46  ;;  %v7956_v52 = vld [vmem:[#allocation9 + $0x1f8] sm:$0xff]   ;;  %v9624_v0 = vpop.f32.mrf.mxu1 }
 0x270   : > { %v9613_v47 = vpop.f32.mrf.mxu0  ;;  %3781 = vst [vmem:[#allocation3 + $0x60] sm:$0xf] %v3780_v21  ;;  %v3543_v13 = vor.u32 %v3541_v6, %v3540_v28  ;;  %v3545_v54 = vrot.slane %v3540_v28, 4  ;;  %v3194_v11 = vmax.f32 %v3162_v5, 0.0  ;;  %v3085_v8 = vadd.f32 %v3009_v57, %v9365_v36  ;;  %7610 = vmatprep.subr.bf16.mxu1 %v7947_v40 }
 0x271   : > { %v9621_v1 = vsel %vm1451_vm10, %v4307_v35, %v4308_v18  ;;  %v3014_v30 = vadd.f32 %v9546_v29, %v6932_v59  ;;  %v4121_v46 = vshll.u32 %v9588_v9, 16  ;;  %v4126_v50 = vshll.u32 %v7909_v48, 16  ;;  %v7912_v6 = vld [vmem:[#allocation3 + $0x50] ss:$0 sps:$4 sm:$0x11]   ;;  %v3021_v18 = vpop.f32.mrf.mxu1 }
 0x272   : > { %v9627_v23 = vpop.f32.mrf.mxu0  ;;  %v3544_v36 = vsel %vm8413_vm7, %v3536_v31, %v3543_v13  ;;  %v3784_v25 = vsel %vm8387_vm2, %v3545_v54, %v3783_v2  ;;  %v6571_v32 = vpack.c.bf16 %v3194_v11, %v3194_v11  ;;  %v3124_v38 = vmul.f32 %v9333_v42, %v3085_v8  ;;  %7572 = vmatprep.mubr.bf16.mxu0 %v9621_v1  ;;  %v3786_v54 = vld [vmem:[#allocation3 + $0x6c] sm:$0xf] }
 0x273   : > { %3782 = vst [vmem:[#allocation3 + $0x64] sm:$0xf] %v3544_v36  ;;  %3785 = vst [vmem:[#allocation3 + $0x68] sm:$0x1] %v3784_v25  ;;  %v3086_v29 = vadd.f32 %v3014_v30, %v9251_v58  ;;  %v4123_v26 = vrot.slane %v4121_v46, 1  ;;  %v4128_v48 = vrot.slane %v4126_v50, 1  ;;  %v6935_v27 = vadd.f32 %v9573_v44, %v9561_v14  ;;  %7611 = vmatpush3.bf16.msra.mxu1 %v7947_v40  ;;  %v9671_v36 = vpop.f32.mrf.mxu1 }
 0x274   : > { %v9638_v28 = vpop.f32.mrf.mxu0  ;;  %7147 = vmatpush3.bf16.msra.mxu0 %v7953_v55  ;;  %v3547_v31 = vshrl.u32 %v6571_v32, 16  ;;  %v3550_v5 = vshll.u32 %v6571_v32, 16  ;;  %v3163_v57 = vadd.f32 %v9346_v12, %v3124_v38  ;;  %v4310_v35 = vrot.slane %v9616_v39, 1  ;;  %7268 = vmatprep.subr.bf16.mxu1 %v7956_v52 }
 0x275   : > { %7644 = vmatprep.subr.bf16.mxu0 %v9618_v20  ;;  %v3125_v58 = vmul.f32 %v9333_v42, %v3086_v29  ;;  %v4124_v21 = vor.u32 %v4123_v26, %v4119_v22  ;;  %v3017_v2 = vadd.f32 %v9581_v37, %v6935_v27  ;;  %v4311_v14 = vrot.slane %v7912_v6, 1 }
 0x276   : > { %v9645_v44 = vpop.f32.mrf.mxu0  ;;  %v3549_v40 = vrot.slane %v3547_v31, 7  ;;  %v3195_v59 = vmax.f32 %v3163_v57, 0.0  ;;  %v6938_v55 = vadd.f32 %v9583_v45, %v9579_v49  ;;  %v4131_v13 = vshrl.u32 %v9616_v39, 16  ;;  %v9662_v45 = vld [vmem:[#allocation3 + $0x54] sm:$0xff]  }
 0x277   : > { %v3164_v11 = vadd.f32 %v9346_v12, %v3125_v58  ;;  %v9652_v8 = vsel %vm1216_vm9, %v4124_v21, %v4128_v48  ;;  %v3087_v42 = vadd.f32 %v3017_v2, %v9256_v34  ;;  %v9656_v37 = vsel %vm1451_vm10, %v4310_v35, %v4311_v14  ;;  %v9667_v34 = vld [vmem:[%s10629_s2] ss:$0 sm:$0xff]  ;;  %v9685_v35 = vld [vmem:[#allocation3 + $0x5c] ss:$0 sps:$4 sm:$0x11]  }
 0x278   : > { %v9658_v22 = vpop.f32.mrf.mxu0  ;;  %v3552_v52 = vor.u32 %v3550_v5, %v3549_v40  ;;  %v3553_v30 = vrot.slane %v3549_v40, 4  ;;  %v6572_v46 = vpack.c.bf16 %v3195_v59, %v3195_v59  ;;  %4669 = vmatprep.mubr.bf16.mxu1 %v9652_v8  ;;  %7573 = vmatmul.mubr.bf16.gmra.mxu0 %v9656_v37  ;;  %v3022_v49 = vadd.f32 %v6938_v55, %v3021_v18  ;;  %v3790_v14 = vld [vmem:[#allocation3 + $0x74] sm:$0x1] }
 0x279   : > { %v3196_v12 = vmax.f32 %v3164_v11, 0.0  ;;  %v3126_v50 = vmul.f32 %v9667_v34, %v3087_v42  ;;  %4670 = vmatmul.mubr.bf16.gmra.mxu1 %v9588_v9  ;;  %v4133_v25 = vshll.u32 %v9616_v39, 16  ;;  %v4138_v32 = vshll.u32 %v7912_v6, 16  ;;  %v9682_v9 = vld [vmem:[%s10630_s3] ss:$0 sm:$0xff] }
 0x27a   : > { %v9674_v38 = vpop.f32.mrf.mxu0  ;;  %v3787_v29 = vsel %vm8419_vm8, %v3552_v52, %v3786_v54  ;;  %v3555_v26 = vshrl.u32 %v6572_v46, 16  ;;  %v3558_v48 = vshll.u32 %v6572_v46, 16  ;;  %v3088_v27 = vadd.f32 %v3022_v49, %v9269_v43  ;;  %v3024_v54 = vpop.f32.mrf.mxu1 }
 0x27b   : > { %3788 = vst [vmem:[#allocation3 + $0x6c] sm:$0xf] %v3787_v29  ;;  %v6573_v31 = vpack.c.bf16 %v3196_v12, %v3196_v12  ;;  %v3165_v5 = vadd.f32 %v9682_v9, %v3126_v50  ;;  %v4135_v57 = vrot.slane %v4133_v25, 1  ;;  %v4140_v6 = vrot.slane %v4138_v32, 1 }
 0x27c   : > { %v9687_v58 = vpop.f32.mrf.mxu0  ;;  %v3557_v21 = vrot.slane %v3555_v26, 7  ;;  %v3127_v2 = vmul.f32 %v9667_v34, %v3088_v27  ;;  %v6941_v43 = vadd.f32 %v9603_v3, %v9590_v24  ;;  %v4313_v18 = vrot.slane %v9662_v45, 1  ;;  %v3793_v26 = vld [vmem:[#allocation3 + $0x78] sm:$0xf] }
 0x27d   : > { %v3564_v40 = vshrl.u32 %v6573_v31, 16  ;;  %v3567_v59 = vshll.u32 %v6573_v31, 16  ;;  %v3197_v55 = vmax.f32 %v3165_v5, 0.0  ;;  %v4136_v11 = vor.u32 %v4135_v57, %v4131_v13 }
 0x27e   : > { %v9693_v42 = vpop.f32.mrf.mxu0  ;;  %v3560_v52 = vor.u32 %v3558_v48, %v3557_v21  ;;  %v3562_v46 = vrot.slane %v3557_v21, 4  ;;  %v3166_v49 = vadd.f32 %v9682_v9, %v3127_v2  ;;  %v3025_v12 = vadd.f32 %v6941_v43, %v3024_v54 }
 0x27f   : > { %v3566_v50 = vrot.slane %v3564_v40, 7  ;;  %v6574_v25 = vpack.c.bf16 %v3197_v55, %v3197_v55  ;;  %v9697_v32 = vsel %vm1216_vm9, %v4136_v11, %v4140_v6  ;;  %v4314_v24 = vrot.slane %v9685_v35, 1 }
 0x280   : > { %v9700_v3 = vpop.f32.mrf.mxu0  ;;  %v3561_v29 = vsel %vm8413_vm7, %v3553_v30, %v3560_v52  ;;  %v3791_v13 = vsel %vm8387_vm2, %v3562_v46, %v3790_v14  ;;  %v3198_v48 = vmax.f32 %v3166_v49, 0.0  ;;  %4677 = vmatprep.mubr.bf16.mxu1 %v9697_v32  ;;  %v3089_v27 = vadd.f32 %v3025_v12, %v9369_v63  ;;  %v9717_v63 = vpop.f32.mrf.mxu1  ;;  %v9728_v46 = vld [vmem:[#allocation3 + $0x60] sm:$0xff]  }
 0x281   : > { %3789 = vst [vmem:[#allocation3 + $0x70] sm:$0xf] %v3561_v29  ;;  %3792 = vst [vmem:[#allocation3 + $0x74] sm:$0x1] %v3791_v13  ;;  %v3569_v31 = vor.u32 %v3567_v59, %v3566_v50  ;;  %v3570_v5 = vrot.slane %v3566_v50, 4  ;;  %v3572_v57 = vshrl.u32 %v6574_v25, 16  ;;  %4678 = vmatmul.mubr.bf16.gmra.mxu1 %v9616_v39  ;;  %v9713_v43 = vsel %vm1451_vm10, %v4313_v18, %v4314_v24 }
 0x282   : > { %v3575_v6 = vshll.u32 %v6574_v25, 16  ;;  %v9709_v21 = vpop.f32.mrf.mxu0  ;;  %v6575_v30 = vpack.c.bf16 %v3198_v48, %v3198_v48  ;;  %v3128_v2 = vmul.f32 %v9667_v34, %v3089_v27  ;;  %v6944_v14 = vadd.f32 %v9627_v23, %v9613_v47  ;;  %7576 = vmatprep.mubr.bf16.mxu0 %v9713_v43  ;;  %v3797_v18 = vld [vmem:[#allocation3 + $0x80] sm:$0x1]  ;;  %v7917_v24 = vld [vmem:[#allocation3 + $0x68] ss:$0 sps:$4 sm:$0x11]   ;;  %v3037_v27 = vpop.f32.mrf.mxu1 }
 0x283   : > { %v3794_v40 = vsel %vm8419_vm8, %v3569_v31, %v3793_v26  ;;  %v3574_v59 = vrot.slane %v3572_v57, 7  ;;  %v4143_v39 = vshrl.u32 %v9662_v45, 16  ;;  %v4145_v55 = vshll.u32 %v9662_v45, 16 }
 0x284   : > { %v9724_v54 = vpop.f32.mrf.mxu0  ;;  %3795 = vst [vmem:[#allocation3 + $0x78] sm:$0xf] %v3794_v40  ;;  %v3581_v11 = vshrl.u32 %v6575_v30, 16  ;;  %v3584_v52 = vshll.u32 %v6575_v30, 16  ;;  %v3167_v47 = vadd.f32 %v9682_v9, %v3128_v2  ;;  %v3030_v23 = vadd.f32 %v9624_v0, %v6944_v14 }
 0x285   : > { %v3577_v49 = vor.u32 %v3575_v6, %v3574_v59  ;;  %v3579_v12 = vrot.slane %v3574_v59, 4  ;;  %v4147_v50 = vrot.slane %v4145_v55, 1  ;;  %v4150_v25 = vshll.u32 %v9685_v35, 16  ;;  %v3800_v6 = vld [vmem:[#allocation3 + $0x84] sm:$0xf] }
 0x286   : > { %v3583_v29 = vrot.slane %v3581_v11, 7  ;;  %v3199_v13 = vmax.f32 %v3167_v47, 0.0  ;;  %v3090_v26 = vadd.f32 %v3030_v23, %v9276_v62  ;;  %v6947_v48 = vadd.f32 %v9645_v44, %v9638_v28  ;;  %v9734_v31 = vpop.f32.mrf.mxu0  ;;  %v9752_v47 = vpop.f32.mrf.mxu1 }
 0x287   : > { %v3578_v0 = vsel %vm8413_vm7, %v3570_v5, %v3577_v49  ;;  %v3798_v57 = vsel %vm8387_vm2, %v3579_v12, %v3797_v18  ;;  %v4148_v30 = vor.u32 %v4147_v50, %v4143_v39  ;;  %v4152_v35 = vrot.slane %v4150_v25, 1 }
 0x288   : > { %3796 = vst [vmem:[#allocation3 + $0x7c] sm:$0xf] %v3578_v0  ;;  %3799 = vst [vmem:[#allocation3 + $0x80] sm:$0x1] %v3798_v57  ;;  %v3586_v2 = vor.u32 %v3584_v52, %v3583_v29  ;;  %v3587_v14 = vrot.slane %v3583_v29, 4  ;;  %v6576_v62 = vpack.c.bf16 %v3199_v13, %v3199_v13  ;;  %v3129_v40 = vmul.f32 %v9667_v34, %v3090_v26  ;;  %v9746_v55 = vld [vmem:[#allocation3 + $0x6c] sm:$0xff]   ;;  %v9754_v23 = vpop.f32.mrf.mxu0 }
 0x289   : > { %v9742_v28 = vsel %vm1216_vm9, %v4148_v30, %v4152_v35  ;;  %v3033_v44 = vadd.f32 %v9671_v36, %v6947_v48  ;;  %v4316_v5 = vrot.slane %v9728_v46, 1  ;;  %v4317_v59 = vrot.slane %v7917_v24, 1  ;;  %v10674_v36 = vld [vmem:[#allocation15_spill] sm:$0xff]  ;;  %v3804_v0 = vld [vmem:[#allocation3 + $0x8c] sm:$0x1] }
 0x28a   : > { %v3801_v39 = vsel %vm8419_vm8, %v3586_v2, %v3800_v6  ;;  %v3589_v18 = vshrl.u32 %v6576_v62, 16  ;;  %v3592_v11 = vshll.u32 %v6576_v62, 16  ;;  %v3168_v52 = vadd.f32 %v9682_v9, %v3129_v40  ;;  %4685 = vmatprep.mubr.bf16.mxu1 %v9742_v28  ;;  %v3040_v2 = vpop.f32.mrf.mxu1  ;;  %v7919_v40 = vld [vmem:[#allocation3 + $0x74] ss:$0 sps:$4 sm:$0x11]  }
 0x28b   : > { %3802 = vst [vmem:[#allocation3 + $0x84] sm:$0xf] %v3801_v39  ;;  %v3091_v49 = vadd.f32 %v3033_v44, %v10674_v36  ;;  %4686 = vmatmul.mubr.bf16.gmra.mxu1 %v9662_v45  ;;  %v9759_v12 = vsel %vm1451_vm10, %v4316_v5, %v4317_v59  ;;  %v6950_v50 = vadd.f32 %v9674_v38, %v9658_v22  ;;  %v4155_v25 = vshrl.u32 %v9728_v46, 16  ;;  %v9770_v44 = vpop.f32.mrf.mxu0 }
 0x28c   : > { %v3591_v29 = vrot.slane %v3589_v18, 7  ;;  %v3200_v13 = vmax.f32 %v3168_v52, 0.0  ;;  %7577 = vmatmul.mubr.bf16.gmra.mxu0 %v9759_v12  ;;  %v4157_v26 = vshll.u32 %v9728_v46, 16  ;;  %v4162_v48 = vshll.u32 %v7917_v24, 16  ;;  %v10675_v24 = vld [vmem:[#allocation16_spill] sm:$0xff] }
 0x28d   : > { %v3130_v57 = vmul.f32 %v9667_v34, %v3091_v49  ;;  %v3038_v6 = vadd.f32 %v6950_v50, %v3037_v27  ;;  %v6953_v45 = vadd.f32 %v9693_v42, %v9687_v58  ;;  %v4319_v30 = vrot.slane %v9746_v55, 1 }
 0x28e   : > { %v3594_v35 = vor.u32 %v3592_v11, %v3591_v29  ;;  %v3596_v22 = vrot.slane %v3591_v29, 4  ;;  %v6577_v38 = vpack.c.bf16 %v3200_v13, %v3200_v13  ;;  %v4159_v62 = vrot.slane %v4157_v26, 1 }
 0x28f   : > { %v3169_v5 = vadd.f32 %v9682_v9, %v3130_v57  ;;  %v3092_v59 = vadd.f32 %v3038_v6, %v10675_v24  ;;  %v4164_v39 = vrot.slane %v4162_v48, 1  ;;  %v3041_v18 = vadd.f32 %v6953_v45, %v3040_v2  ;;  %v9783_v48 = vpop.f32.mrf.mxu0 }
 0x290   : > { %v3595_v27 = vsel %vm8413_vm7, %v3587_v14, %v3594_v35  ;;  %v3805_v58 = vsel %vm8387_vm2, %v3596_v22, %v3804_v0  ;;  %v3598_v42 = vshrl.u32 %v6577_v38, 16  ;;  %v3601_v11 = vshll.u32 %v6577_v38, 16  ;;  %v3807_v0 = vld [vmem:[#allocation3 + $0x90] sm:$0xf] }
 0x291   : > { %3803 = vst [vmem:[#allocation3 + $0x88] sm:$0xf] %v3595_v27  ;;  %3806 = vst [vmem:[#allocation3 + $0x8c] sm:$0x1] %v3805_v58  ;;  %v3201_v52 = vmax.f32 %v3169_v5, 0.0  ;;  %v3131_v36 = vmul.f32 %v9667_v34, %v3092_v59  ;;  %v4160_v49 = vor.u32 %v4159_v62, %v4155_v25  ;;  %v3093_v50 = vadd.f32 %v3041_v18, %v9373_v10  ;;  %v9804_v27 = vpop.f32.mrf.mxu0 }
 0x292   : > { %v3600_v29 = vrot.slane %v3598_v42, 7  ;;  %v4320_v13 = vrot.slane %v7919_v40, 1  ;;  %v6956_v26 = vadd.f32 %v9709_v21, %v9700_v3  ;;  %v4167_v14 = vshrl.u32 %v9746_v55, 16  ;;  %v9795_v21 = vld [vmem:[#allocation3 + $0x78] sm:$0xff]  }
 0x293   : > { %v6578_v57 = vpack.c.bf16 %v3201_v52, %v3201_v52  ;;  %v3170_v6 = vadd.f32 %v9682_v9, %v3131_v36  ;;  %v9787_v45 = vsel %vm1216_vm9, %v4160_v49, %v4164_v39  ;;  %v3132_v25 = vmul.f32 %v9667_v34, %v3093_v50  ;;  %v3811_v59 = vld [vmem:[#allocation3 + $0x98] sm:$0x1]  ;;  %v9806_v52 = vpop.f32.mrf.mxu1  ;;  %v7923_v49 = vld [vmem:[#allocation3 + $0x80] ss:$0 sps:$4 sm:$0x11]  }
 0x294   : > { %v3603_v35 = vor.u32 %v3601_v11, %v3600_v29  ;;  %v3604_v10 = vrot.slane %v3600_v29, 4  ;;  %4693 = vmatprep.mubr.bf16.mxu1 %v9787_v45  ;;  %v9792_v22 = vsel %vm1451_vm10, %v4319_v30, %v4320_v13  ;;  %v3046_v3 = vadd.f32 %v9717_v63, %v6956_v26  ;;  %v10676_v39 = vld [vmem:[#allocation18_spill] sm:$0xff] }
 0x295   : > { %v3606_v38 = vshrl.u32 %v6578_v57, 16  ;;  %v3609_v2 = vshll.u32 %v6578_v57, 16  ;;  %v3202_v62 = vmax.f32 %v3170_v6, 0.0  ;;  %v3171_v5 = vadd.f32 %v9682_v9, %v3132_v25  ;;  %4694 = vmatmul.mubr.bf16.gmra.mxu1 %v9728_v46  ;;  %7580 = vmatprep.mubr.bf16.mxu0 %v9792_v22 }
 0x296   : > { %v3808_v24 = vsel %vm8419_vm8, %v3603_v35, %v3807_v0  ;;  %v3094_v30 = vadd.f32 %v3046_v3, %v10676_v39  ;;  %v4169_v18 = vshll.u32 %v9746_v55, 16  ;;  %v4174_v63 = vshll.u32 %v7919_v40, 16  ;;  %v3814_v39 = vld [vmem:[#allocation3 + $0x9c] sm:$0xf] }
 0x297   : > { %3809 = vst [vmem:[#allocation3 + $0x90] sm:$0xf] %v3808_v24  ;;  %v3608_v58 = vrot.slane %v3606_v38, 7  ;;  %v6579_v42 = vpack.c.bf16 %v3202_v62, %v3202_v62  ;;  %v3203_v11 = vmax.f32 %v3171_v5, 0.0  ;;  %v6959_v36 = vadd.f32 %v9734_v31, %v9724_v54  ;;  %v9814_v62 = vpop.f32.mrf.mxu0  ;;  %v3053_v24 = vpop.f32.mrf.mxu1 }
 0x298   : > { %v3133_v50 = vmul.f32 %v9667_v34, %v3094_v30  ;;  %v4171_v29 = vrot.slane %v4169_v18, 1  ;;  %v4176_v13 = vrot.slane %v4174_v63, 1  ;;  %v4322_v26 = vrot.slane %v9795_v21, 1 }
 0x299   : > { %v3611_v0 = vor.u32 %v3609_v2, %v3608_v58  ;;  %v3613_v40 = vrot.slane %v3608_v58, 4  ;;  %v3615_v57 = vshrl.u32 %v6579_v42, 16  ;;  %v3618_v6 = vshll.u32 %v6579_v42, 16 }
 0x29a   : > { %v6580_v25 = vpack.c.bf16 %v3203_v11, %v3203_v11  ;;  %v3172_v35 = vadd.f32 %v9682_v9, %v3133_v50  ;;  %v4172_v3 = vor.u32 %v4171_v29, %v4167_v14  ;;  %v3049_v38 = vadd.f32 %v9752_v47, %v6959_v36 }
 0x29b   : > { %v3612_v54 = vsel %vm8413_vm7, %v3604_v10, %v3611_v0  ;;  %v3812_v31 = vsel %vm8387_vm2, %v3613_v40, %v3811_v59  ;;  %v3617_v5 = vrot.slane %v3615_v57, 7  ;;  %v4323_v2 = vrot.slane %v7923_v49, 1  ;;  %v10677_v10 = vld [vmem:[#allocation19_spill] sm:$0xff] }
 0x29c   : > { %3810 = vst [vmem:[#allocation3 + $0x94] sm:$0xf] %v3612_v54  ;;  %3813 = vst [vmem:[#allocation3 + $0x98] sm:$0x1] %v3812_v31  ;;  %v3623_v30 = vshrl.u32 %v6580_v25, 16  ;;  %v3626_v18 = vshll.u32 %v6580_v25, 16  ;;  %v9821_v14 = vsel %vm1216_vm9, %v4172_v3, %v4176_v13  ;;  %v3095_v42 = vadd.f32 %v3049_v38, %v10677_v10  ;;  %v6967_v13 = vpop.f32.mrf.mxu0 }
 0x29d   : > { %v3204_v63 = vmax.f32 %v3172_v35, 0.0  ;;  %v3620_v47 = vor.u32 %v3618_v6, %v3617_v5  ;;  %v3621_v58 = vrot.slane %v3617_v5, 4  ;;  %4701 = vmatprep.mubr.bf16.mxu1 %v9821_v14  ;;  %v9826_v59 = vsel %vm1451_vm10, %v4322_v26, %v4323_v2  ;;  %v3818_v40 = vld [vmem:[#allocation3 + $0xa4] sm:$0x1]  ;;  %v9836_v26 = vpop.f32.mrf.mxu1  ;;  %v3263_v10 = vld [vmem:[#allocation3 + $0xc0] sm:$0x1] }
 0x29e   : > { %v3625_v11 = vrot.slane %v3623_v30, 7  ;;  %4702 = vmatmul.mubr.bf16.gmra.mxu1 %v9746_v55  ;;  %7581 = vmatmul.mubr.bf16.gmra.mxu0 %v9826_v59  ;;  %v6962_v50 = vadd.f32 %v9770_v44, %v9754_v23  ;;  %v4179_v29 = vshrl.u32 %v9795_v21, 16  ;;  %v3134_v57 = vmul.f32 %v9667_v34, %v3095_v42  ;;  %v9839_v35 = vld [vmem:[#allocation3 + $0x84] sm:$0xff]   ;;  %v9841_v54 = vld [vmem:[#allocation3 + $0x8c] ss:$0 sps:$4 sm:$0x11]   ;;  %v6969_v42 = vpop.f32.mrf.mxu0 }
 0x29f   : > { %v6581_v36 = vpack.c.bf16 %v3204_v63, %v3204_v63  ;;  %v3815_v0 = vsel %vm8419_vm8, %v3620_v47, %v3814_v39  ;;  %v4181_v6 = vshll.u32 %v9795_v21, 16  ;;  %v4186_v25 = vshll.u32 %v7923_v49, 16  ;;  %v3821_v47 = vld [vmem:[#allocation3 + $0xa8] sm:$0xf] }
 0x2a0   : > { %3816 = vst [vmem:[#allocation3 + $0x9c] sm:$0xf] %v3815_v0  ;;  %v3628_v3 = vor.u32 %v3626_v18, %v3625_v11  ;;  %v3630_v38 = vrot.slane %v3625_v11, 4  ;;  %v3173_v31 = vadd.f32 %v9682_v9, %v3134_v57  ;;  %v3054_v5 = vadd.f32 %v6962_v50, %v3053_v24  ;;  %v3056_v50 = vpop.f32.mrf.mxu1 }
 0x2a1   : > { %v3632_v23 = vshrl.u32 %v6581_v36, 16  ;;  %v3635_v44 = vshll.u32 %v6581_v36, 16  ;;  %v4183_v2 = vrot.slane %v4181_v6, 1  ;;  %v4188_v39 = vrot.slane %v4186_v25, 1  ;;  %v10678_v36 = vld [vmem:[#allocation20_spill] sm:$0xff]  ;;  %v10680_v6 = vld [vmem:[#allocation17_spill] sm:$0xff] }
 0x2a2   : > { %v3629_v30 = vsel %vm8413_vm7, %v3621_v58, %v3628_v3  ;;  %v3819_v49 = vsel %vm8387_vm2, %v3630_v38, %v3818_v40  ;;  %v6965_v18 = vadd.f32 %v9804_v27, %v9783_v48  ;;  %v3205_v11 = vmax.f32 %v3173_v31, 0.0  ;;  %v10679_v58 = vld [vmem:[#allocation21_spill] sm:$0xff] }
 0x2a3   : > { %v3634_v63 = vrot.slane %v3632_v23, 7  ;;  %3817 = vst [vmem:[#allocation3 + $0xa0] sm:$0xf] %v3629_v30  ;;  %3820 = vst [vmem:[#allocation3 + $0xa4] sm:$0x1] %v3819_v49  ;;  %v3096_v24 = vadd.f32 %v3054_v5, %v10678_v36  ;;  %v4184_v0 = vor.u32 %v4183_v2, %v4179_v29  ;;  %v4325_v57 = vrot.slane %v9839_v35, 1  ;;  %v6970_v30 = vpop.f32.mrf.mxu0 }
 0x2a4   : > { %v2542_v25 = vadd.f32 %v10680_v6, %v10679_v58  ;;  %v3057_v3 = vadd.f32 %v6965_v18, %v3056_v50  ;;  %v4326_v38 = vrot.slane %v9841_v54, 1  ;;  %v6582_v23 = vpack.c.bf16 %v3205_v11, %v3205_v11  ;;  %v9876_v58 = vld [vmem:[#allocation3 + $0x90] sm:$0xff]  }
 0x2a5   : > { %v3637_v40 = vor.u32 %v3635_v44, %v3634_v63  ;;  %v3135_v48 = vmul.f32 %v9667_v34, %v3096_v24  ;;  %v9857_v27 = vsel %vm1216_vm9, %v4184_v0, %v4188_v39  ;;  %v6968_v31 = vadd.f32 %v6967_v13, %v9814_v62  ;;  %v3311_v13 = vld [vmem:[#allocation3 + $0xc8] sm:$0x1]  ;;  %v3825_v24 = vld [vmem:[#allocation3 + $0xb0] sm:$0x1] }
 0x2a6   : > { %4709 = vmatprep.mubr.bf16.mxu1 %v9857_v27  ;;  %v3097_v5 = vadd.f32 %v3057_v3, %v2542_v25  ;;  %v9864_v2 = vsel %vm1451_vm10, %v4325_v57, %v4326_v38  ;;  %v3264_v44 = vsel %vm8387_vm2, 0, %v3263_v10  ;;  %v3638_v49 = vrot.slane %v3634_v63, 4 }
 0x2a7   : > { %v3822_v29 = vsel %vm8419_vm8, %v3637_v40, %v3821_v47  ;;  %v3640_v18 = vshrl.u32 %v6582_v23, 16  ;;  %v3174_v39 = vadd.f32 %v9682_v9, %v3135_v48  ;;  %4710 = vmatmul.mubr.bf16.gmra.mxu1 %v9795_v21  ;;  %7584 = vmatprep.mubr.bf16.mxu0 %v9864_v2  ;;  %v3062_v62 = vadd.f32 %v9806_v52, %v6968_v31  ;;  %v7932_v48 = vld [vmem:[#allocation3 + $0x98] ss:$0 sps:$4 sm:$0x11]  }
 0x2a8   : > { %3823 = vst [vmem:[#allocation3 + $0xa8] sm:$0xf] %v3822_v29  ;;  %3265 = vst [vmem:[#allocation3 + $0xc0] sm:$0x1] %v3264_v44  ;;  %v3643_v47 = vshll.u32 %v6582_v23, 16  ;;  %v3136_v11 = vmul.f32 %v9667_v34, %v3097_v5  ;;  %v4193_v36 = vshll.u32 %v9839_v35, 16  ;;  %v6971_v57 = vadd.f32 %v6970_v30, %v6969_v42 }
 0x2a9   : > { %v4198_v10 = vshll.u32 %v9841_v54, 16  ;;  %v3642_v63 = vrot.slane %v3640_v18, 7  ;;  %v3206_v50 = vmax.f32 %v3174_v39, 0.0  ;;  %v3098_v0 = vadd.f32 %v3062_v62, %v9322_v16 }
 0x2aa   : > { %v3175_v6 = vadd.f32 %v9682_v9, %v3136_v11  ;;  %v4191_v52 = vshrl.u32 %v9839_v35, 16  ;;  %v4195_v25 = vrot.slane %v4193_v36, 1  ;;  %v3312_v40 = vsel %vm8393_vm4, 0, %v3311_v13 }
 0x2ab   : > { %v3645_v3 = vor.u32 %v3643_v47, %v3642_v63  ;;  %v3647_v38 = vrot.slane %v3642_v63, 4  ;;  %v6583_v23 = vpack.c.bf16 %v3206_v50, %v3206_v50  ;;  %v3137_v54 = vmul.f32 %v9667_v34, %v3098_v0  ;;  %3313 = vst [vmem:[#allocation3 + $0xc8] sm:$0x1] %v3312_v40  ;;  %v3828_v63 = vld [vmem:[#allocation3 + $0xb4] sm:$0xf] }
 0x2ac   : > { %v3207_v31 = vmax.f32 %v3175_v6, 0.0  ;;  %v4196_v16 = vor.u32 %v4195_v25, %v4191_v52  ;;  %v4200_v42 = vrot.slane %v4198_v10, 1  ;;  %v3065_v29 = vadd.f32 %v9836_v26, %v6971_v57  ;;  %v7936_v26 = vld [vmem:[#allocation3 + $0xa4] ss:$0 sps:$4 sm:$0x11]   ;;  %v9896_v10 = vld [vmem:[#allocation3 + $0x9c] sm:$0xff]  }
 0x2ad   : > { %v3646_v5 = vsel %vm8413_vm7, %v3638_v49, %v3645_v3  ;;  %v3826_v44 = vsel %vm8387_vm2, %v3647_v38, %v3825_v24  ;;  %v3649_v19 = vshrl.u32 %v6583_v23, 16  ;;  %v4328_v30 = vrot.slane %v9876_v58, 1 }
 0x2ae   : > { %3824 = vst [vmem:[#allocation3 + $0xac] sm:$0xf] %v3646_v5  ;;  %3827 = vst [vmem:[#allocation3 + $0xb0] sm:$0x1] %v3826_v44  ;;  %v6584_v18 = vpack.c.bf16 %v3207_v31, %v3207_v31  ;;  %v3176_v39 = vadd.f32 %v9682_v9, %v3137_v54  ;;  %v9891_v62 = vsel %vm1216_vm9, %v4196_v16, %v4200_v42  ;;  %v3652_v11 = vshll.u32 %v6583_v23, 16 }
 0x2af   : > { %v3099_v13 = vadd.f32 %v3065_v29, %v9327_v4  ;;  %v3651_v47 = vrot.slane %v3649_v19, 7  ;;  %4717 = vmatprep.mubr.bf16.mxu1 %v9891_v62  ;;  %v4329_v49 = vrot.slane %v7932_v48, 1  ;;  %v4205_v36 = vshll.u32 %v9876_v58, 16  ;;  %v3832_v54 = vld [vmem:[#allocation3 + $0xbc] sm:$0x1] }
 0x2b0   : > { %v3657_v24 = vshrl.u32 %v6584_v18, 16  ;;  %v3208_v50 = vmax.f32 %v3176_v39, 0.0  ;;  %4718 = vmatmul.mubr.bf16.gmra.mxu1 %v9839_v35  ;;  %v4203_v57 = vshrl.u32 %v9876_v58, 16  ;;  %v3660_v6 = vshll.u32 %v6584_v18, 16 }
 0x2b1   : > { %v3138_v0 = vmul.f32 %v9667_v34, %v3099_v13  ;;  %v3654_v4 = vor.u32 %v3652_v11, %v3651_v47  ;;  %v9902_v52 = vsel %vm1451_vm10, %v4328_v30, %v4329_v49  ;;  %v4207_v25 = vrot.slane %v4205_v36, 1 }
 0x2b2   : > { %v3659_v40 = vrot.slane %v3657_v24, 7  ;;  %v6585_v3 = vpack.c.bf16 %v3208_v50, %v3208_v50  ;;  %7585 = vmatmul.mubr.bf16.gmra.mxu0 %v9902_v52  ;;  %v4210_v23 = vshll.u32 %v7932_v48, 16  ;;  %v4331_v16 = vrot.slane %v9896_v10, 1 }
 0x2b3   : > { %v3177_v38 = vadd.f32 %v9682_v9, %v3138_v0  ;;  %v3829_v34 = vsel %vm8419_vm8, %v3654_v4, %v3828_v63  ;;  %v4208_v31 = vor.u32 %v4207_v25, %v4203_v57  ;;  %v4332_v42 = vrot.slane %v7936_v26, 1 }
 0x2b4   : > { %v3655_v29 = vrot.slane %v3651_v47, 4  ;;  %3830 = vst [vmem:[#allocation3 + $0xb4] sm:$0xf] %v3829_v34  ;;  %v3662_v5 = vor.u32 %v3660_v6, %v3659_v40  ;;  %v3664_v44 = vrot.slane %v3659_v40, 4  ;;  %v3666_v19 = vshrl.u32 %v6585_v3, 16 }
 0x2b5   : > { %v3669_v30 = vshll.u32 %v6585_v3, 16  ;;  %v3209_v18 = vmax.f32 %v3177_v38, 0.0  ;;  %v4212_v39 = vrot.slane %v4210_v23, 1  ;;  %v9910_v9 = vsel %vm1451_vm10, %v4331_v16, %v4332_v42  ;;  %v9912_v48 = vld [vmem:[#allocation3 + $0xa8] sm:$0xff]   ;;  %v3835_v47 = vld [vmem:[#allocation3 + $0xc0] sm:$0xf] }
 0x2b6   : > { %v3663_v13 = vsel %vm8413_vm7, %v3655_v29, %v3662_v5  ;;  %v3833_v11 = vsel %vm8387_vm2, %v3664_v44, %v3832_v54  ;;  %v3668_v49 = vrot.slane %v3666_v19, 7  ;;  %7588 = vmatprep.mubr.bf16.mxu0 %v9910_v9  ;;  %v4217_v36 = vshll.u32 %v9896_v10, 16  ;;  %v7941_v0 = vld [vmem:[#allocation3 + $0xb0] ss:$0 sps:$4 sm:$0x11]   ;;  %v9933_v29 = vld [vmem:[#allocation3] sm:$0xff]  }
 0x2b7   : > { %3831 = vst [vmem:[#allocation3 + $0xb8] sm:$0xf] %v3663_v13  ;;  %3834 = vst [vmem:[#allocation3 + $0xbc] sm:$0x1] %v3833_v11  ;;  %v6586_v63 = vpack.c.bf16 %v3209_v18, %v3209_v18  ;;  %v9921_v24 = vsel %vm1216_vm9, %v4208_v31, %v4212_v39  ;;  %v4222_v50 = vshll.u32 %v7936_v26, 16  ;;  %v4334_v57 = vrot.slane %v9912_v48, 1 }
 0x2b8   : > { %v3671_v4 = vor.u32 %v3669_v30, %v3668_v49  ;;  %4725 = vmatprep.mubr.bf16.mxu1 %v9921_v24  ;;  %v4215_v6 = vshrl.u32 %v9896_v10, 16  ;;  %v4219_v25 = vrot.slane %v4217_v36, 1  ;;  %v4335_v38 = vrot.slane %v7941_v0, 1  ;;  %v3839_v5 = vld [vmem:[#allocation3 + $0xc8] sm:$0x1] }
 0x2b9   : > { %v3674_v40 = vshrl.u32 %v6586_v63, 16  ;;  %4726 = vmatmul.mubr.bf16.gmra.mxu1 %v9876_v58  ;;  %v4224_v3 = vrot.slane %v4222_v50, 1  ;;  %v4229_v26 = vshll.u32 %v9912_v48, 16  ;;  %v4234_v54 = vshll.u32 %v7941_v0, 16 }
 0x2ba   : > { %v3836_v23 = vsel %vm8419_vm8, %v3671_v4, %v3835_v47  ;;  %v4220_v34 = vor.u32 %v4219_v25, %v4215_v6  ;;  %v3677_v16 = vshll.u32 %v6586_v63, 16  ;;  %v9931_v42 = vsel %vm1451_vm10, %v4334_v57, %v4335_v38  ;;  %v7955_v13 = vld [vmem:[#allocation3 + $0x8] ss:$0 sps:$4 sm:$0x11]  }
 0x2bb   : > { %3837 = vst [vmem:[#allocation3 + $0xc0] sm:$0xf] %v3836_v23  ;;  %v3676_v31 = vrot.slane %v3674_v40, 7  ;;  %7589 = vmatmul.mubr.bf16.gmra.mxu0 %v9931_v42  ;;  %v4227_v61 = vshrl.u32 %v9912_v48, 16  ;;  %v4231_v19 = vrot.slane %v4229_v26, 1  ;;  %v3672_v30 = vrot.slane %v3668_v49, 4 }
 0x2bc   : > { %v9936_v44 = vsel %vm1216_vm9, %v4220_v34, %v4224_v3  ;;  %v4236_v47 = vrot.slane %v4234_v54, 1  ;;  %v4061_v57 = vshll.u32 %v9933_v29, 16  ;;  %v4059_v38 = vshrl.u32 %v9933_v29, 16 }
 0x2bd   : > { %v3679_v18 = vor.u32 %v3677_v16, %v3676_v31  ;;  %v3681_v39 = vrot.slane %v3676_v31, 4  ;;  %4733 = vmatprep.mubr.bf16.mxu1 %v9936_v44  ;;  %v4232_v11 = vor.u32 %v4231_v19, %v4227_v61  ;;  %v4066_v34 = vshll.u32 %v7955_v13, 16 }
 0x2be   : > { %v9941_v36 = vld [vmem:[#allocation3 + $0xb4] sm:$0xff]   ;;  %v7945_v0 = vld [vmem:[#allocation3 + $0xbc] ss:$0 sps:$4 sm:$0x11]   ;;  %v4063_v23 = vrot.slane %v4061_v57, 1 }
 0x2bf   : > { %v3680_v63 = vsel %vm8413_vm7, %v3672_v30, %v3679_v18  ;;  %v3840_v50 = vsel %vm8387_vm2, %v3681_v39, %v3839_v5  ;;  %v9949_v49 = vsel %vm1216_vm9, %v4232_v11, %v4236_v47  ;;  %v4337_v4 = vrot.slane %v9941_v36, 1 }
 0x2c0   : > { %3838 = vst [vmem:[#allocation3 + $0xc4] sm:$0xf] %v3680_v63  ;;  %3841 = vst [vmem:[#allocation3 + $0xc8] sm:$0x1] %v3840_v50  ;;  %v4241_v6 = vshll.u32 %v9941_v36, 16  ;;  %v4338_v25 = vrot.slane %v7945_v0, 1  ;;  %v4064_v5 = vor.u32 %v4063_v23, %v4059_v38 }
 0x2c1   : > { %4734 = vmatmul.mubr.bf16.gmra.mxu1 %v9896_v10  ;;  %v4246_v17 = vshll.u32 %v7945_v0, 16  ;;  %v4239_v15 = vshrl.u32 %v9941_v36, 16  ;;  %v4068_v61 = vrot.slane %v4066_v34, 1  ;;  %v7968_v38 = vld [vmem:[#allocation9 + $0x228] sm:$0xff]   ;;  %v7973_v23 = vld [vmem:[#allocation9 + $0x220] sm:$0xff]   ;;  %v8000_v34 = vld [vmem:[#allocation3 + $0xc] sm:$0xff]  }
 0x2c2   : > { %4741 = vmatprep.mubr.bf16.mxu1 %v9949_v49  ;;  %v4243_v40 = vrot.slane %v4241_v6, 1  ;;  %v9957_v3 = vsel %vm1451_vm10, %v4337_v4, %v4338_v25  ;;  %v4292_v25 = vrot.slane %v9933_v29, 1 }
 0x2c3   : > { %7592 = vmatprep.mubr.bf16.mxu0 %v9957_v3  ;;  %v4248_v54 = vrot.slane %v4246_v17, 1  ;;  %v4069_v50 = vsel %vm1216_vm9, %v4064_v5, %v4068_v61  ;;  %v4293_v17 = vrot.slane %v7955_v13, 1  ;;  %v7957_v13 = vld [vmem:[#allocation9 + $0x1b8] sm:$0xff]   ;;  %v9990_v5 = vld [vmem:[#allocation3 + $0x18] sm:$0xff]   ;;  %v7962_v61 = vld [vmem:[#allocation9 + $0x1a8] sm:$0xff]  }
 0x2c4   : > { %v4244_v26 = vor.u32 %v4243_v40, %v4239_v15  ;;  %v7963_v15 = vld [vmem:[#allocation9 + $0x230] sm:$0xff]  }
 0x2c5   : > { %v4294_v40 = vsel %vm1451_vm10, %v4292_v25, %v4293_v17  ;;  %v10002_v25 = vld [vmem:[#allocation3 + $0x30] sm:$0xff]   ;;  %v7972_v17 = vld [vmem:[#allocation9 + $0x188] sm:$0xff]  }
 0x2c6   : > { %v9962_v31 = vsel %vm1216_vm9, %v4244_v26, %v4248_v54  ;;  %v7961_v26 = vld [vmem:[#allocation9 + $0x1e8] sm:$0xff]   ;;  %v7977_v54 = vld [vmem:[#allocation9 + $0x210] sm:$0xff]  }
 0x2c7   : > { %v9964_v16 = vld [vmem:[#allocation3 + $0xc0] sm:$0xff]   ;;  %v7950_v19 = vld [vmem:[#allocation3 + $0xc8] ss:$0 sps:$4 sm:$0x11]  }
 0x2c8   : > { %v4340_v30 = vrot.slane %v9964_v16, 1  ;;  %v4253_v18 = vshll.u32 %v9964_v16, 16  ;;  %v4341_v39 = vrot.slane %v7950_v19, 1  ;;  %v4258_v11 = vshll.u32 %v7950_v19, 16  ;;  %v7964_v19 = vld [vmem:[#allocation9 + $0x1e0] sm:$0xff]  }
 0x2c9   : > { %4742 = vmatmul.mubr.bf16.gmra.mxu1 %v9912_v48  ;;  %v4251_v47 = vshrl.u32 %v9964_v16, 16 }
 0x2ca   : > { %4749 = vmatprep.mubr.bf16.mxu1 %v9962_v31  ;;  %v4255_v63 = vrot.slane %v4253_v18, 1  ;;  %v9973_v0 = vsel %vm1451_vm10, %v4340_v30, %v4341_v39  ;;  %v4260_v4 = vrot.slane %v4258_v11, 1  ;;  %v10681_v30 = vld [vmem:[#allocation14_spill] sm:$0xff]  ;;  %v7966_v39 = vld [vmem:[#allocation9 + $0x1d8] sm:$0xff]  }
 0x2cb   : > { %7593 = vmatmul.mubr.bf16.gmra.mxu0 %v9973_v0  ;;  %v7965_v18 = vld [vmem:[#allocation9 + $0x1a0] sm:$0xff]  }
 0x2cc   : > { %v4256_v57 = vor.u32 %v4255_v63, %v4251_v47  ;;  %5103 = vmatprep.mubr.bf16.mxu0 %v4069_v50  ;;  %v7979_v11 = vld [vmem:[#allocation9 + $0x200] sm:$0xff]   ;;  %v9996_v47 = vld [vmem:[#allocation3 + $0x24] sm:$0xff]   ;;  %v7967_v63 = vld [vmem:[#allocation9 + $0x198] sm:$0xff]  }
 0x2cd   : > { %v7969_v50 = vld [vmem:[#allocation9 + $0x1d0] sm:$0xff]  }
 0x2ce   : > { %v9977_v6 = vsel %vm1216_vm9, %v4256_v57, %v4260_v4  ;;  %v7970_v57 = vld [vmem:[#allocation9 + $0x190] sm:$0xff]   ;;  %v7971_v4 = vld [vmem:[#allocation9 + $0x1c8] sm:$0xff]  }
 0x2d1   : > { %4750 = vmatmul.mubr.bf16.gmra.mxu1 %v9941_v36 }
 0x2d2   : > { %4757 = vmatprep.mubr.bf16.mxu1 %v9977_v6 }
 0x2d3   : > { %5104 = vmatmul.mubr.bf16.vlgmr.msra.gmra.mxu0 %v9933_v29  ;;  %v7959_v29 = vld [vmem:[#allocation9 + $0x1f0] sm:$0xff]  }
 0x2d4   : > { %5111 = vmatprep.mubr.bf16.mxu0 %v9465_v60  ;;  %7645 = vmatpush3.bf16.msra.mxu0 %v9618_v20  ;;  %v7976_v60 = vld [vmem:[#allocation9 + $0x218] sm:$0xff]   ;;  %v7960_v20 = vld [vmem:[#allocation9 + $0x1b0] sm:$0xff]  }
 0x2d5   : > { %7646 = vmatprep.subr.bf16.mxu0 %v7963_v15 }
 0x2d8   : > { %7647 = vmatpush3.bf16.msra.mxu0 %v7963_v15  ;;  %v7974_v15 = vld [vmem:[#allocation9 + $0x1c0] sm:$0xff]  }
 0x2d9   : > { %4758 = vmatmul.mubr.bf16.gmra.mxu1 %v9964_v16  ;;  %7648 = vmatprep.subr.bf16.mxu0 %v7968_v38 }
 0x2da   : > { %7612 = vmatprep.mubr.bf16.mxu1 %v4294_v40  ;;  %v7975_v40 = vld [vmem:[#allocation9 + $0x180] sm:$0xff]  }
 0x2db   : > { %5112 = vmatmul.mubr.bf16.gmra.mxu0 %v8000_v34  ;;  %v10020_v34 = vld [vmem:[#allocation3 + $0x54] sm:$0xff]  }
 0x2dc   : > { %5119 = vmatprep.mubr.bf16.mxu0 %v9521_v56  ;;  %7649 = vmatpush3.bf16.msra.mxu0 %v7968_v38  ;;  %v10008_v38 = vld [vmem:[#allocation3 + $0x3c] sm:$0xff]  }
 0x2dd   : > { %7650 = vmatprep.subr.bf16.mxu0 %v7973_v23 }
 0x2e0   : > { %7651 = vmatpush3.bf16.msra.mxu0 %v7973_v23  ;;  %v10014_v23 = vld [vmem:[#allocation3 + $0x48] sm:$0xff]  }
 0x2e1   : > { %7613 = vmatmul.mubr.bf16.vlgmr.msra.gmra.mxu1 %v9446_v33  ;;  %7652 = vmatprep.subr.bf16.mxu0 %v7976_v60  ;;  %v7978_v33 = vld [vmem:[#allocation9 + $0x208] sm:$0xff]  }
 0x2e2   : > { %7616 = vmatprep.mubr.bf16.mxu1 %v9472_v51  ;;  %7269 = vmatpush3.bf16.msra.mxu1 %v7957_v13 }
 0x2e3   : > { %7270 = vmatprep.subr.bf16.mxu1 %v7959_v29  ;;  %5120 = vmatmul.mubr.bf16.gmra.mxu0 %v9990_v5 }
 0x2e4   : > { %5127 = vmatprep.mubr.bf16.mxu0 %v9553_v41  ;;  %7653 = vmatpush3.bf16.msra.mxu0 %v7976_v60 }
 0x2e5   : > { %7654 = vmatprep.subr.bf16.mxu0 %v7977_v54 }
 0x2e6   : > { %7271 = vmatpush3.bf16.msra.mxu1 %v7960_v20 }
 0x2e7   : > { %7272 = vmatprep.subr.bf16.mxu1 %v7961_v26 }
 0x2e8   : > { %7655 = vmatpush3.bf16.msra.mxu0 %v7977_v54 }
 0x2e9   : > { %7617 = vmatmul.mubr.bf16.gmra.mxu1 %v9512_v7  ;;  %7656 = vmatprep.subr.bf16.mxu0 %v7978_v33 }
 0x2ea   : > { %7620 = vmatprep.mubr.bf16.mxu1 %v10681_v30  ;;  %7273 = vmatpush3.bf16.msra.mxu1 %v7962_v61 }
 0x2eb   : > { %7274 = vmatprep.subr.bf16.mxu1 %v7964_v19  ;;  %5128 = vmatmul.mubr.bf16.gmra.mxu0 %v9996_v47 }
 0x2ec   : > { %5135 = vmatprep.mubr.bf16.mxu0 %v9594_v53  ;;  %7657 = vmatpush3.bf16.msra.mxu0 %v7978_v33 }
 0x2ed   : > { %7658 = vmatprep.subr.bf16.mxu0 %v7979_v11 }
 0x2ee   : > { %7275 = vmatpush3.bf16.msra.mxu1 %v7965_v18 }
 0x2ef   : > { %7276 = vmatprep.subr.bf16.mxu1 %v7966_v39 }
 0x2f0   : > { %7659 = vmatpush3.bf16.msra.mxu0 %v7979_v11 }
 0x2f1   : > { %7621 = vmatmul.mubr.bf16.gmra.mxu1 %v9621_v1 }
 0x2f2   : > { %7624 = vmatprep.mubr.bf16.mxu1 %v9656_v37  ;;  %7277 = vmatpush3.bf16.msra.mxu1 %v7967_v63 }
 0x2f3   : > { %7278 = vmatprep.subr.bf16.mxu1 %v7969_v50  ;;  %5136 = vmatmul.mubr.bf16.gmra.mxu0 %v10002_v25 }
 0x2f4   : > { %5143 = vmatprep.mubr.bf16.mxu0 %v9652_v8 }
 0x2f6   : > { %7279 = vmatpush3.bf16.msra.mxu1 %v7970_v57 }
 0x2f7   : > { %7280 = vmatprep.subr.bf16.mxu1 %v7971_v4 }
 0x2f9   : > { %7625 = vmatmul.mubr.bf16.gmra.mxu1 %v9713_v43 }
 0x2fa   : > { %7628 = vmatprep.mubr.bf16.mxu1 %v9759_v12  ;;  %7281 = vmatpush3.bf16.msra.mxu1 %v7972_v17 }
 0x2fb   : > { %7282 = vmatprep.subr.bf16.mxu1 %v7974_v15  ;;  %5144 = vmatmul.mubr.bf16.gmra.mxu0 %v10008_v38 }
 0x2fc   : > { %5151 = vmatprep.mubr.bf16.mxu0 %v9697_v32 }
 0x2fe   : > { %7283 = vmatpush3.bf16.msra.mxu1 %v7975_v40 }
 0x301   : > { %7629 = vmatmul.mubr.bf16.gmra.mxu1 %v9792_v22 }
 0x302   : > { %7632 = vmatprep.mubr.bf16.mxu1 %v9826_v59 }
 0x303   : > { %5152 = vmatmul.mubr.bf16.gmra.mxu0 %v10014_v23 }
 0x304   : > { %5159 = vmatprep.mubr.bf16.mxu0 %v9742_v28 }
 0x309   : > { %7633 = vmatmul.mubr.bf16.gmra.mxu1 %v9864_v2 }
 0x30a   : > { %7636 = vmatprep.mubr.bf16.mxu1 %v9902_v52 }
 0x30b   : > { %5160 = vmatmul.mubr.bf16.gmra.mxu0 %v10020_v34 }
 0x30c   : > { %5167 = vmatprep.mubr.bf16.mxu0 %v9787_v45 }
 0x311   : > { %7637 = vmatmul.mubr.bf16.gmra.mxu1 %v9910_v9 }
 0x312   : > { %7640 = vmatprep.mubr.bf16.mxu1 %v9931_v42 }
 0x313   : > { %5168 = vmatmul.mubr.bf16.gmra.mxu0 %v9728_v46 }
 0x314   : > { %5175 = vmatprep.mubr.bf16.mxu0 %v9821_v14 }
 0x315   : > { %v7012_v13 = vpop.f32.mrf.mxu1  ;;  %v7566_v29 = vpop.f32.mrf.mxu0 }
 0x317   : > { %v7013_v60 = vpop.f32.mrf.mxu1  ;;  %v4800_v20 = vpop.f32.mrf.mxu0 }
 0x318   : > { %v7014_v26 = vadd.f32 %v7013_v60, %v7012_v13 }
 0x319   : > { %7641 = vmatmul.mubr.bf16.gmra.mxu1 %v9957_v3  ;;  %v7015_v54 = vpop.f32.mrf.mxu1  ;;  %v7567_v46 = vpop.f32.mrf.mxu0 }
 0x31a   : > { %5618 = vmatprep.mubr.bf16.mxu1 %v9521_v56  ;;  %v10030_v61 = vadd.f32 %v7014_v26, %v4800_v20 }
 0x31b   : > { %v7016_v19 = vpop.f32.mrf.mxu1  ;;  %5176 = vmatmul.mubr.bf16.gmra.mxu0 %v9746_v55  ;;  %v10038_v63 = vpop.f32.mrf.mxu0 }
 0x31c   : > { %v10032_v33 = vadd.f32 %v7016_v19, %v7015_v54  ;;  %5183 = vmatprep.mubr.bf16.mxu0 %v9857_v27 }
 0x31e   : > { %v7018_v18 = vpop.f32.mrf.mxu1 }
 0x320   : > { %v7019_v39 = vpop.f32.mrf.mxu1 }
 0x321   : > { %5619 = vmatmul.mubr.bf16.vlgmr.msra.gmra.mxu1 %v9990_v5  ;;  %v7020_v11 = vadd.f32 %v7019_v39, %v7018_v18 }
 0x322   : > { %5626 = vmatprep.mubr.bf16.mxu1 %v9553_v41  ;;  %v7021_v56 = vpop.f32.mrf.mxu1 }
 0x323   : > { %v10040_v50 = vadd.f32 %v7566_v29, %v7020_v11  ;;  %5184 = vmatmul.mubr.bf16.gmra.mxu0 %v9795_v21 }
 0x324   : > { %v7022_v57 = vpop.f32.mrf.mxu1  ;;  %v7570_v4 = vpop.f32.mrf.mxu0  ;;  %5191 = vmatprep.mubr.bf16.mxu0 %v9891_v62 }
 0x325   : > { %v7023_v55 = vadd.f32 %v7022_v57, %v7021_v56 }
 0x326   : > { %v7024_v17 = vpop.f32.mrf.mxu1  ;;  %v4816_v5 = vpop.f32.mrf.mxu0 }
 0x327   : > { %v10044_v15 = vadd.f32 %v7567_v46, %v7023_v55 }
 0x328   : > { %v7025_v40 = vpop.f32.mrf.mxu1 }
 0x329   : > { %5627 = vmatmul.mubr.bf16.gmra.mxu1 %v9996_v47  ;;  %v7026_v41 = vadd.f32 %v7025_v40, %v7024_v17  ;;  %v7571_v47 = vpop.f32.mrf.mxu0 }
 0x32a   : > { %5634 = vmatprep.mubr.bf16.mxu1 %v9594_v53  ;;  %v7027_v13 = vpop.f32.mrf.mxu1 }
 0x32b   : > { %v10048_v29 = vadd.f32 %v7026_v41, %v4816_v5  ;;  %5192 = vmatmul.mubr.bf16.gmra.mxu0 %v9839_v35  ;;  %v10059_v11 = vpop.f32.mrf.mxu0 }
 0x32c   : > { %v7028_v60 = vpop.f32.mrf.mxu1  ;;  %5199 = vmatprep.mubr.bf16.mxu0 %v9921_v24 }
 0x32d   : > { %v10051_v20 = vadd.f32 %v7028_v60, %v7027_v13 }
 0x32e   : > { %v7030_v26 = vpop.f32.mrf.mxu1 }
 0x330   : > { %v7031_v54 = vpop.f32.mrf.mxu1 }
 0x331   : > { %5635 = vmatmul.mubr.bf16.gmra.mxu1 %v10002_v25  ;;  %v7032_v19 = vadd.f32 %v7031_v54, %v7030_v26 }
 0x332   : > { %5642 = vmatprep.mubr.bf16.mxu1 %v9652_v8  ;;  %v7033_v46 = vpop.f32.mrf.mxu1 }
 0x333   : > { %v10056_v53 = vadd.f32 %v7570_v4, %v7032_v19  ;;  %5200 = vmatmul.mubr.bf16.gmra.mxu0 %v9876_v58 }
 0x334   : > { %v7034_v18 = vpop.f32.mrf.mxu1  ;;  %5207 = vmatprep.mubr.bf16.mxu0 %v9936_v44 }
 0x335   : > { %v7035_v39 = vadd.f32 %v7034_v18, %v7033_v46 }
 0x337   : > { %v10062_v56 = vadd.f32 %v7571_v47, %v7035_v39 }
 0x338   : > { %v7574_v57 = vpop.f32.mrf.mxu0 }
 0x339   : > { %5643 = vmatmul.mubr.bf16.gmra.mxu1 %v10008_v38  ;;  %v7036_v25 = vpop.f32.mrf.mxu1 }
 0x33a   : > { %5650 = vmatprep.mubr.bf16.mxu1 %v9697_v32  ;;  %v4832_v55 = vpop.f32.mrf.mxu0 }
 0x33b   : > { %v7037_v8 = vpop.f32.mrf.mxu1  ;;  %5208 = vmatmul.mubr.bf16.gmra.mxu0 %v9896_v10 }
 0x33c   : > { %v7038_v4 = vadd.f32 %v7037_v8, %v7036_v25  ;;  %5215 = vmatprep.mubr.bf16.mxu0 %v9949_v49  ;;  %v7575_v26 = vpop.f32.mrf.mxu0 }
 0x33d   : > { %v7039_v17 = vpop.f32.mrf.mxu1 }
 0x33e   : > { %v10068_v40 = vadd.f32 %v7038_v4, %v4832_v55  ;;  %v10079_v46 = vpop.f32.mrf.mxu0 }
 0x33f   : > { %v7040_v5 = vpop.f32.mrf.mxu1 }
 0x340   : > { %v10070_v41 = vadd.f32 %v7040_v5, %v7039_v17 }
 0x341   : > { %5651 = vmatmul.mubr.bf16.gmra.mxu1 %v10014_v23  ;;  %v7042_v13 = vpop.f32.mrf.mxu1 }
 0x342   : > { %5658 = vmatprep.mubr.bf16.mxu1 %v9742_v28 }
 0x343   : > { %v7043_v38 = vpop.f32.mrf.mxu1  ;;  %5216 = vmatmul.mubr.bf16.gmra.mxu0 %v9912_v48 }
 0x344   : > { %v7044_v32 = vadd.f32 %v7043_v38, %v7042_v13  ;;  %5223 = vmatprep.mubr.bf16.mxu0 %v9962_v31 }
 0x345   : > { %v7045_v60 = vpop.f32.mrf.mxu1 }
 0x346   : > { %v10075_v54 = vadd.f32 %v7574_v57, %v7044_v32 }
 0x347   : > { %v7046_v19 = vpop.f32.mrf.mxu1 }
 0x348   : > { %v7047_v47 = vadd.f32 %v7046_v19, %v7045_v60  ;;  %v8008_v60 = vld [vmem:[#allocation3 + $0x6c] sm:$0xff]  }
 0x349   : > { %5659 = vmatmul.mubr.bf16.gmra.mxu1 %v10020_v34  ;;  %v8007_v34 = vld [vmem:[#allocation3 + $0x60] sm:$0xff]  }
 0x34a   : > { %5666 = vmatprep.mubr.bf16.mxu1 %v9787_v45  ;;  %v10082_v23 = vadd.f32 %v7575_v26, %v7047_v47 }
 0x34b   : > { %v7048_v28 = vpop.f32.mrf.mxu1  ;;  %5224 = vmatmul.mubr.bf16.gmra.mxu0 %v9941_v36 }
 0x34c   : > { %v7578_v18 = vpop.f32.mrf.mxu0  ;;  %7660 = vmatprep.mubr.bf16.mxu0 %v9472_v51 }
 0x34d   : > { %v7049_v39 = vpop.f32.mrf.mxu1 }
 0x34e   : > { %v7050_v25 = vadd.f32 %v7049_v39, %v7048_v28  ;;  %v4848_v57 = vpop.f32.mrf.mxu0 }
 0x34f   : > { %v7051_v8 = vpop.f32.mrf.mxu1 }
 0x350   : > { %v10086_v55 = vadd.f32 %v7050_v25, %v4848_v57  ;;  %v7579_v4 = vpop.f32.mrf.mxu0 }
 0x351   : > { %5667 = vmatmul.mubr.bf16.gmra.mxu1 %v8007_v34  ;;  %v7052_v17 = vpop.f32.mrf.mxu1 }
 0x352   : > { %5674 = vmatprep.mubr.bf16.mxu1 %v9821_v14  ;;  %v7053_v45 = vadd.f32 %v7052_v17, %v7051_v8  ;;  %v4851_v5 = vpop.f32.mrf.mxu0 }
 0x353   : > { %7661 = vmatmul.mubr.bf16.vlgmr.msra.gmra.mxu0 %v9512_v7 }
 0x354   : > { %v10089_v13 = vadd.f32 %v7053_v45, %v4851_v5  ;;  %7664 = vmatprep.mubr.bf16.mxu0 %v10681_v30 }
 0x355   : > { %v7054_v38 = vpop.f32.mrf.mxu1 }
 0x357   : > { %v7055_v51 = vpop.f32.mrf.mxu1 }
 0x358   : > { %v7056_v32 = vadd.f32 %v7055_v51, %v7054_v38 }
 0x359   : > { %5675 = vmatmul.mubr.bf16.gmra.mxu1 %v8008_v60  ;;  %v7057_v26 = vpop.f32.mrf.mxu1 }
 0x35a   : > { %5682 = vmatprep.mubr.bf16.mxu1 %v9857_v27  ;;  %v10094_v19 = vadd.f32 %v7578_v18, %v7056_v32 }
 0x35b   : > { %v7058_v47 = vpop.f32.mrf.mxu1  ;;  %7665 = vmatmul.mubr.bf16.gmra.mxu0 %v9621_v1 }
 0x35c   : > { %v7059_v14 = vadd.f32 %v7058_v47, %v7057_v26  ;;  %7668 = vmatprep.mubr.bf16.mxu0 %v9656_v37 }
 0x35e   : > { %v10097_v28 = vadd.f32 %v7579_v4, %v7059_v14  ;;  %v7060_v39 = vpop.f32.mrf.mxu1  ;;  %v7582_v25 = vpop.f32.mrf.mxu0 }
 0x360   : > { %v7061_v7 = vpop.f32.mrf.mxu1  ;;  %v4864_v30 = vpop.f32.mrf.mxu0 }
 0x361   : > { %5683 = vmatmul.mubr.bf16.gmra.mxu1 %v9795_v21  ;;  %v7062_v57 = vadd.f32 %v7061_v7, %v7060_v39 }
 0x362   : > { %5690 = vmatprep.mubr.bf16.mxu1 %v9891_v62  ;;  %v7063_v27 = vpop.f32.mrf.mxu1  ;;  %v7583_v18 = vpop.f32.mrf.mxu0 }
 0x363   : > { %v10102_v8 = vadd.f32 %v7062_v57, %v4864_v30  ;;  %7669 = vmatmul.mubr.bf16.gmra.mxu0 %v9713_v43 }
 0x364   : > { %v7064_v34 = vpop.f32.mrf.mxu1  ;;  %v4867_v17 = vpop.f32.mrf.mxu0  ;;  %7672 = vmatprep.mubr.bf16.mxu0 %v9759_v12 }
 0x365   : > { %v7065_v1 = vadd.f32 %v7064_v34, %v7063_v27 }
 0x367   : > { %v7066_v4 = vpop.f32.mrf.mxu1  ;;  %v10106_v37 = vadd.f32 %v7065_v1, %v4867_v17 }
 0x369   : > { %5691 = vmatmul.mubr.bf16.gmra.mxu1 %v9839_v35  ;;  %v7067_v21 = vpop.f32.mrf.mxu1 }
 0x36a   : > { %5698 = vmatprep.mubr.bf16.mxu1 %v9921_v24  ;;  %v7068_v62 = vadd.f32 %v7067_v21, %v7066_v4 }
 0x36b   : > { %v7069_v45 = vpop.f32.mrf.mxu1  ;;  %7673 = vmatmul.mubr.bf16.gmra.mxu0 %v9792_v22 }
 0x36c   : > { %v10110_v5 = vadd.f32 %v7582_v25, %v7068_v62  ;;  %7676 = vmatprep.mubr.bf16.mxu0 %v9826_v59 }
 0x36d   : > { %v7070_v38 = vpop.f32.mrf.mxu1 }
 0x36e   : > { %v7071_v51 = vadd.f32 %v7070_v38, %v7069_v45 }
 0x370   : > { %v10114_v43 = vadd.f32 %v7583_v18, %v7071_v51  ;;  %v7072_v12 = vpop.f32.mrf.mxu1  ;;  %v7980_v18 = vld [vmem:[#allocation3 + $0xcc] sm:$0xff]  }
 0x371   : > { %5699 = vmatmul.mubr.bf16.gmra.mxu1 %v9876_v58  ;;  %v4265_v21 = vshll.u32 %v7980_v18, 16  ;;  %v4343_v45 = vrot.slane %v7980_v18, 1 }
 0x372   : > { %5706 = vmatprep.mubr.bf16.mxu1 %v9936_v44  ;;  %v7073_v35 = vpop.f32.mrf.mxu1  ;;  %v7586_v32 = vpop.f32.mrf.mxu0 }
 0x373   : > { %v7074_v24 = vadd.f32 %v7073_v35, %v7072_v12  ;;  %7677 = vmatmul.mubr.bf16.gmra.mxu0 %v9864_v2  ;;  %v4263_v12 = vshrl.u32 %v7980_v18, 16  ;;  %v4267_v35 = vrot.slane %v4265_v21, 1 }
 0x374   : > { %v7075_v60 = vpop.f32.mrf.mxu1  ;;  %v4880_v26 = vpop.f32.mrf.mxu0  ;;  %7680 = vmatprep.mubr.bf16.mxu0 %v9902_v52 }
 0x375   : > { %v10118_v47 = vadd.f32 %v7074_v24, %v4880_v26 }
 0x376   : > { %v7076_v22 = vpop.f32.mrf.mxu1  ;;  %v7587_v14 = vpop.f32.mrf.mxu0 }
 0x377   : > { %v7077_v59 = vadd.f32 %v7076_v22, %v7075_v60  ;;  %v4268_v22 = vor.u32 %v4267_v35, %v4263_v12 }
 0x378   : > { %v4883_v39 = vpop.f32.mrf.mxu0 }
 0x379   : > { %v7078_v25 = vpop.f32.mrf.mxu1  ;;  %5707 = vmatmul.mubr.bf16.gmra.mxu1 %v9896_v10  ;;  %v10123_v58 = vadd.f32 %v7077_v59, %v4883_v39 }
 0x37a   : > { %5714 = vmatprep.mubr.bf16.mxu1 %v9949_v49  ;;  %v7981_v49 = vld [vmem:[#allocation3 + $0xd4] ss:$0 sps:$4 sm:$0x11]  }
 0x37b   : > { %v7079_v44 = vpop.f32.mrf.mxu1  ;;  %v7590_v30 = vpop.f32.mrf.mxu0  ;;  %7681 = vmatmul.mubr.bf16.gmra.mxu0 %v9910_v9  ;;  %v4344_v38 = vrot.slane %v7981_v49, 1 }
 0x37c   : > { %v7080_v7 = vadd.f32 %v7079_v44, %v7078_v25  ;;  %7684 = vmatprep.mubr.bf16.mxu0 %v9931_v42 }
 0x37d   : > { %v7081_v57 = vpop.f32.mrf.mxu1  ;;  %v4896_v27 = vpop.f32.mrf.mxu0 }
 0x37e   : > { %v10127_v2 = vadd.f32 %v7586_v32, %v7080_v7  ;;  %v4270_v32 = vshll.u32 %v7981_v49, 16 }
 0x37f   : > { %v7082_v52 = vpop.f32.mrf.mxu1  ;;  %v7591_v4 = vpop.f32.mrf.mxu0 }
 0x380   : > { %v7083_v34 = vadd.f32 %v7082_v52, %v7081_v57 }
 0x381   : > { %v7084_v17 = vpop.f32.mrf.mxu1  ;;  %5715 = vmatmul.mubr.bf16.gmra.mxu1 %v9912_v48  ;;  %v4899_v48 = vpop.f32.mrf.mxu0 }
 0x382   : > { %v10131_v10 = vadd.f32 %v7587_v14, %v7083_v34  ;;  %5722 = vmatprep.mubr.bf16.mxu1 %v9962_v31 }
 0x383   : > { %v7085_v1 = vpop.f32.mrf.mxu1  ;;  %7685 = vmatmul.mubr.bf16.gmra.mxu0 %v9957_v3  ;;  %v4345_v3 = vsel %vm1451_vm10, %v4343_v45, %v4344_v38 }
 0x384   : > { %v7086_v9 = vadd.f32 %v7085_v1, %v7084_v17  ;;  %7688 = vmatprep.mubr.bf16.mxu0 %v9973_v0  ;;  %v4272_v0 = vrot.slane %v4270_v32, 1  ;;  %v4804_v32 = vadd.f32 %v10032_v33, %v10038_v63 }
 0x385   : > { %v7087_v62 = vpop.f32.mrf.mxu1 }
 0x386   : > { %v10135_v42 = vadd.f32 %v7086_v9, %v4896_v27  ;;  %v4273_v57 = vsel %vm1216_vm9, %v4268_v22, %v4272_v0 }
 0x387   : > { %v7088_v51 = vpop.f32.mrf.mxu1 }
 0x388   : > { %v7089_v31 = vadd.f32 %v7088_v51, %v7087_v62 }
 0x389   : > { %v7090_v24 = vpop.f32.mrf.mxu1  ;;  %5723 = vmatmul.mubr.bf16.gmra.mxu1 %v9941_v36 }
 0x38a   : > { %v10139_v60 = vadd.f32 %v7089_v31, %v4899_v48  ;;  %5730 = vmatprep.mubr.bf16.mxu1 %v9977_v6 }
 0x38b   : > { %v7091_v26 = vpop.f32.mrf.mxu1  ;;  %v7594_v39 = vpop.f32.mrf.mxu0  ;;  %7689 = vmatmul.mubr.bf16.gmra.mxu0 %v4345_v3 }
 0x38c   : > { %v7092_v14 = vadd.f32 %v7091_v26, %v7090_v24 }
 0x38d   : > { %v7093_v59 = vpop.f32.mrf.mxu1  ;;  %v4912_v7 = vpop.f32.mrf.mxu0 }
 0x38e   : > { %v10143_v25 = vadd.f32 %v7590_v30, %v7092_v14 }
 0x38f   : > { %v7094_v44 = vpop.f32.mrf.mxu1  ;;  %v7595_v6 = vpop.f32.mrf.mxu0 }
 0x390   : > { %v7095_v36 = vadd.f32 %v7094_v44, %v7093_v59 }
 0x391   : > { %v7096_v52 = vpop.f32.mrf.mxu1  ;;  %5731 = vmatmul.mubr.bf16.gmra.mxu1 %v9964_v16  ;;  %v4915_v17 = vpop.f32.mrf.mxu0 }
 0x392   : > { %v10147_v27 = vadd.f32 %v7591_v4, %v7095_v36  ;;  %5738 = vmatprep.mubr.bf16.mxu1 %v4273_v57 }
 0x393   : > { %v7097_v34 = vpop.f32.mrf.mxu1  ;;  %v7148_v21 = vpop.f32.mrf.mxu0 }
 0x394   : > { %v7098_v49 = vadd.f32 %v7097_v34, %v7096_v52 }
 0x395   : > { %v7099_v1 = vpop.f32.mrf.mxu1  ;;  %v7149_v62 = vpop.f32.mrf.mxu0 }
 0x396   : > { %v10149_v9 = vadd.f32 %v7098_v49, %v4912_v7  ;;  %v7150_v38 = vadd.f32 %v7149_v62, %v7148_v21 }
 0x397   : > { %v7100_v30 = vpop.f32.mrf.mxu1  ;;  %v7151_v48 = vpop.f32.mrf.mxu0 }
 0x398   : > { %v7101_v45 = vadd.f32 %v7100_v30, %v7099_v1  ;;  %v5106_v16 = vadd.f32 %v7150_v38, %v10030_v61 }
 0x399   : > { %v7102_v51 = vpop.f32.mrf.mxu1  ;;  %5739 = vmatmul.mubr.bf16.gmra.mxu1 %v7980_v18  ;;  %v7152_v35 = vpop.f32.mrf.mxu0 }
 0x39a   : > { %v10151_v12 = vadd.f32 %v7101_v45, %v4915_v17  ;;  %v7153_v24 = vadd.f32 %v7152_v35, %v7151_v48 }
 0x39b   : > { %v7103_v4 = vpop.f32.mrf.mxu1  ;;  %v7154_v26 = vpop.f32.mrf.mxu0 }
 0x39c   : > { %v7104_v31 = vadd.f32 %v7103_v4, %v7102_v51  ;;  %v5109_v0 = vadd.f32 %v7153_v24, %v4804_v32  ;;  %v4820_v4 = vadd.f32 %v10051_v20, %v10059_v11 }
 0x39d   : > { %v7105_v3 = vpop.f32.mrf.mxu1  ;;  %v7155_v59 = vpop.f32.mrf.mxu0 }
 0x39e   : > { %v10156_v22 = vadd.f32 %v7594_v39, %v7104_v31  ;;  %v7156_v44 = vadd.f32 %v7155_v59, %v7154_v26 }
 0x39f   : > { %v7106_v14 = vpop.f32.mrf.mxu1  ;;  %v7157_v57 = vpop.f32.mrf.mxu0 }
 0x3a0   : > { %v7107_v18 = vadd.f32 %v7106_v14, %v7105_v3  ;;  %v5114_v61 = vadd.f32 %v7156_v44, %v10040_v50 }
 0x3a1   : > { %v7614_v7 = vpop.f32.mrf.mxu1  ;;  %v7158_v34 = vpop.f32.mrf.mxu0 }
 0x3a2   : > { %v10158_v36 = vadd.f32 %v7595_v6, %v7107_v18  ;;  %v7159_v63 = vadd.f32 %v7158_v34, %v7157_v57  ;;  %v10163_v17 = vadd.f32 %v7614_v7, %v5114_v61 }
 0x3a3   : > { %v5266_v52 = vpop.f32.mrf.mxu1  ;;  %v7160_v49 = vpop.f32.mrf.mxu0 }
 0x3a4   : > { %v10161_v33 = vadd.f32 %v5266_v52, %v5106_v16  ;;  %v5117_v1 = vadd.f32 %v7159_v63, %v10044_v15 }
 0x3a5   : > { %v7615_v39 = vpop.f32.mrf.mxu1  ;;  %v7161_v30 = vpop.f32.mrf.mxu0 }
 0x3a6   : > { %v7162_v45 = vadd.f32 %v7161_v30, %v7160_v49  ;;  %v10168_v6 = vadd.f32 %v7615_v39, %v5117_v1 }
 0x3a7   : > { %v5269_v21 = vpop.f32.mrf.mxu1  ;;  %v7163_v50 = vpop.f32.mrf.mxu0 }
 0x3a8   : > { %v10166_v62 = vadd.f32 %v5269_v21, %v5109_v0  ;;  %v5122_v51 = vadd.f32 %v7162_v45, %v10048_v29 }
 0x3a9   : > { %v7618_v38 = vpop.f32.mrf.mxu1  ;;  %v7164_v16 = vpop.f32.mrf.mxu0 }
 0x3aa   : > { %v7165_v35 = vadd.f32 %v7164_v16, %v7163_v50  ;;  %v4836_v50 = vadd.f32 %v10070_v41, %v10079_v46 }
 0x3ab   : > { %v5282_v48 = vpop.f32.mrf.mxu1  ;;  %v7166_v31 = vpop.f32.mrf.mxu0 }
 0x3ac   : > { %v10173_v32 = vadd.f32 %v5282_v48, %v5122_v51  ;;  %v5125_v24 = vadd.f32 %v7165_v35, %v4820_v4 }
 0x3ad   : > { %v7619_v15 = vpop.f32.mrf.mxu1  ;;  %v7167_v26 = vpop.f32.mrf.mxu0 }
 0x3ae   : > { %v7168_v0 = vadd.f32 %v7167_v26, %v7166_v31 }
 0x3af   : > { %v5285_v3 = vpop.f32.mrf.mxu1  ;;  %v7169_v18 = vpop.f32.mrf.mxu0 }
 0x3b0   : > { %v10175_v14 = vadd.f32 %v5285_v3, %v5125_v24  ;;  %v5130_v29 = vadd.f32 %v7168_v0, %v10056_v53 }
 0x3b1   : > { %v7622_v59 = vpop.f32.mrf.mxu1  ;;  %v7170_v7 = vpop.f32.mrf.mxu0 }
 0x3b2   : > { %v7171_v57 = vadd.f32 %v7170_v7, %v7169_v18  ;;  %v10178_v61 = vadd.f32 %v7618_v38, %v5130_v29 }
 0x3b3   : > { %v5298_v44 = vpop.f32.mrf.mxu1  ;;  %v7172_v11 = vpop.f32.mrf.mxu0 }
 0x3b4   : > { %v5133_v52 = vadd.f32 %v7171_v57, %v10062_v56 }
 0x3b5   : > { %v7623_v20 = vpop.f32.mrf.mxu1  ;;  %v7173_v63 = vpop.f32.mrf.mxu0 }
 0x3b6   : > { %v7174_v39 = vadd.f32 %v7173_v63, %v7172_v11  ;;  %v10181_v49 = vadd.f32 %v7619_v15, %v5133_v52 }
 0x3b7   : > { %v5301_v34 = vpop.f32.mrf.mxu1  ;;  %v7175_v21 = vpop.f32.mrf.mxu0 }
 0x3b8   : > { %v5138_v30 = vadd.f32 %v7174_v39, %v10068_v40 }
 0x3b9   : > { %v7626_v1 = vpop.f32.mrf.mxu1  ;;  %v7176_v53 = vpop.f32.mrf.mxu0 }
 0x3ba   : > { %v7177_v38 = vadd.f32 %v7176_v53, %v7175_v21  ;;  %v10186_v51 = vadd.f32 %v5298_v44, %v5138_v30 }
 0x3bb   : > { %v5314_v45 = vpop.f32.mrf.mxu1  ;;  %v7178_v16 = vpop.f32.mrf.mxu0 }
 0x3bc   : > { %v5141_v56 = vadd.f32 %v7177_v38, %v4836_v50 }
 0x3bd   : > { %v7627_v48 = vpop.f32.mrf.mxu1  ;;  %v7179_v35 = vpop.f32.mrf.mxu0 }
 0x3be   : > { %v7180_v31 = vadd.f32 %v7179_v35, %v7178_v16  ;;  %v10188_v15 = vadd.f32 %v5301_v34, %v5141_v56 }
 0x3bf   : > { %v5317_v4 = vpop.f32.mrf.mxu1  ;;  %v7181_v3 = vpop.f32.mrf.mxu0 }
 0x3c0   : > { %v5146_v40 = vadd.f32 %v7180_v31, %v10075_v54 }
 0x3c1   : > { %v7630_v24 = vpop.f32.mrf.mxu1  ;;  %v7182_v0 = vpop.f32.mrf.mxu0 }
 0x3c2   : > { %v7183_v18 = vadd.f32 %v7182_v0, %v7181_v3  ;;  %v10191_v29 = vadd.f32 %v7622_v59, %v5146_v40 }
 0x3c3   : > { %v5330_v26 = vpop.f32.mrf.mxu1  ;;  %v7184_v46 = vpop.f32.mrf.mxu0 }
 0x3c4   : > { %v5149_v44 = vadd.f32 %v7183_v18, %v10082_v23 }
 0x3c5   : > { %v7631_v41 = vpop.f32.mrf.mxu1  ;;  %v7185_v57 = vpop.f32.mrf.mxu0 }
 0x3c6   : > { %v7186_v11 = vadd.f32 %v7185_v57, %v7184_v46  ;;  %v10194_v52 = vadd.f32 %v7623_v20, %v5149_v44 }
 0x3c7   : > { %v5333_v7 = vpop.f32.mrf.mxu1  ;;  %v7187_v63 = vpop.f32.mrf.mxu0 }
 0x3c8   : > { %v5154_v39 = vadd.f32 %v7186_v11, %v10086_v55 }
 0x3c9   : > { %v10196_v34 = vpop.f32.mrf.mxu1  ;;  %v7188_v21 = vpop.f32.mrf.mxu0 }
 0x3ca   : > { %v7189_v30 = vadd.f32 %v7188_v21, %v7187_v63  ;;  %v10199_v53 = vadd.f32 %v5314_v45, %v5154_v39 }
 0x3cb   : > { %v5346_v54 = vpop.f32.mrf.mxu1  ;;  %v7190_v50 = vpop.f32.mrf.mxu0 }
 0x3cc   : > { %v5157_v23 = vadd.f32 %v7189_v30, %v10089_v13 }
 0x3cd   : > { %v10201_v59 = vpop.f32.mrf.mxu1  ;;  %v7191_v16 = vpop.f32.mrf.mxu0 }
 0x3ce   : > { %v7192_v56 = vadd.f32 %v7191_v16, %v7190_v50  ;;  %v10204_v20 = vadd.f32 %v5317_v4, %v5157_v23 }
 0x3cf   : > { %v5349_v38 = vpop.f32.mrf.mxu1  ;;  %v7193_v31 = vpop.f32.mrf.mxu0 }
 0x3d0   : > { %v5162_v55 = vadd.f32 %v7192_v56, %v10094_v19 }
 0x3d1   : > { %v10206_v35 = vpop.f32.mrf.mxu1  ;;  %v7194_v40 = vpop.f32.mrf.mxu0 }
 0x3d2   : > { %v7195_v45 = vadd.f32 %v7194_v40, %v7193_v31  ;;  %v10211_v0 = vadd.f32 %v7626_v1, %v5162_v55 }
 0x3d3   : > { %v10209_v3 = vpop.f32.mrf.mxu1  ;;  %v7196_v46 = vpop.f32.mrf.mxu0 }
 0x3d4   : > { %v5165_v13 = vadd.f32 %v7195_v45, %v10097_v28 }
 0x3d5   : > { %v10213_v18 = vpop.f32.mrf.mxu1  ;;  %v7197_v4 = vpop.f32.mrf.mxu0 }
 0x3d6   : > { %v7198_v57 = vadd.f32 %v7197_v4, %v7196_v46  ;;  %v10218_v11 = vadd.f32 %v7627_v48, %v5165_v13 }
 0x3d7   : > { %v10216_v44 = vpop.f32.mrf.mxu1  ;;  %v7199_v19 = vpop.f32.mrf.mxu0 }
 0x3d8   : > { %v5170_v39 = vadd.f32 %v7198_v57, %v10102_v8 }
 0x3d9   : > { %v10220_v63 = vpop.f32.mrf.mxu1  ;;  %v7200_v1 = vpop.f32.mrf.mxu0 }
 0x3da   : > { %v7201_v30 = vadd.f32 %v7200_v1, %v7199_v19  ;;  %v10225_v50 = vadd.f32 %v5330_v26, %v5170_v39 }
 0x3db   : > { %v10223_v21 = vpop.f32.mrf.mxu1  ;;  %v7202_v28 = vpop.f32.mrf.mxu0 }
 0x3dc   : > { %v5173_v16 = vadd.f32 %v7201_v30, %v10106_v37 }
 0x3dd   : > { %v10227_v23 = vpop.f32.mrf.mxu1  ;;  %v7203_v48 = vpop.f32.mrf.mxu0 }
 0x3de   : > { %v7204_v31 = vadd.f32 %v7203_v48, %v7202_v28  ;;  %v10232_v55 = vadd.f32 %v5333_v7, %v5173_v16 }
 0x3df   : > { %v10230_v56 = vpop.f32.mrf.mxu1  ;;  %v7205_v8 = vpop.f32.mrf.mxu0 }
 0x3e0   : > { %10682 = vst [vmem:[#allocation15_spill] sm:$0xff] %v10232_v55  ;;  %v5178_v45 = vadd.f32 %v7204_v31, %v10110_v5 }
 0x3e1   : > { %v10234_v40 = vpop.f32.mrf.mxu1  ;;  %v7206_v26 = vpop.f32.mrf.mxu0 }
 0x3e2   : > { %v7207_v13 = vadd.f32 %v7206_v26, %v7205_v8  ;;  %v10239_v4 = vadd.f32 %v7630_v24, %v5178_v45 }
 0x3e3   : > { %v10237_v46 = vpop.f32.mrf.mxu1  ;;  %v7208_v37 = vpop.f32.mrf.mxu0 }
 0x3e4   : > { %v5181_v19 = vadd.f32 %v7207_v13, %v10114_v43 }
 0x3e5   : > { %v10241_v57 = vpop.f32.mrf.mxu1  ;;  %v7209_v7 = vpop.f32.mrf.mxu0 }
 0x3e6   : > { %v7210_v1 = vadd.f32 %v7209_v7, %v7208_v37  ;;  %v10246_v30 = vadd.f32 %v7631_v41, %v5181_v19 }
 0x3e7   : > { %v10244_v39 = vpop.f32.mrf.mxu1  ;;  %v7211_v5 = vpop.f32.mrf.mxu0 }
 0x3e8   : > { %v5186_v16 = vadd.f32 %v7210_v1, %v10118_v47 }
 0x3e9   : > { %v10248_v28 = vpop.f32.mrf.mxu1  ;;  %v7212_v24 = vpop.f32.mrf.mxu0 }
 0x3ea   : > { %v7213_v31 = vadd.f32 %v7212_v24, %v7211_v5  ;;  %v10253_v8 = vadd.f32 %v5346_v54, %v5186_v16 }
 0x3eb   : > { %v10251_v48 = vpop.f32.mrf.mxu1  ;;  %v7214_v43 = vpop.f32.mrf.mxu0 }
 0x3ec   : > { %v5189_v26 = vadd.f32 %v7213_v31, %v10123_v58 }
 0x3ed   : > { %v10255_v45 = vpop.f32.mrf.mxu1  ;;  %v7215_v41 = vpop.f32.mrf.mxu0 }
 0x3ee   : > { %v7216_v37 = vadd.f32 %v7215_v41, %v7214_v43  ;;  %v10260_v19 = vadd.f32 %v5349_v38, %v5189_v26 }
 0x3ef   : > { %v10258_v13 = vpop.f32.mrf.mxu1  ;;  %v7217_v47 = vpop.f32.mrf.mxu0 }
 0x3f0   : > { %10683 = vst [vmem:[#allocation16_spill] sm:$0xff] %v10260_v19  ;;  %v5194_v1 = vadd.f32 %v7216_v37, %v10127_v2 }
 0x3f1   : > { %v10262_v7 = vpop.f32.mrf.mxu1  ;;  %v7218_v54 = vpop.f32.mrf.mxu0 }
 0x3f2   : > { %v7219_v5 = vadd.f32 %v7218_v54, %v7217_v47  ;;  %v10268_v16 = vadd.f32 %v10196_v34, %v5194_v1 }
 0x3f3   : > { %v10265_v55 = vpop.f32.mrf.mxu1  ;;  %v7220_v58 = vpop.f32.mrf.mxu0 }
 0x3f4   : > { %v5197_v31 = vadd.f32 %v7219_v5, %v10131_v10 }
 0x3f5   : > { %v10270_v24 = vpop.f32.mrf.mxu1  ;;  %v7221_v38 = vpop.f32.mrf.mxu0 }
 0x3f6   : > { %v7222_v26 = vadd.f32 %v7221_v38, %v7220_v58  ;;  %v10276_v41 = vadd.f32 %v10201_v59, %v5197_v31 }
 0x3f7   : > { %v10273_v43 = vpop.f32.mrf.mxu1  ;;  %v7223_v37 = vpop.f32.mrf.mxu0 }
 0x3f8   : > { %10684 = vst [vmem:[#allocation18_spill] sm:$0xff] %v10276_v41  ;;  %v5202_v47 = vadd.f32 %v7222_v26, %v10135_v42 }
 0x3f9   : > { %v10278_v2 = vpop.f32.mrf.mxu1  ;;  %v7224_v34 = vpop.f32.mrf.mxu0 }
 0x3fa   : > { %v7225_v1 = vadd.f32 %v7224_v34, %v7223_v37  ;;  %v10284_v19 = vadd.f32 %v10209_v3, %v5202_v47 }
 0x3fb   : > { %v10281_v54 = vpop.f32.mrf.mxu1  ;;  %v7226_v5 = vpop.f32.mrf.mxu0 }
 0x3fc   : > { %10685 = vst [vmem:[#allocation19_spill] sm:$0xff] %v10284_v19  ;;  %v5205_v58 = vadd.f32 %v7225_v1, %v10139_v60 }
 0x3fd   : > { %v10286_v10 = vpop.f32.mrf.mxu1  ;;  %v7227_v59 = vpop.f32.mrf.mxu0 }
 0x3fe   : > { %v7228_v31 = vadd.f32 %v7227_v59, %v7226_v5  ;;  %v10292_v41 = vadd.f32 %v10216_v44, %v5205_v58 }
 0x3ff   : > { %v10289_v38 = vpop.f32.mrf.mxu1  ;;  %v7229_v26 = vpop.f32.mrf.mxu0 }
 0x400   : > { %10686 = vst [vmem:[#allocation20_spill] sm:$0xff] %v10292_v41  ;;  %v5210_v37 = vadd.f32 %v7228_v31, %v10143_v25 }
 0x401   : > { %v10294_v42 = vpop.f32.mrf.mxu1  ;;  %v7230_v3 = vpop.f32.mrf.mxu0 }
 0x402   : > { %v7231_v47 = vadd.f32 %v7230_v3, %v7229_v26  ;;  %v10300_v19 = vadd.f32 %v10206_v35, %v5210_v37 }
 0x403   : > { %v10297_v34 = vpop.f32.mrf.mxu1  ;;  %v7232_v1 = vpop.f32.mrf.mxu0 }
 0x404   : > { %10687 = vst [vmem:[#allocation21_spill] sm:$0xff] %v10300_v19  ;;  %v5213_v5 = vadd.f32 %v7231_v47, %v10147_v27 }
 0x405   : > { %v10302_v60 = vpop.f32.mrf.mxu1  ;;  %v7233_v44 = vpop.f32.mrf.mxu0 }
 0x406   : > { %v7234_v58 = vadd.f32 %v7233_v44, %v7232_v1  ;;  %v10308_v41 = vadd.f32 %v10213_v18, %v5213_v5 }
 0x407   : > { %v10305_v59 = vpop.f32.mrf.mxu1  ;;  %v7235_v31 = vpop.f32.mrf.mxu0 }
 0x408   : > { %10688 = vst [vmem:[#allocation17_spill] sm:$0xff] %v10308_v41  ;;  %v5218_v26 = vadd.f32 %v7234_v58, %v10149_v9 }
 0x409   : > { %v10310_v25 = vpop.f32.mrf.mxu1  ;;  %v7236_v35 = vpop.f32.mrf.mxu0 }
 0x40a   : > { %v7237_v37 = vadd.f32 %v7236_v35, %v7235_v31  ;;  %v10316_v19 = vadd.f32 %v10223_v21, %v5218_v26  ;;  %v7292_v26 = vadd.f32 %v10251_v48, %v10248_v28 }
 0x40b   : > { %v10313_v3 = vpop.f32.mrf.mxu1  ;;  %v7238_v47 = vpop.f32.mrf.mxu0 }
 0x40c   : > { %10689 = vst [vmem:[#allocation14_spill] sm:$0xff] %v10316_v19  ;;  %v5221_v1 = vadd.f32 %v7237_v37, %v10151_v12 }
 0x40d   : > { %v10318_v27 = vpop.f32.mrf.mxu1  ;;  %v7239_v18 = vpop.f32.mrf.mxu0 }
 0x40e   : > { %v7240_v5 = vadd.f32 %v7239_v18, %v7238_v47  ;;  %v10324_v41 = vadd.f32 %v10230_v56, %v5221_v1  ;;  %v7286_v56 = vadd.f32 %v10237_v46, %v10234_v40 }
 0x40f   : > { %v10321_v44 = vpop.f32.mrf.mxu1  ;;  %v7241_v58 = vpop.f32.mrf.mxu0 }
 0x410   : > { %v5226_v31 = vadd.f32 %v7240_v5, %v10156_v22  ;;  %v10346_v5 = vld [vmem:[%s10632_s5] ss:$0 sm:$0xff] }
 0x411   : > { %v10326_v9 = vpop.f32.mrf.mxu1  ;;  %v7242_v21 = vpop.f32.mrf.mxu0 }
 0x412   : > { %v10334_v12 = vadd.f32 %v10220_v63, %v5226_v31  ;;  %v7243_v37 = vadd.f32 %v7242_v21, %v7241_v58  ;;  %v7295_v63 = vadd.f32 %v10258_v13, %v10255_v45 }
 0x413   : > { %v10329_v35 = vpop.f32.mrf.mxu1  ;;  %v7662_v47 = vpop.f32.mrf.mxu0 }
 0x414   : > { %v5229_v1 = vadd.f32 %v7243_v37, %v10158_v36  ;;  %v5790_v18 = vadd.f32 %v7662_v47, %v7292_v26  ;;  %v10359_v36 = vld [vmem:[%s10633_s6] ss:$0 sm:$0xff]  ;;  %v7304_v37 = vadd.f32 %v10281_v54, %v10278_v2  ;;  %v7298_v2 = vadd.f32 %v10265_v55, %v10262_v7 }
 0x415   : > { %v10336_v19 = vpop.f32.mrf.mxu1  ;;  %v5781_v28 = vpop.f32.mrf.mxu0 }
 0x416   : > { %v10351_v48 = vadd.f32 %v10227_v23, %v5229_v1  ;;  %v5910_v58 = vadd.f32 %v5790_v18, %v10163_v17  ;;  %v5782_v40 = vadd.f32 %v7286_v56, %v5781_v28  ;;  %v7289_v23 = vadd.f32 %v10244_v39, %v10241_v57 }
 0x417   : > { %v10341_v22 = vpop.f32.mrf.mxu1  ;;  %v7663_v31 = vpop.f32.mrf.mxu0 }
 0x418   : > { %v5949_v21 = vmul.f32 %v10346_v5, %v5910_v58  ;;  %v5908_v26 = vadd.f32 %v5782_v40, %v10161_v33  ;;  %v5793_v45 = vadd.f32 %v7663_v31, %v7295_v63  ;;  %v8009_v63 = vld [vmem:[%s8375_s17 + $0x10] sm:$0xff] }
 0x419   : > { %v10354_v46 = vpop.f32.mrf.mxu1  ;;  %v5784_v17 = vpop.f32.mrf.mxu0 }
 0x41a   : > { %v5988_v47 = vadd.f32 %v10359_v36, %v5949_v21  ;;  %v5947_v56 = vmul.f32 %v10346_v5, %v5908_v26  ;;  %v5911_v1 = vadd.f32 %v5793_v45, %v10168_v6  ;;  %v5785_v33 = vadd.f32 %v7289_v23, %v5784_v17  ;;  %v8010_v45 = vld [vmem:[%s8375_s17] sm:$0xff] }
 0x41b   : > { %v10365_v13 = vpop.f32.mrf.mxu1  ;;  %v7666_v28 = vpop.f32.mrf.mxu0  ;;  %v7307_v21 = vadd.f32 %v10289_v38, %v10286_v10  ;;  %v8011_v38 = vld [vmem:[%s8375_s17 + $0x18] sm:$0xff] }
 0x41c   : > { %v6020_v58 = vadd.f32 %v8009_v63, %v5988_v47  ;;  %v5986_v57 = vadd.f32 %v10359_v36, %v5947_v56  ;;  %v5950_v39 = vmul.f32 %v10346_v5, %v5911_v1  ;;  %v5806_v40 = vadd.f32 %v7666_v28, %v7304_v37 }
 0x41d   : > { %v10372_v18 = vpop.f32.mrf.mxu1  ;;  %v5909_v31 = vadd.f32 %v5785_v33, %v10166_v62  ;;  %v5797_v6 = vpop.f32.mrf.mxu0  ;;  %v7301_v62 = vadd.f32 %v10273_v43, %v10270_v24 }
 0x41e   : > { %v6052_v26 = vmax.f32 %v6020_v58, 0.0  ;;  %v6018_v23 = vadd.f32 %v8010_v45, %v5986_v57  ;;  %v5989_v17 = vadd.f32 %v10359_v36, %v5950_v39  ;;  %v5914_v55 = vadd.f32 %v5806_v40, %v10178_v61 }
 0x41f   : > { %v10379_v54 = vpop.f32.mrf.mxu1  ;;  %v5948_v37 = vmul.f32 %v10346_v5, %v5909_v31  ;;  %v5798_v7 = vadd.f32 %v7298_v2, %v5797_v6  ;;  %v7667_v56 = vpop.f32.mrf.mxu0  ;;  %v7316_v58 = vadd.f32 %v10313_v3, %v10310_v25  ;;  %v8012_v2 = vld [vmem:[%s8375_s17 + $0x8] sm:$0xff] }
 0x420   : > { %6084 = vst [vmem:[%s10394_s30 + $0x10] sm:$0xff] %v6052_v26  ;;  %v6050_v10 = vmax.f32 %v6018_v23, 0.0  ;;  %v6021_v1 = vadd.f32 %v8011_v38, %v5989_v17  ;;  %v5809_v33 = vadd.f32 %v7667_v56, %v7307_v21  ;;  %v5953_v63 = vmul.f32 %v10346_v5, %v5914_v55  ;;  %v8013_v17 = vld [vmem:[%s8375_s17 + $0x30] sm:$0xff] }
 0x421   : > { %v10386_v47 = vpop.f32.mrf.mxu1  ;;  %v5987_v28 = vadd.f32 %v10359_v36, %v5948_v37  ;;  %v5912_v24 = vadd.f32 %v5798_v7, %v10173_v32  ;;  %v5800_v43 = vpop.f32.mrf.mxu0 }
 0x422   : > { %6082 = vst [vmem:[%s10394_s30] sm:$0xff] %v6050_v10  ;;  %v6053_v57 = vmax.f32 %v6021_v1, 0.0  ;;  %v5915_v39 = vadd.f32 %v5809_v33, %v10181_v49  ;;  %v5801_v40 = vadd.f32 %v7301_v62, %v5800_v43  ;;  %v5992_v6 = vadd.f32 %v10359_v36, %v5953_v63 }
 0x423   : > { %v10399_v61 = vpop.f32.mrf.mxu1  ;;  %v6019_v31 = vadd.f32 %v8012_v2, %v5987_v28  ;;  %v5951_v26 = vmul.f32 %v10346_v5, %v5912_v24  ;;  %v7670_v45 = vpop.f32.mrf.mxu0  ;;  %v7310_v49 = vadd.f32 %v10297_v34, %v10294_v42  ;;  %v7319_v62 = vadd.f32 %v10321_v44, %v10318_v27  ;;  %v8014_v34 = vld [vmem:[%s8375_s17 + $0x20] sm:$0xff]  ;;  %v8015_v24 = vld [vmem:[%s8375_s17 + $0x38] sm:$0xff] }
 0x424   : > { %6085 = vst [vmem:[%s10394_s30 + $0x18] sm:$0xff] %v6053_v57  ;;  %v5954_v32 = vmul.f32 %v10346_v5, %v5915_v39  ;;  %v5913_v25 = vadd.f32 %v5801_v40, %v10175_v14  ;;  %v5822_v3 = vadd.f32 %v7670_v45, %v7316_v58  ;;  %v6024_v37 = vadd.f32 %v8013_v17, %v5992_v6 }
 0x425   : > { %v10409_v21 = vpop.f32.mrf.mxu1  ;;  %v6051_v23 = vmax.f32 %v6019_v31, 0.0  ;;  %v5990_v55 = vadd.f32 %v10359_v36, %v5951_v26  ;;  %v5813_v56 = vpop.f32.mrf.mxu0  ;;  %v7313_v57 = vadd.f32 %v10305_v59, %v10302_v60  ;;  %v7328_v31 = vadd.f32 %v10365_v13, %v10354_v46  ;;  %v8016_v26 = vld [vmem:[%s8375_s17 + $0x28] sm:$0xff]  ;;  %v8017_v13 = vld [vmem:[%s8375_s17 + $0x50] sm:$0xff] }
 0x426   : > { %v5993_v10 = vadd.f32 %v10359_v36, %v5954_v32  ;;  %v5952_v14 = vmul.f32 %v10346_v5, %v5913_v25  ;;  %v5918_v38 = vadd.f32 %v5822_v3, %v10191_v29  ;;  %v6056_v42 = vmax.f32 %v6024_v37, 0.0 }
 0x427   : > { %v10419_v7 = vpop.f32.mrf.mxu1  ;;  %6083 = vst [vmem:[%s10394_s30 + $0x8] sm:$0xff] %v6051_v23  ;;  %v6022_v1 = vadd.f32 %v8014_v34, %v5990_v55  ;;  %v5814_v28 = vadd.f32 %v7310_v49, %v5813_v56  ;;  %v7671_v63 = vpop.f32.mrf.mxu0 }
 0x428   : > { %v6025_v43 = vadd.f32 %v8015_v24, %v5993_v10  ;;  %v5991_v27 = vadd.f32 %v10359_v36, %v5952_v14  ;;  %v5957_v44 = vmul.f32 %v10346_v5, %v5918_v38  ;;  %v5825_v58 = vadd.f32 %v7671_v63, %v7319_v62  ;;  %6088 = vst [vmem:[%s10394_s30 + $0x30] sm:$0xff] %v6056_v42  ;;  %v8018_v38 = vld [vmem:[%s8375_s17 + $0x40] sm:$0xff] }
 0x429   : > { %v7338_v33 = vpop.f32.mrf.mxu1  ;;  %v6054_v29 = vmax.f32 %v6022_v1, 0.0  ;;  %v5916_v40 = vadd.f32 %v5814_v28, %v10186_v51  ;;  %v5816_v2 = vpop.f32.mrf.mxu0  ;;  %v7322_v51 = vadd.f32 %v10329_v35, %v10326_v9  ;;  %v7331_v10 = vadd.f32 %v10379_v54, %v10372_v18 }
 0x42a   : > { %v6057_v6 = vmax.f32 %v6025_v43, 0.0  ;;  %v6023_v45 = vadd.f32 %v8016_v26, %v5991_v27  ;;  %v5996_v32 = vadd.f32 %v10359_v36, %v5957_v44  ;;  %v5919_v59 = vadd.f32 %v5825_v58, %v10194_v52  ;;  %v8019_v43 = vld [vmem:[%s8375_s17 + $0x58] sm:$0xff] }
 0x42b   : > { %v7339_v39 = vpop.f32.mrf.mxu1  ;;  %6086 = vst [vmem:[%s10394_s30 + $0x20] sm:$0xff] %v6054_v29  ;;  %v5955_v60 = vmul.f32 %v10346_v5, %v5916_v40  ;;  %v5817_v3 = vadd.f32 %v7313_v57, %v5816_v2  ;;  %v7674_v49 = vpop.f32.mrf.mxu0 }
 0x42c   : > { %6089 = vst [vmem:[%s10394_s30 + $0x38] sm:$0xff] %v6057_v6  ;;  %v6055_v46 = vmax.f32 %v6023_v45, 0.0  ;;  %v6028_v23 = vadd.f32 %v8017_v13, %v5996_v32  ;;  %v5838_v17 = vadd.f32 %v7674_v49, %v7328_v31  ;;  %v5958_v56 = vmul.f32 %v10346_v5, %v5919_v59  ;;  %v8020_v6 = vld [vmem:[%s8375_s17 + $0x48] sm:$0xff]  ;;  %v8021_v32 = vld [vmem:[%s8375_s17 + $0x70] sm:$0xff] }
 0x42d   : > { %v7341_v25 = vpop.f32.mrf.mxu1  ;;  %v5994_v37 = vadd.f32 %v10359_v36, %v5955_v60  ;;  %v5917_v62 = vadd.f32 %v5817_v3, %v10188_v15  ;;  %v5829_v52 = vpop.f32.mrf.mxu0  ;;  %v7340_v29 = vadd.f32 %v7339_v39, %v7338_v33 }
 0x42e   : > { %6087 = vst [vmem:[%s10394_s30 + $0x28] sm:$0xff] %v6055_v46  ;;  %v6060_v9 = vmax.f32 %v6028_v23, 0.0  ;;  %v5922_v35 = vadd.f32 %v5838_v17, %v10211_v0  ;;  %v5830_v14 = vadd.f32 %v7322_v51, %v5829_v52  ;;  %v5997_v34 = vadd.f32 %v10359_v36, %v5958_v56  ;;  %v8022_v17 = vld [vmem:[%s8375_s17 + $0x60] sm:$0xff] }
 0x42f   : > { %v7342_v55 = vpop.f32.mrf.mxu1  ;;  %v6026_v42 = vadd.f32 %v8018_v38, %v5994_v37  ;;  %v5956_v28 = vmul.f32 %v10346_v5, %v5917_v62  ;;  %v7675_v63 = vpop.f32.mrf.mxu0  ;;  %v7325_v0 = vadd.f32 %v10341_v22, %v10336_v19 }
 0x430   : > { %6092 = vst [vmem:[%s10394_s30 + $0x50] sm:$0xff] %v6060_v9  ;;  %v5961_v15 = vmul.f32 %v10346_v5, %v5922_v35  ;;  %v5920_v18 = vadd.f32 %v5830_v14, %v10199_v53  ;;  %v5841_v54 = vadd.f32 %v7675_v63, %v7331_v10  ;;  %v6029_v27 = vadd.f32 %v8019_v43, %v5997_v34 }
 0x431   : > { %v10455_v1 = vpop.f32.mrf.mxu1  ;;  %v6058_v24 = vmax.f32 %v6026_v42, 0.0  ;;  %v5995_v44 = vadd.f32 %v10359_v36, %v5956_v28  ;;  %v5832_v57 = vpop.f32.mrf.mxu0  ;;  %v7343_v13 = vadd.f32 %v7342_v55, %v7341_v25  ;;  %v8023_v55 = vld [vmem:[%s8375_s17 + $0x78] sm:$0xff] }
 0x432   : > { %v6000_v40 = vadd.f32 %v10359_v36, %v5961_v15  ;;  %v5959_v2 = vmul.f32 %v10346_v5, %v5920_v18  ;;  %v5923_v53 = vadd.f32 %v5841_v54, %v10218_v11  ;;  %v6061_v31 = vmax.f32 %v6029_v27, 0.0  ;;  %v8024_v15 = vld [vmem:[%s8375_s17 + $0x68] sm:$0xff] }
 0x433   : > { %v7345_v58 = vpop.f32.mrf.mxu1  ;;  %6090 = vst [vmem:[%s10394_s30 + $0x40] sm:$0xff] %v6058_v24  ;;  %v6027_v19 = vadd.f32 %v8020_v6, %v5995_v44  ;;  %v5833_v26 = vadd.f32 %v7325_v0, %v5832_v57  ;;  %v7678_v45 = vpop.f32.mrf.mxu0  ;;  %v7334_v11 = vadd.f32 %v10399_v61, %v10386_v47  ;;  %v10690_v27 = vld [vmem:[#allocation15_spill] sm:$0xff] }
 0x434   : > { %v6032_v60 = vadd.f32 %v8021_v32, %v6000_v40  ;;  %v5998_v33 = vadd.f32 %v10359_v36, %v5959_v2  ;;  %v5962_v39 = vmul.f32 %v10346_v5, %v5923_v53  ;;  %v5854_v59 = vadd.f32 %v7678_v45, %v7340_v29  ;;  %6093 = vst [vmem:[%s10394_s30 + $0x58] sm:$0xff] %v6061_v31  ;;  %v8025_v40 = vld [vmem:[%s8375_s17 + $0x90] sm:$0xff] }
 0x435   : > { %v10470_v22 = vpop.f32.mrf.mxu1  ;;  %v6059_v3 = vmax.f32 %v6027_v19, 0.0  ;;  %v5921_v51 = vadd.f32 %v5833_v26, %v10204_v20  ;;  %v5845_v46 = vpop.f32.mrf.mxu0  ;;  %v7337_v20 = vadd.f32 %v10419_v7, %v10409_v21  ;;  %v7346_v29 = vadd.f32 %v7345_v58, %v10455_v1 }
 0x436   : > { %v6064_v23 = vmax.f32 %v6032_v60, 0.0  ;;  %v6030_v37 = vadd.f32 %v8022_v17, %v5998_v33  ;;  %v6001_v56 = vadd.f32 %v10359_v36, %v5962_v39  ;;  %v5926_v61 = vadd.f32 %v5854_v59, %v10239_v4  ;;  %v8026_v33 = vld [vmem:[%s8375_s17 + $0x80] sm:$0xff] }
 0x437   : > { %v10478_v49 = vpop.f32.mrf.mxu1  ;;  %6091 = vst [vmem:[%s10394_s30 + $0x48] sm:$0xff] %v6059_v3  ;;  %v5960_v47 = vmul.f32 %v10346_v5, %v5921_v51  ;;  %v5846_v52 = vadd.f32 %v7334_v11, %v5845_v46  ;;  %v7679_v10 = vpop.f32.mrf.mxu0  ;;  %v8027_v11 = vld [vmem:[%s8375_s17 + $0x98] sm:$0xff] }
 0x438   : > { %6096 = vst [vmem:[%s10394_s30 + $0x70] sm:$0xff] %v6064_v23  ;;  %v6062_v25 = vmax.f32 %v6030_v37, 0.0  ;;  %v6033_v9 = vadd.f32 %v8023_v55, %v6001_v56  ;;  %v5857_v35 = vadd.f32 %v7679_v10, %v7343_v13  ;;  %v5965_v42 = vmul.f32 %v10346_v5, %v5926_v61 }
 0x439   : > { %v7350_v62 = vpop.f32.mrf.mxu1  ;;  %v5999_v14 = vadd.f32 %v10359_v36, %v5960_v47  ;;  %v5924_v34 = vadd.f32 %v5846_v52, %v10225_v50  ;;  %v5848_v4 = vpop.f32.mrf.mxu0  ;;  %v7349_v23 = vadd.f32 %v10478_v49, %v10470_v22  ;;  %v8028_v47 = vld [vmem:[%s8375_s17 + $0x88] sm:$0xff] }
 0x43a   : > { %6094 = vst [vmem:[%s10394_s30 + $0x60] sm:$0xff] %v6062_v25  ;;  %v6065_v28 = vmax.f32 %v6033_v9, 0.0  ;;  %v5927_v21 = vadd.f32 %v5857_v35, %v10246_v30  ;;  %v5849_v7 = vadd.f32 %v7337_v20, %v5848_v4  ;;  %v6004_v54 = vadd.f32 %v10359_v36, %v5965_v42  ;;  %v10691_v25 = vld [vmem:[#allocation18_spill] sm:$0xff]  ;;  %v10692_v4 = vld [vmem:[#allocation16_spill] sm:$0xff] }
 0x43b   : > { %v7351_v38 = vpop.f32.mrf.mxu1  ;;  %v6031_v18 = vadd.f32 %v8024_v15, %v5999_v14  ;;  %v5963_v24 = vmul.f32 %v10346_v5, %v5924_v34  ;;  %v7682_v43 = vpop.f32.mrf.mxu0  ;;  %v8030_v15 = vld [vmem:[%s8375_s17 + $0xa0] sm:$0xff] }
 0x43c   : > { %v7352_v63 = vadd.f32 %v7351_v38, %v7350_v62  ;;  %6097 = vst [vmem:[%s10394_s30 + $0x78] sm:$0xff] %v6065_v28  ;;  %v5966_v50 = vmul.f32 %v10346_v5, %v5927_v21  ;;  %v5925_v44 = vadd.f32 %v5849_v7, %v10690_v27  ;;  %v6036_v2 = vadd.f32 %v8025_v40, %v6004_v54  ;;  %v10693_v27 = vld [vmem:[#allocation19_spill] sm:$0xff] }
 0x43d   : > { %v7353_v0 = vpop.f32.mrf.mxu1  ;;  %v6063_v30 = vmax.f32 %v6031_v18, 0.0  ;;  %v6002_v53 = vadd.f32 %v10359_v36, %v5963_v24  ;;  %v5861_v6 = vpop.f32.mrf.mxu0 }
 0x43e   : > { %v5870_v57 = vadd.f32 %v7682_v43, %v7352_v63  ;;  %v6005_v26 = vadd.f32 %v10359_v36, %v5966_v50  ;;  %v5964_v45 = vmul.f32 %v10346_v5, %v5925_v44  ;;  %v6068_v60 = vmax.f32 %v6036_v2, 0.0 }
 0x43f   : > { %v7354_v31 = vpop.f32.mrf.mxu1  ;;  %6095 = vst [vmem:[%s10394_s30 + $0x68] sm:$0xff] %v6063_v30  ;;  %v6034_v1 = vadd.f32 %v8026_v33, %v6002_v53  ;;  %v5862_v39 = vadd.f32 %v7346_v29, %v5861_v6  ;;  %v7683_v59 = vpop.f32.mrf.mxu0  ;;  %v8031_v29 = vld [vmem:[%s8375_s17 + $0xb8] sm:$0xff] }
 0x440   : > { %v7355_v19 = vadd.f32 %v7354_v31, %v7353_v0  ;;  %v5930_v32 = vadd.f32 %v5870_v57, %v10268_v16  ;;  %v6037_v3 = vadd.f32 %v8027_v11, %v6005_v26  ;;  %v6003_v51 = vadd.f32 %v10359_v36, %v5964_v45  ;;  %6100 = vst [vmem:[%s10394_s30 + $0x90] sm:$0xff] %v6068_v60  ;;  %v8032_v45 = vld [vmem:[%s8375_s17 + $0xa8] sm:$0xff] }
 0x441   : > { %v7356_v58 = vpop.f32.mrf.mxu1  ;;  %v6066_v16 = vmax.f32 %v6034_v1, 0.0  ;;  %v5928_v37 = vadd.f32 %v5862_v39, %v10253_v8  ;;  %v5864_v56 = vpop.f32.mrf.mxu0  ;;  %v8029_v8 = vld [vmem:[%s8375_s17 + $0xb0] sm:$0xff] }
 0x442   : > { %v5969_v46 = vmul.f32 %v10346_v5, %v5930_v32  ;;  %v5873_v13 = vadd.f32 %v7683_v59, %v7355_v19  ;;  %v6069_v62 = vmax.f32 %v6037_v3, 0.0  ;;  %v6035_v61 = vadd.f32 %v8028_v47, %v6003_v51  ;;  %v10694_v39 = vld [vmem:[#allocation20_spill] sm:$0xff] }
 0x443   : > { %v7357_v17 = vpop.f32.mrf.mxu1  ;;  %6098 = vst [vmem:[%s10394_s30 + $0x80] sm:$0xff] %v6066_v16  ;;  %v5967_v20 = vmul.f32 %v10346_v5, %v5928_v37  ;;  %v5865_v49 = vadd.f32 %v7349_v23, %v5864_v56  ;;  %v7686_v55 = vpop.f32.mrf.mxu0  ;;  %v8033_v23 = vld [vmem:[%s8375_s17 + $0xc0] sm:$0xff] }
 0x444   : > { %v6008_v52 = vadd.f32 %v10359_v36, %v5969_v46  ;;  %v5931_v22 = vadd.f32 %v5873_v13, %v10691_v25  ;;  %6101 = vst [vmem:[%s10394_s30 + $0x98] sm:$0xff] %v6069_v62  ;;  %v6067_v9 = vmax.f32 %v6035_v61, 0.0  ;;  %v7358_v35 = vadd.f32 %v7357_v17, %v7356_v58  ;;  %v10695_v46 = vld [vmem:[#allocation21_spill] sm:$0xff] }
 0x445   : > { %v7359_v10 = vpop.f32.mrf.mxu1  ;;  %v6006_v38 = vadd.f32 %v10359_v36, %v5967_v20  ;;  %v5929_v28 = vadd.f32 %v5865_v49, %v10692_v4  ;;  %v5877_v63 = vpop.f32.mrf.mxu0 }
 0x446   : > { %v6040_v14 = vadd.f32 %v8029_v8, %v6008_v52  ;;  %v5970_v34 = vmul.f32 %v10346_v5, %v5931_v22  ;;  %6099 = vst [vmem:[%s10394_s30 + $0x88] sm:$0xff] %v6067_v9  ;;  %v5878_v7 = vadd.f32 %v7358_v35, %v5877_v63  ;;  %v10696_v22 = vld [vmem:[#allocation17_spill] sm:$0xff] }
 0x447   : > { %v7360_v42 = vpop.f32.mrf.mxu1  ;;  %v6038_v18 = vadd.f32 %v8030_v15, %v6006_v38  ;;  %v5968_v24 = vmul.f32 %v10346_v5, %v5929_v28  ;;  %v7687_v43 = vpop.f32.mrf.mxu0  ;;  %v10697_v15 = vld [vmem:[#allocation14_spill] sm:$0xff] }
 0x448   : > { %v6072_v21 = vmax.f32 %v6040_v14, 0.0  ;;  %v6009_v54 = vadd.f32 %v10359_v36, %v5970_v34  ;;  %v7361_v50 = vadd.f32 %v7360_v42, %v7359_v10  ;;  %v5932_v44 = vadd.f32 %v5878_v7, %v10693_v27  ;;  %v8035_v14 = vld [vmem:[%s8375_s17 + $0xd0] sm:$0xff] }
 0x449   : > { %v7362_v0 = vpop.f32.mrf.mxu1  ;;  %v6070_v57 = vmax.f32 %v6038_v18, 0.0  ;;  %v6007_v40 = vadd.f32 %v10359_v36, %v5968_v24  ;;  %v5880_v53 = vpop.f32.mrf.mxu0  ;;  %v8036_v24 = vld [vmem:[%s8375_s17 + $0xd8] sm:$0xff] }
 0x44a   : > { %6104 = vst [vmem:[%s10394_s30 + $0xb0] sm:$0xff] %v6072_v21  ;;  %v6041_v30 = vadd.f32 %v8031_v29, %v6009_v54  ;;  %v5971_v6 = vmul.f32 %v10346_v5, %v5932_v44  ;;  %v5881_v19 = vadd.f32 %v7361_v50, %v5880_v53  ;;  %v8037_v53 = vld [vmem:[%s8375_s17 + $0xe0] sm:$0xff] }
 0x44b   : > { %v7363_v2 = vpop.f32.mrf.mxu1  ;;  %6102 = vst [vmem:[%s10394_s30 + $0xa0] sm:$0xff] %v6070_v57  ;;  %v6039_v32 = vadd.f32 %v8032_v45, %v6007_v40  ;;  %v7690_v33 = vpop.f32.mrf.mxu0 }
 0x44c   : > { %v7364_v31 = vadd.f32 %v7363_v2, %v7362_v0  ;;  %v6073_v26 = vmax.f32 %v6041_v30, 0.0  ;;  %v6010_v58 = vadd.f32 %v10359_v36, %v5971_v6  ;;  %v5933_v59 = vadd.f32 %v5881_v19, %v10694_v39 }
 0x44d   : > { %v7365_v60 = vpop.f32.mrf.mxu1  ;;  %v6071_v11 = vmax.f32 %v6039_v32, 0.0  ;;  %v5893_v51 = vpop.f32.mrf.mxu0 }
 0x44e   : > { %v5886_v1 = vadd.f32 %v7686_v55, %v7364_v31  ;;  %6105 = vst [vmem:[%s10394_s30 + $0xb8] sm:$0xff] %v6073_v26  ;;  %v6042_v16 = vadd.f32 %v8033_v23, %v6010_v58  ;;  %v5972_v37 = vmul.f32 %v10346_v5, %v5933_v59  ;;  %v8034_v55 = vld [vmem:[%s8375_s17 + $0xc8] sm:$0xff] }
 0x44f   : > { %v7366_v3 = vpop.f32.mrf.mxu1  ;;  %6103 = vst [vmem:[%s10394_s30 + $0xa8] sm:$0xff] %v6071_v11  ;;  %v7691_v20 = vpop.f32.mrf.mxu0 }
 0x450   : > { %v5934_v13 = vadd.f32 %v5886_v1, %v10695_v46  ;;  %v7367_v17 = vadd.f32 %v7366_v3, %v7365_v60  ;;  %v6074_v47 = vmax.f32 %v6042_v16, 0.0  ;;  %v6011_v52 = vadd.f32 %v10359_v36, %v5972_v37  ;;  %v8040_v16 = vld [vmem:[%s8375_s17 + $0xf8] sm:$0xff] }
 0x451   : > { %v7368_v56 = vpop.f32.mrf.mxu1  ;;  %v5896_v63 = vpop.f32.mrf.mxu0 }
 0x452   : > { %v5973_v62 = vmul.f32 %v10346_v5, %v5934_v13  ;;  %v5889_v61 = vadd.f32 %v7687_v43, %v7367_v17  ;;  %6106 = vst [vmem:[%s10394_s30 + $0xc0] sm:$0xff] %v6074_v47  ;;  %v6043_v9 = vadd.f32 %v8034_v55, %v6011_v52 }
 0x453   : > { %v7369_v10 = vpop.f32.mrf.mxu1 }
 0x454   : > { %v6012_v25 = vadd.f32 %v10359_v36, %v5973_v62  ;;  %v5935_v49 = vadd.f32 %v5889_v61, %v10696_v22  ;;  %v7370_v35 = vadd.f32 %v7369_v10, %v7368_v56  ;;  %v6075_v34 = vmax.f32 %v6043_v9, 0.0 }
 0x455   : > { %v7371_v8 = vpop.f32.mrf.mxu1 }
 0x456   : > { %v6044_v38 = vadd.f32 %v8035_v14, %v6012_v25  ;;  %v5974_v42 = vmul.f32 %v10346_v5, %v5935_v49  ;;  %v5894_v4 = vadd.f32 %v7370_v35, %v5893_v51  ;;  %6107 = vst [vmem:[%s10394_s30 + $0xc8] sm:$0xff] %v6075_v34 }
 0x457   : > { %v7372_v28 = vpop.f32.mrf.mxu1 }
 0x458   : > { %v6076_v21 = vmax.f32 %v6044_v38, 0.0  ;;  %v6013_v7 = vadd.f32 %v10359_v36, %v5974_v42  ;;  %v5936_v18 = vadd.f32 %v5894_v4, %v10697_v15  ;;  %v7373_v54 = vadd.f32 %v7372_v28, %v7371_v8 }
 0x459   : > { %v7374_v0 = vpop.f32.mrf.mxu1 }
 0x45a   : > { %6108 = vst [vmem:[%s10394_s30 + $0xd0] sm:$0xff] %v6076_v21  ;;  %v6045_v43 = vadd.f32 %v8036_v24, %v6013_v7  ;;  %v5975_v50 = vmul.f32 %v10346_v5, %v5936_v18  ;;  %v5897_v27 = vadd.f32 %v7373_v54, %v5896_v63 }
 0x45b   : > { %v7375_v44 = vpop.f32.mrf.mxu1 }
 0x45c   : > { %v6077_v57 = vmax.f32 %v6045_v43, 0.0  ;;  %v6014_v29 = vadd.f32 %v10359_v36, %v5975_v50  ;;  %v5937_v30 = vadd.f32 %v5897_v27, %v10324_v41  ;;  %v7376_v40 = vadd.f32 %v7375_v44, %v7374_v0  ;;  %v8038_v41 = vld [vmem:[%s8375_s17 + $0xe8] sm:$0xff] }
 0x45d   : > { %v7377_v2 = vpop.f32.mrf.mxu1 }
 0x45e   : > { %6109 = vst [vmem:[%s10394_s30 + $0xd8] sm:$0xff] %v6077_v57  ;;  %v6046_v31 = vadd.f32 %v8037_v53, %v6014_v29  ;;  %v5976_v6 = vmul.f32 %v10346_v5, %v5937_v30  ;;  %v5902_v19 = vadd.f32 %v7690_v33, %v7376_v40 }
 0x45f   : > { %v7378_v26 = vpop.f32.mrf.mxu1 }
 0x460   : > { %v6078_v45 = vmax.f32 %v6046_v31, 0.0  ;;  %v6015_v32 = vadd.f32 %v10359_v36, %v5976_v6  ;;  %v5938_v60 = vadd.f32 %v5902_v19, %v10334_v12  ;;  %v7379_v1 = vadd.f32 %v7378_v26, %v7377_v2  ;;  %v8039_v12 = vld [vmem:[%s8375_s17 + $0xf0] sm:$0xff]  ;;  %s8125_s17 = sshll.u32 %s8199_s28, 4  ;;  %s8126_s17 = int_to_ptr.vmem [resolvable:$false] %s8125_s17 }
 0x461   : > { %s8127_s19 = scalar_lea.vmem %s8126_s17, 8192  ;;  %p8128_p6 = scmp.lt.s32.totalorder %s10583_s9, %s8126_s17 }
 0x462   : > { %6110 = vst [vmem:[%s10394_s30 + $0xe0] sm:$0xff] %v6078_v45  ;;  %v6047_v58 = vadd.f32 %v8038_v41, %v6015_v32  ;;  %v5977_v39 = vmul.f32 %v10346_v5, %v5938_v60  ;;  %v5905_v59 = vadd.f32 %v7691_v20, %v7379_v1  ;;  %p8129_p12 = scmp.lt.s32.totalorder %s8127_s19, %s8121_s13 }
 0x464   : > { %v6079_v11 = vmax.f32 %v6047_v58, 0.0  ;;  %v6016_v33 = vadd.f32 %v10359_v36, %v5977_v39  ;;  %v5939_v3 = vadd.f32 %v5905_v59, %v10351_v48  ;;  %p8130_p7 = por %p8129_p12, %p8128_p6 }
 0x466   : > { %6111 = vst [vmem:[%s10394_s30 + $0xe8] sm:$0xff] %v6079_v11  ;;  %v6048_v51 = vadd.f32 %v8039_v12, %v6016_v33  ;;  %v5978_v46 = vmul.f32 %v10346_v5, %v5939_v3  ;;  %p8131_p9 = pnand %p8130_p7, %p8124_p2 }
 0x468   : > { %v6080_v13 = vmax.f32 %v6048_v51, 0.0  ;;  %v6017_v23 = vadd.f32 %v10359_v36, %v5978_v46 }
 0x46a   : > { %6112 = vst [vmem:[%s10394_s30 + $0xf0] sm:$0xff] %v6080_v13  ;;  %v6049_v17 = vadd.f32 %v8040_v16, %v6017_v23 }
 0x46c   : > { %v6081_v48 = vmax.f32 %v6049_v17, 0.0 }
 0x46e   : > { %6113 = vst [vmem:[%s10394_s30 + $0xf8] sm:$0xff] %v6081_v48 }
 0x46f   : > { %8134 = shalt.err (!%p8131_p9)
}
 0x470   : > { %s8135_s10 = scalar_lea.hbm %s10581_s21, 4096  ;;  %s8139_s16 = scalar_lea.hbm %s10634_s7, 8192 }
 0x471   : > { %p8136_p13 = scmp.ne.s32.totalorder %s10581_s21, %s8135_s10  ;;  %p8140_p4 = scmp.lt.s32.totalorder %s10581_s21, %s10634_s7 }
 0x472   : > { %p8141_p8 = scmp.lt.s32.totalorder %s8139_s16, %s8135_s10 }
 0x473   : > { %p8137_p5 = pnand %p8136_p13, %p10698_p10 }
 0x474   : > { %p8142_p3 = por %p8141_p8, %p8140_p4 }
 0x475   : > { %p8138_p0 = pneg %p8137_p5 }
 0x477   : > { %p8143_p11 = pnand %p8142_p3, %p8138_p0 }
 0x479   : > { %8146 = shalt.err (!%p8143_p11)
}
 0x47a   : > { %s8200_s18 = smov 128   ;;  %s8201_s20 = smov 8  }
 0x47b   : > { %7702 = dma.vmem_to_hbm [thread:$0]  (%p10698_p10), %s10583_s9, 4096, %s10581_s21, %s6115_s22, %s8200_s18, %s8200_s18, %s8201_s20  }
 0x47c PF: > { %s6143_s13 = sand.u32 1, %s8177_s24   ;;  %p10699_p1 = scmp.ne.s32.totalorder %s10645_s8, 0 }
 0x47d   : > { %p10700_p2 = scmp.ge.s32.totalorder %s8189_s27, 2  ;;  %s6144_s28 = scalar_lea.sflag [#allocation6], %s6143_s13 }
 0x47f   : > { %p7716_p6 = pnand %p10700_p2, %p10699_p1 }
 0x481   : > { %p7717_p12 = pneg %p7716_p6 }
 0x483   : > { %8172 = dma.done.wait (%p7717_p12), %s6144_s28, 4096  }
 0x484   : > { %8174 = vsyncadd (%p7717_p12), %s6144_s28, 4294963200  ;;  %p21_p7 = scmp.ge.s32.totalorder %s8314_s23, 4   ;;  %s10701_s24 = smov %s8181_s25 }
 0x485   : > { %s10702_s25 = smov %s8185_s26  ;;  %s10703_s26 = smov %s8330_s12 }
 0x486   : > { %s10704_s27 = smov %s8314_s23  ;;  %23 = sbr.rel (!%p21_p7) target bundleno = 8 (0x8), region = 109 }
 0x48b   :  { %6149 = vsyncpa [#allocation5], 1 }
 0x48c   :  { %6151 = vsyncpa [#allocation5 + $0x1], 1 }
 0x48d   :  { %6152 = vsyncpa [#allocation8], 1 }
 0x48e   :  { %6153 = vsyncpa [#allocation6], 1 }
 0x48f   :  { %6155 = vsyncpa [#allocation6 + $0x1], 1 }

</bundles_post_ra>
